<compile_context>
chip_gen: v5e
topology: v5e:2x2
jax: 0.10.0
libtpu: 0.0.40
codegen_flags: <defaults>
</compile_context>

<pallas_src>
import numpy as np

import jax
import jax.numpy as jnp
from jax.experimental import pallas as pl
from jax.experimental.pallas import tpu as pltpu

# ----------------------------- configuration ---------------------------------
D_INP = 16                    # raw feature dim of `src`
D_PE = 16                     # positional-encoding dim
D_Z = D_INP + D_PE            # d_model of mask_decoder (d_z = 32)
T = 8                         # sequence length (tgt and memory)
B = 2                         # batch
BT = B * T
MAX_LEN = float(T)            # self.max_len
N_DEC_LAYERS = 2              # TODO(synk): n_dec_layers is defined outside the excerpt; 2 assumed.
DIM_FF = 64                   # TODO(synk): trans_dec_args undefined; nhead=1, ff=64, dropout=0, relu, post-norm assumed.
PRE_AGG_D = 32
TREND_D = 32
TIME_D = 64
PRELU_A = 0.25                # TODO(synk): PReLU slope is a learnable parameter; PyTorch default init 0.25 hardcoded.

LANES = 128                   # uniform lane width for all activations / weight blocks
N_DEC_BLOCKS = 5              # sa_qkv, ca_q, ca_kv, ff1, ff2
N_HEAD_BLOCKS = 9             # pre1, pre2, tr1, tr2, tp_in, tp_m0..2, tp_out
DEC_B_ROWS = 16               # 11 used rows padded to 16
HEAD_B_ROWS = 16              # 9 used rows padded to 16

# decoder bias/LN row indices (per layer)
_B_SAQKV, _B_CAQ, _B_CAKV, _B_FF1, _B_FF2 = 0, 1, 2, 3, 4
_B_LN1G, _B_LN1B, _B_LN2G, _B_LN2B, _B_LN3G, _B_LN3B = 5, 6, 7, 8, 9, 10
# decoder weight block indices (per layer)
_W_SAQKV, _W_CAQ, _W_CAKV, _W_FF1, _W_FF2 = 0, 1, 2, 3, 4
# head weight block / bias row indices
_H_PRE1, _H_PRE2, _H_TR1, _H_TR2, _H_TPIN, _H_TPM0, _H_TPM1, _H_TPM2, _H_TPOUT = range(9)


# ------------------------------ in-kernel helpers -----------------------------
def _mm(a, w):
    """MXU matmul: bf16 operands, f32 accumulation."""
    if a.dtype != jnp.bfloat16:
        a = a.astype(jnp.bfloat16)
    return jnp.dot(a, w, preferred_element_type=jnp.float32)


def _scores(q, k):
    """q @ k^T via dot_general contracting the last axes (no explicit transpose)."""
    return jax.lax.dot_general(q.astype(jnp.bfloat16), k.astype(jnp.bfloat16),
                               (((1,), (1,)), ((), ())),
                               preferred_element_type=jnp.float32)


def _layer_norm(v, g, b, fmask, true_d=float(D_Z), eps=1e-5):
    """LayerNorm over 128-lane padded activations; stats use the true width.
    Requires pad lanes of `v` to be exactly zero (maintained by construction)."""
    inv_d = 1.0 / true_d
    mu = jnp.sum(v, axis=-1, keepdims=True) * inv_d
    c = (v - mu) * fmask                       # zero the pad lanes before the variance
    var = jnp.sum(c * c, axis=-1, keepdims=True) * inv_d
    return c * jax.lax.rsqrt(var + eps) * g + b


def _prelu(v):
    return jnp.where(v >= 0.0, v, PRELU_A * v)


def _attention(q, k, v_iso):
    """q,k: (BT, 32) f32; v_iso: (BT, 128) f32 with only lanes 0:32 nonzero
    (W_o and its bias already folded in).  Unrolled loop over the B=2 batch."""
    outs = []
    for b in range(B):
        s0, s1 = b * T, (b + 1) * T
        s = _scores(q[s0:s1], k[s0:s1])                       # (T, T)
        m = jnp.max(s, axis=-1, keepdims=True)
        e = jnp.exp(s - m)
        a = e / jnp.sum(e, axis=-1, keepdims=True)            # exact -> bias folding exact
        outs.append(jnp.dot(a, v_iso[s0:s1],                  # f32 matmul, pads stay 0
                            preferred_element_type=jnp.float32))
    return jnp.concatenate(outs, axis=0)                      # (BT, 128)


# ------------------------------- fused kernel ---------------------------------
def _fused_kernel(x_ref, z_ref, dt2_ref,
                  dec_w_ref, dec_b_ref, head_w_ref, head_b_ref,
                  out_ref):
    x_in = x_ref[...]                         # (BT,128): 0:16 src | 16:32 pe | 0
    x = x_in
    z = z_ref[...]                            # (BT,128): 0:32 z_seq | 0
    z16 = z.astype(jnp.bfloat16)              # cast once, reused 3x (ca_kv x2, tp_in)

    lane = jax.lax.broadcasted_iota(jnp.int32, (1, LANES), 1)
    dzmask = (lane < D_Z).astype(jnp.float32)                 # ones in lanes 0:32

    # ---- mask_decoder: N_DEC_LAYERS post-norm TransformerDecoderLayers ----
    for l in range(N_DEC_LAYERS):
        bl = dec_b_ref[l]                                     # (16,128) f32

        def W(k, _l=l):
            return dec_w_ref[_l, k * LANES:(k + 1) * LANES, :]

        def brow(i, _bl=bl):
            return _bl[i:i + 1, :]

        # self-attention: one fused QKV matmul (cols: v' 0:32 | q*scale 32:64 | k 64:96)
        r = _mm(x, W(_W_SAQKV)) + brow(_B_SAQKV)
        sa = _attention(r[:, 32:64], r[:, 64:96], r * dzmask)
        x = _layer_norm(x + sa, brow(_B_LN1G), brow(_B_LN1B), dzmask)

        # cross-attention to memory z_seq: q from x; fused KV from z
        qc = _mm(x, W(_W_CAQ)) + brow(_B_CAQ)                 # q*scale at 0:32
        rkv = _mm(z16, W(_W_CAKV)) + brow(_B_CAKV)            # v' 0:32 | k 32:64
        ca = _attention(qc[:, 0:32], rkv[:, 32:64], rkv * dzmask)
        x = _layer_norm(x + ca, brow(_B_LN2G), brow(_B_LN2B), dzmask)

        # feed-forward (ReLU); pad lanes stay exactly zero
        h = jnp.maximum(_mm(x, W(_W_FF1)) + brow(_B_FF1), 0.0)
        ff = _mm(h, W(_W_FF2)) + brow(_B_FF2)
        x = _layer_norm(x + ff, brow(_B_LN3G), brow(_B_LN3B), dzmask)

    # ------------------------------- heads -------------------------------
    hb = head_b_ref[...]                                      # (16,128) f32

    def HW(k):
        return head_w_ref[k * LANES:(k + 1) * LANES, :]

    def hrow(i):
        return hb[i:i + 1, :]

    # pre_agg_net + 'max' aggregation over time (per batch element)
    hpre = _prelu(_mm(x, HW(_H_PRE1)) + hrow(_H_PRE1))
    hpre = _prelu(_mm(hpre, HW(_H_PRE2)) + hrow(_H_PRE2))
    agg = jnp.concatenate(
        [jnp.max(hpre[b * T:(b + 1) * T], axis=0, keepdims=True) for b in range(B)],
        axis=0)                                               # (B,128)

    # trend_net -> p = sigmoid(.) * max_len  (column 0 is the real output)
    tr = _prelu(_mm(agg, HW(_H_TR1)) + hrow(_H_TR1))
    p = jax.nn.sigmoid(_mm(tr, HW(_H_TR2)) + hrow(_H_TR2)) * MAX_LEN          # (B,128)

    # time_prob_net on the memory z_seq, then sigmoid
    u = _prelu(_mm(z16, HW(_H_TPIN)) + hrow(_H_TPIN))
    u = _prelu(_mm(u, HW(_H_TPM0)) + hrow(_H_TPM0))
    u = _prelu(_mm(u, HW(_H_TPM1)) + hrow(_H_TPM1))
    u = _prelu(_mm(u, HW(_H_TPM2)) + hrow(_H_TPM2))
    p_time = jax.nn.sigmoid(_mm(u, HW(_H_TPOUT)) + hrow(_H_TPOUT))[:, 0:1]    # (BT,1)

    # reparameterize, eval path: hard threshold at 0.5.
    # TODO(synk): training path uses stochastic F.gumbel_softmax(hard=True); not implemented.
    mask = (p_time > 0.5).astype(jnp.float32)                                 # (BT,1)

    # trend smoother: Gaussian kernel over time with bandwidth p, masked source steps.
    # TODO(synk): external `smoother` is not in the excerpt; Gaussian-kernel smoother assumed.
    dt2 = dt2_ref[...]                                                         # (BT,T)
    smooth_parts = []
    for b in range(B):
        s0, s1 = b * T, (b + 1) * T
        pb = p[b:b + 1, 0:1]                                                   # (1,1)
        w = jnp.exp(-dt2[s0:s1] / (pb + 1e-9)) * jnp.transpose(mask[s0:s1])    # exact divides
        w = w / (jnp.sum(w, axis=-1, keepdims=True) + 1e-9)
        smooth_parts.append(jnp.dot(w, x_in[s0:s1, 0:D_INP],
                                    preferred_element_type=jnp.float32))       # (T,D_INP)
    smooth = jnp.concatenate(smooth_parts, axis=0)                             # (BT,D_INP)

    # lane-dense packed output: [smooth | p_time | hard mask | zero pad] -> (BT,128)
    pad = jnp.zeros((BT, LANES - D_INP - 2), jnp.float32)
    out_ref[...] = jnp.concatenate([smooth, p_time, mask, pad], axis=-1)


# --------------------------------- wrapper ------------------------------------
def _fused_call(x0, zp, dt2, params):
    dec_w, dec_b = params["dec_w"], params["dec_b"]
    head_w, head_b = params["head_w"], params["head_b"]

    n_mm = N_DEC_LAYERS * (N_DEC_BLOCKS + 4) + N_HEAD_BLOCKS   # projections + attn einsums
    flops = 2 * BT * LANES * LANES * n_mm
    bytes_acc = int(sum(a.size * a.dtype.itemsize
                        for a in (x0, zp, dt2, dec_w, dec_b, head_w, head_b))
                    + BT * LANES * 4)

    in_specs = [
        pl.BlockSpec((BT, LANES), lambda i: (0, 0)),
        pl.BlockSpec((BT, LANES), lambda i: (0, 0)),
        pl.BlockSpec((BT, T), lambda i: (0, 0)),
        # packed weight slabs: constant index map -> DMA'd once, resident in VMEM
        pl.BlockSpec(dec_w.shape, lambda i: (0, 0, 0)),
        pl.BlockSpec(dec_b.shape, lambda i: (0, 0, 0)),
        pl.BlockSpec(head_w.shape, lambda i: (0, 0)),
        pl.BlockSpec(head_b.shape, lambda i: (0, 0)),
    ]
    return pl.pallas_call(
        _fused_kernel,
        out_shape=jax.ShapeDtypeStruct((BT, LANES), jnp.float32),
        grid=(1,),                                              # single invocation: B collapsed
        in_specs=in_specs,
        out_specs=pl.BlockSpec((BT, LANES), lambda i: (0, 0)),
        compiler_params=pltpu.CompilerParams(dimension_semantics=("arbitrary",)),
        cost_estimate=pl.CostEstimate(flops=int(flops),
                                      transcendentals=int(8 * BT * LANES),
                                      bytes_accessed=bytes_acc),
    )(x0, zp, dt2, dec_w, dec_b, head_w, head_b)


def _pos_encode(times_bt):
    """Sinusoidal time encoding, precomputed host-side.
    TODO(synk): self.pos_encoder defined outside the excerpt; sinusoidal time encoding assumed."""
    n = D_PE // 2
    inv_ts = jnp.exp(-jnp.arange(n, dtype=jnp.float32) * (float(np.log(MAX_LEN)) / float(n - 1)))
    scaled = times_bt[..., None] * inv_ts                      # (B,T,n)
    return jnp.concatenate([jnp.sin(scaled), jnp.cos(scaled)], axis=-1)        # (B,T,D_PE)


def unstruc_maskgen_forward(z_seq, src, times, params):
    """Inputs follow the PyTorch seq-first convention:
       z_seq (T,B,D_Z), src (T,B,D_INP), times (T,B)."""
    src_b = jnp.transpose(src, (1, 0, 2))                      # (B,T,D_INP)
    z_b = jnp.transpose(z_seq, (1, 0, 2))                      # (B,T,D_Z)
    times_b = jnp.transpose(times, (1, 0))                     # (B,T)

    # input preprocessing hoisted out of the kernel: pe, x0, dt^2, zero padding
    pe = _pos_encode(times_b)                                  # (B,T,D_PE)
    x0 = jnp.concatenate([src_b, pe], axis=-1)                 # (B,T,D_Z)
    x0 = jnp.pad(x0, ((0, 0), (0, 0), (0, LANES - D_Z))).reshape(BT, LANES)
    zp = jnp.pad(z_b, ((0, 0), (0, 0), (0, LANES - D_Z))).reshape(BT, LANES)
    dt = times_b[:, :, None] - times_b[:, None, :]             # (B,T,T)
    dt2 = (dt * dt).reshape(BT, T)

    slab = _fused_call(x0, zp, dt2, params).reshape(B, T, LANES)

    smooth_src = jnp.transpose(slab[:, :, :D_INP], (1, 0, 2))  # (T,B,D_INP)
    total_mask = slab[:, :, D_INP:D_INP + 1]                   # (B,T,1)
    total_mask_reparameterize = slab[:, :, D_INP + 1]          # (B,T)
    return smooth_src, total_mask, total_mask_reparameterize


# ------------------------------ parameter init --------------------------------
def init_params(key):
    keys = jax.random.split(key, 64)
    kit = iter(keys)
    scale = 1.0 / np.sqrt(D_Z)                 # single head -> head_dim = d_model

    def linear(fan_in, fan_out):
        kw, kb = jax.random.split(next(kit))
        bound = 1.0 / np.sqrt(fan_in)
        w = np.asarray(jax.random.uniform(kw, (fan_in, fan_out), jnp.float32, -bound, bound))
        b = np.asarray(jax.random.uniform(kb, (fan_out,), jnp.float32, -bound, bound))
        return w, b

    def block(entries):
        blk = np.zeros((LANES, LANES), np.float32)
        for w, c0 in entries:
            blk[:w.shape[0], c0:c0 + w.shape[1]] = w
        return blk

    def row(entries):
        r = np.zeros((LANES,), np.float32)
        for v, c0 in entries:
            v = np.asarray(v, np.float32).reshape(-1)
            r[c0:c0 + v.shape[0]] = v
        return r

    ones_dz = np.ones((D_Z,), np.float32)
    zeros_dz = np.zeros((D_Z,), np.float32)

    dec_w_layers, dec_b_layers = [], []
    for _ in range(N_DEC_LAYERS):
        wq, bq = linear(D_Z, D_Z); wk, bk = linear(D_Z, D_Z)
        wv, bv = linear(D_Z, D_Z); wo, bo = linear(D_Z, D_Z)
        wvp, bvp = wv @ wo, bv @ wo + bo                       # fold out-proj into V (exact)
        cwq, cbq = linear(D_Z, D_Z); cwk, cbk = linear(D_Z, D_Z)
        cwv, cbv = linear(D_Z, D_Z); cwo, cbo = linear(D_Z, D_Z)
        cwvp, cbvp = cwv @ cwo, cbv @ cwo + cbo
        wf1, bf1 = linear(D_Z, DIM_FF); wf2, bf2 = linear(DIM_FF, D_Z)

        blocks = [
            block([(wvp, 0), (wq * scale, 32), (wk, 64)]),     # SA fused: V' | Q*s | K
            block([(cwq * scale, 0)]),                         # CA Q*s
            block([(cwvp, 0), (cwk, 32)]),                     # CA fused: V' | K
            block([(wf1, 0)]),                                 # FF1 (out 0:64)
            block([(wf2, 0)]),                                 # FF2 (in 0:64 -> out 0:32)
        ]
        brows = [
            row([(bvp, 0), (bq * scale, 32), (bk, 64)]),
            row([(cbq * scale, 0)]),
            row([(cbvp, 0), (cbk, 32)]),
            row([(bf1, 0)]),
            row([(bf2, 0)]),
            row([(ones_dz, 0)]), row([(zeros_dz, 0)]),         # ln1 gamma / beta
            row([(ones_dz, 0)]), row([(zeros_dz, 0)]),         # ln2
            row([(ones_dz, 0)]), row([(zeros_dz, 0)]),         # ln3
        ]
        brows += [np.zeros((LANES,), np.float32)] * (DEC_B_ROWS - len(brows))
        dec_w_layers.append(np.concatenate(blocks, axis=0))    # (5*128, 128)
        dec_b_layers.append(np.stack(brows, axis=0))           # (16, 128)

    wp1, bp1 = linear(D_Z, PRE_AGG_D); wp2, bp2 = linear(PRE_AGG_D, PRE_AGG_D)
    wt1, bt1 = linear(PRE_AGG_D, TREND_D); wt2, bt2 = linear(TREND_D, 1)
    wi, bi = linear(D_Z, TIME_D)
    wm, bm = [], []
    for _ in range(3):
        w_, b_ = linear(TIME_D, TIME_D); wm.append(w_); bm.append(b_)
    wout, bout = linear(TIME_D, 1)

    head_blocks = [block([(wp1, 0)]), block([(wp2, 0)]),
                   block([(wt1, 0)]), block([(wt2, 0)]),
                   block([(wi, 0)]), block([(wm[0], 0)]), block([(wm[1], 0)]),
                   block([(wm[2], 0)]), block([(wout, 0)])]
    head_rows = [row([(bp1, 0)]), row([(bp2, 0)]), row([(bt1, 0)]), row([(bt2, 0)]),
                 row([(bi, 0)]), row([(bm[0], 0)]), row([(bm[1], 0)]), row([(bm[2], 0)]),
                 row([(bout, 0)])]
    head_rows += [np.zeros((LANES,), np.float32)] * (HEAD_B_ROWS - len(head_rows))

    return dict(
        # matmul weights in bf16 (MXU-native); biases/LayerNorm params stay f32
        dec_w=jnp.asarray(np.stack(dec_w_layers), jnp.bfloat16),            # (L, 640, 128)
        dec_b=jnp.asarray(np.stack(dec_b_layers), jnp.float32),             # (L, 16, 128)
        head_w=jnp.asarray(np.concatenate(head_blocks, axis=0), jnp.bfloat16),  # (1152, 128)
        head_b=jnp.asarray(np.stack(head_rows, axis=0), jnp.float32),       # (16, 128)
    )


# ------------------------------------ main -------------------------------------
if __name__ == "__main__":
    key = jax.random.PRNGKey(0)
    k1, k2, k3, kp = jax.random.split(key, 4)
    z_seq = jax.random.normal(k1, (T, B, D_Z), jnp.float32)
    src = jax.random.normal(k2, (T, B, D_INP), jnp.float32)
    times = (jnp.tile(jnp.arange(T, dtype=jnp.float32)[:, None], (1, B))
             + 0.01 * jax.random.normal(k3, (T, B), jnp.float32))
    params = init_params(kp)

    fwd = jax.jit(unstruc_maskgen_forward)
    smooth_src, total_mask, mask_rep = fwd(z_seq, src, times, params)
    jax.block_until_ready((smooth_src, total_mask, mask_rep))

    assert smooth_src.shape == (T, B, D_INP)
    assert total_mask.shape == (B, T, 1)
    assert mask_rep.shape == (B, T)
    assert bool(jnp.all(jnp.isfinite(smooth_src)))
    assert bool(jnp.all((total_mask >= 0.0) & (total_mask <= 1.0)))
    print("KERNEL_OK")
</pallas_src>

<mosaic_0001>
module attributes {stable_mosaic.version = 11 : i64} {
  func.func @_fused_kernel(%arg0: i32, %arg1: memref<16x128xf32, #tpu.memory_space<vmem>>, %arg2: memref<16x128xf32, #tpu.memory_space<vmem>>, %arg3: memref<16x8xf32, #tpu.memory_space<vmem>>, %arg4: memref<2x640x128xbf16, #tpu.memory_space<vmem>>, %arg5: memref<2x16x128xf32, #tpu.memory_space<vmem>>, %arg6: memref<1152x128xbf16, #tpu.memory_space<vmem>>, %arg7: memref<16x128xf32, #tpu.memory_space<vmem>>, %arg8: memref<16x128xf32, #tpu.memory_space<vmem>>) attributes {dimension_semantics = [#tpu.dimension_semantics<arbitrary>], iteration_bounds = array<i64: 1>, scalar_prefetch = 0 : i64, scratch_operands = 0 : i64, tpu.core_type = #tpu.core_type<tc>, window_params = [{pipeline_mode = #tpu.pipeline_mode<synchronous>, transform_indices = @transform_0, window_bounds = array<i64: 16, 128>}, {pipeline_mode = #tpu.pipeline_mode<synchronous>, transform_indices = @transform_1, window_bounds = array<i64: 16, 128>}, {pipeline_mode = #tpu.pipeline_mode<synchronous>, transform_indices = @transform_2, window_bounds = array<i64: 16, 8>}, {pipeline_mode = #tpu.pipeline_mode<synchronous>, transform_indices = @transform_3, window_bounds = array<i64: 2, 640, 128>}, {pipeline_mode = #tpu.pipeline_mode<synchronous>, transform_indices = @transform_4, window_bounds = array<i64: 2, 16, 128>}, {pipeline_mode = #tpu.pipeline_mode<synchronous>, transform_indices = @transform_5, window_bounds = array<i64: 1152, 128>}, {pipeline_mode = #tpu.pipeline_mode<synchronous>, transform_indices = @transform_6, window_bounds = array<i64: 16, 128>}, {pipeline_mode = #tpu.pipeline_mode<synchronous>, transform_indices = @transform_7, window_bounds = array<i64: 16, 128>}]} {
    %c0 = arith.constant 0 : index
    %c0_0 = arith.constant 0 : index
    %0 = vector.load %arg1[%c0, %c0_0] : memref<16x128xf32, #tpu.memory_space<vmem>>, vector<16x128xf32>
    %c0_1 = arith.constant 0 : index
    %c0_2 = arith.constant 0 : index
    %1 = vector.load %arg2[%c0_1, %c0_2] : memref<16x128xf32, #tpu.memory_space<vmem>>, vector<16x128xf32>
    %2 = arith.truncf %1 : vector<16x128xf32> to vector<16x128xbf16>
    %3 = tpu.iota {dimensions = array<i32: 1>} : vector<1x128xi32>
    %c32_i32 = arith.constant 32 : i32
    %4 = vector.broadcast %c32_i32 : i32 to vector<1x128xi32>
    %5 = arith.cmpi slt, %3, %4 : vector<1x128xi32>
    %6 = arith.extui %5 : vector<1x128xi1> to vector<1x128xi32>
    %7 = arith.sitofp %6 : vector<1x128xi32> to vector<1x128xf32>
    %c0_3 = arith.constant 0 : index
    %c0_4 = arith.constant 0 : index
    %c0_5 = arith.constant 0 : index
    %8 = vector.load %arg5[%c0_3, %c0_4, %c0_5] : memref<2x16x128xf32, #tpu.memory_space<vmem>>, vector<1x16x128xf32>
    %9 = vector.shape_cast %8 : vector<1x16x128xf32> to vector<16x128xf32>
    %c0_6 = arith.constant 0 : index
    %c0_7 = arith.constant 0 : index
    %c0_8 = arith.constant 0 : index
    %10 = vector.load %arg4[%c0_6, %c0_7, %c0_8] : memref<2x640x128xbf16, #tpu.memory_space<vmem>>, vector<1x128x128xbf16>
    %11 = vector.shape_cast %10 : vector<1x128x128xbf16> to vector<128x128xbf16>
    %12 = arith.truncf %0 : vector<16x128xf32> to vector<16x128xbf16>
    %cst = arith.constant dense<0.000000e+00> : vector<16x128xf32>
    %13 = tpu.matmul %12, %11, %cst {dimension_numbers = #tpu.dot_dimension_numbers<[1], [0], [0], [1], [0, 0, 1, 1], [], []>} : vector<16x128xbf16>, vector<128x128xbf16>, vector<16x128xf32> -> vector<16x128xf32>
    %14 = vector.extract_strided_slice %9 {offsets = [0, 0], sizes = [1, 128], strides = [1, 1]} : vector<16x128xf32> to vector<1x128xf32>
    %15 = vector.broadcast %14 : vector<1x128xf32> to vector<16x128xf32>
    %16 = arith.addf %13, %15 : vector<16x128xf32>
    %17 = vector.extract_strided_slice %16 {offsets = [0, 32], sizes = [16, 32], strides = [1, 1]} : vector<16x128xf32> to vector<16x32xf32>
    %18 = vector.extract_strided_slice %16 {offsets = [0, 64], sizes = [16, 32], strides = [1, 1]} : vector<16x128xf32> to vector<16x32xf32>
    %19 = vector.broadcast %7 : vector<1x128xf32> to vector<16x128xf32>
    %20 = arith.mulf %16, %19 : vector<16x128xf32>
    %21 = vector.extract_strided_slice %17 {offsets = [0, 0], sizes = [8, 32], strides = [1, 1]} : vector<16x32xf32> to vector<8x32xf32>
    %22 = vector.extract_strided_slice %18 {offsets = [0, 0], sizes = [8, 32], strides = [1, 1]} : vector<16x32xf32> to vector<8x32xf32>
    %23 = arith.truncf %21 : vector<8x32xf32> to vector<8x32xbf16>
    %24 = arith.truncf %22 : vector<8x32xf32> to vector<8x32xbf16>
    %cst_9 = arith.constant dense<0.000000e+00> : vector<8x8xf32>
    %25 = tpu.matmul %23, %24, %cst_9 {dimension_numbers = #tpu.dot_dimension_numbers<[1], [1], [0], [0], [0, 0, 1, 0], [], []>} : vector<8x32xbf16>, vector<8x32xbf16>, vector<8x8xf32> -> vector<8x8xf32>
    %cst_10 = arith.constant dense<0xFF800000> : vector<8xf32>
    %26 = vector.multi_reduction <maximumf>, %25, %cst_10 [1] : vector<8x8xf32> to vector<8xf32>
    %27 = vector.shape_cast %26 : vector<8xf32> to vector<8x1xf32>
    %28 = vector.broadcast %27 : vector<8x1xf32> to vector<8x8xf32>
    %29 = arith.subf %25, %28 : vector<8x8xf32>
    %30 = math.exp %29 : vector<8x8xf32>
    %cst_11 = arith.constant dense<0.000000e+00> : vector<8xf32>
    %31 = vector.multi_reduction <add>, %30, %cst_11 [1] : vector<8x8xf32> to vector<8xf32>
    %32 = vector.shape_cast %31 : vector<8xf32> to vector<8x1xf32>
    %33 = vector.broadcast %32 : vector<8x1xf32> to vector<8x8xf32>
    %34 = arith.divf %30, %33 : vector<8x8xf32>
    %35 = vector.extract_strided_slice %20 {offsets = [0, 0], sizes = [8, 128], strides = [1, 1]} : vector<16x128xf32> to vector<8x128xf32>
    %cst_12 = arith.constant dense<0.000000e+00> : vector<8x128xf32>
    %36 = tpu.matmul %34, %35, %cst_12 {dimension_numbers = #tpu.dot_dimension_numbers<[1], [0], [0], [1], [0, 0, 1, 1], [], []>} : vector<8x8xf32>, vector<8x128xf32>, vector<8x128xf32> -> vector<8x128xf32>
    %37 = vector.extract_strided_slice %17 {offsets = [8, 0], sizes = [8, 32], strides = [1, 1]} : vector<16x32xf32> to vector<8x32xf32>
    %38 = vector.extract_strided_slice %18 {offsets = [8, 0], sizes = [8, 32], strides = [1, 1]} : vector<16x32xf32> to vector<8x32xf32>
    %39 = arith.truncf %37 : vector<8x32xf32> to vector<8x32xbf16>
    %40 = arith.truncf %38 : vector<8x32xf32> to vector<8x32xbf16>
    %cst_13 = arith.constant dense<0.000000e+00> : vector<8x8xf32>
    %41 = tpu.matmul %39, %40, %cst_13 {dimension_numbers = #tpu.dot_dimension_numbers<[1], [1], [0], [0], [0, 0, 1, 0], [], []>} : vector<8x32xbf16>, vector<8x32xbf16>, vector<8x8xf32> -> vector<8x8xf32>
    %cst_14 = arith.constant dense<0xFF800000> : vector<8xf32>
    %42 = vector.multi_reduction <maximumf>, %41, %cst_14 [1] : vector<8x8xf32> to vector<8xf32>
    %43 = vector.shape_cast %42 : vector<8xf32> to vector<8x1xf32>
    %44 = vector.broadcast %43 : vector<8x1xf32> to vector<8x8xf32>
    %45 = arith.subf %41, %44 : vector<8x8xf32>
    %46 = math.exp %45 : vector<8x8xf32>
    %cst_15 = arith.constant dense<0.000000e+00> : vector<8xf32>
    %47 = vector.multi_reduction <add>, %46, %cst_15 [1] : vector<8x8xf32> to vector<8xf32>
    %48 = vector.shape_cast %47 : vector<8xf32> to vector<8x1xf32>
    %49 = vector.broadcast %48 : vector<8x1xf32> to vector<8x8xf32>
    %50 = arith.divf %46, %49 : vector<8x8xf32>
    %51 = vector.extract_strided_slice %20 {offsets = [8, 0], sizes = [8, 128], strides = [1, 1]} : vector<16x128xf32> to vector<8x128xf32>
    %cst_16 = arith.constant dense<0.000000e+00> : vector<8x128xf32>
    %52 = tpu.matmul %50, %51, %cst_16 {dimension_numbers = #tpu.dot_dimension_numbers<[1], [0], [0], [1], [0, 0, 1, 1], [], []>} : vector<8x8xf32>, vector<8x128xf32>, vector<8x128xf32> -> vector<8x128xf32>
    %53 = tpu.concatenate %36, %52 in 0 : vector<8x128xf32>, vector<8x128xf32> -> vector<16x128xf32>
    %54 = arith.addf %0, %53 : vector<16x128xf32>
    %55 = vector.extract_strided_slice %9 {offsets = [5, 0], sizes = [1, 128], strides = [1, 1]} : vector<16x128xf32> to vector<1x128xf32>
    %56 = vector.extract_strided_slice %9 {offsets = [6, 0], sizes = [1, 128], strides = [1, 1]} : vector<16x128xf32> to vector<1x128xf32>
    %cst_17 = arith.constant dense<0.000000e+00> : vector<16xf32>
    %57 = vector.multi_reduction <add>, %54, %cst_17 [1] : vector<16x128xf32> to vector<16xf32>
    %58 = vector.shape_cast %57 : vector<16xf32> to vector<16x1xf32>
    %cst_18 = arith.constant 3.125000e-02 : f32
    %59 = vector.broadcast %cst_18 : f32 to vector<16x1xf32>
    %60 = arith.mulf %58, %59 : vector<16x1xf32>
    %61 = vector.broadcast %60 : vector<16x1xf32> to vector<16x128xf32>
    %62 = arith.subf %54, %61 : vector<16x128xf32>
    %63 = vector.broadcast %7 : vector<1x128xf32> to vector<16x128xf32>
    %64 = arith.mulf %62, %63 : vector<16x128xf32>
    %65 = arith.mulf %64, %64 : vector<16x128xf32>
    %cst_19 = arith.constant dense<0.000000e+00> : vector<16xf32>
    %66 = vector.multi_reduction <add>, %65, %cst_19 [1] : vector<16x128xf32> to vector<16xf32>
    %67 = vector.shape_cast %66 : vector<16xf32> to vector<16x1xf32>
    %cst_20 = arith.constant 3.125000e-02 : f32
    %68 = vector.broadcast %cst_20 : f32 to vector<16x1xf32>
    %69 = arith.mulf %67, %68 : vector<16x1xf32>
    %cst_21 = arith.constant 9.99999974E-6 : f32
    %70 = vector.broadcast %cst_21 : f32 to vector<16x1xf32>
    %71 = arith.addf %69, %70 : vector<16x1xf32>
    %72 = math.rsqrt %71 : vector<16x1xf32>
    %73 = vector.broadcast %72 : vector<16x1xf32> to vector<16x128xf32>
    %74 = arith.mulf %64, %73 : vector<16x128xf32>
    %75 = vector.broadcast %55 : vector<1x128xf32> to vector<16x128xf32>
    %76 = arith.mulf %74, %75 : vector<16x128xf32>
    %77 = vector.broadcast %56 : vector<1x128xf32> to vector<16x128xf32>
    %78 = arith.addf %76, %77 : vector<16x128xf32>
    %c0_22 = arith.constant 0 : index
    %c128 = arith.constant 128 : index
    %c0_23 = arith.constant 0 : index
    %79 = vector.load %arg4[%c0_22, %c128, %c0_23] : memref<2x640x128xbf16, #tpu.memory_space<vmem>>, vector<1x128x128xbf16>
    %80 = vector.shape_cast %79 : vector<1x128x128xbf16> to vector<128x128xbf16>
    %81 = arith.truncf %78 : vector<16x128xf32> to vector<16x128xbf16>
    %cst_24 = arith.constant dense<0.000000e+00> : vector<16x128xf32>
    %82 = tpu.matmul %81, %80, %cst_24 {dimension_numbers = #tpu.dot_dimension_numbers<[1], [0], [0], [1], [0, 0, 1, 1], [], []>} : vector<16x128xbf16>, vector<128x128xbf16>, vector<16x128xf32> -> vector<16x128xf32>
    %83 = vector.extract_strided_slice %9 {offsets = [1, 0], sizes = [1, 128], strides = [1, 1]} : vector<16x128xf32> to vector<1x128xf32>
    %84 = vector.broadcast %83 : vector<1x128xf32> to vector<16x128xf32>
    %85 = arith.addf %82, %84 : vector<16x128xf32>
    %c0_25 = arith.constant 0 : index
    %c256 = arith.constant 256 : index
    %c0_26 = arith.constant 0 : index
    %86 = vector.load %arg4[%c0_25, %c256, %c0_26] : memref<2x640x128xbf16, #tpu.memory_space<vmem>>, vector<1x128x128xbf16>
    %87 = vector.shape_cast %86 : vector<1x128x128xbf16> to vector<128x128xbf16>
    %cst_27 = arith.constant dense<0.000000e+00> : vector<16x128xf32>
    %88 = tpu.matmul %2, %87, %cst_27 {dimension_numbers = #tpu.dot_dimension_numbers<[1], [0], [0], [1], [0, 0, 1, 1], [], []>} : vector<16x128xbf16>, vector<128x128xbf16>, vector<16x128xf32> -> vector<16x128xf32>
    %89 = vector.extract_strided_slice %9 {offsets = [2, 0], sizes = [1, 128], strides = [1, 1]} : vector<16x128xf32> to vector<1x128xf32>
    %90 = vector.broadcast %89 : vector<1x128xf32> to vector<16x128xf32>
    %91 = arith.addf %88, %90 : vector<16x128xf32>
    %92 = vector.extract_strided_slice %85 {offsets = [0, 0], sizes = [16, 32], strides = [1, 1]} : vector<16x128xf32> to vector<16x32xf32>
    %93 = vector.extract_strided_slice %91 {offsets = [0, 32], sizes = [16, 32], strides = [1, 1]} : vector<16x128xf32> to vector<16x32xf32>
    %94 = vector.broadcast %7 : vector<1x128xf32> to vector<16x128xf32>
    %95 = arith.mulf %91, %94 : vector<16x128xf32>
    %96 = vector.extract_strided_slice %92 {offsets = [0, 0], sizes = [8, 32], strides = [1, 1]} : vector<16x32xf32> to vector<8x32xf32>
    %97 = vector.extract_strided_slice %93 {offsets = [0, 0], sizes = [8, 32], strides = [1, 1]} : vector<16x32xf32> to vector<8x32xf32>
    %98 = arith.truncf %96 : vector<8x32xf32> to vector<8x32xbf16>
    %99 = arith.truncf %97 : vector<8x32xf32> to vector<8x32xbf16>
    %cst_28 = arith.constant dense<0.000000e+00> : vector<8x8xf32>
    %100 = tpu.matmul %98, %99, %cst_28 {dimension_numbers = #tpu.dot_dimension_numbers<[1], [1], [0], [0], [0, 0, 1, 0], [], []>} : vector<8x32xbf16>, vector<8x32xbf16>, vector<8x8xf32> -> vector<8x8xf32>
    %cst_29 = arith.constant dense<0xFF800000> : vector<8xf32>
    %101 = vector.multi_reduction <maximumf>, %100, %cst_29 [1] : vector<8x8xf32> to vector<8xf32>
    %102 = vector.shape_cast %101 : vector<8xf32> to vector<8x1xf32>
    %103 = vector.broadcast %102 : vector<8x1xf32> to vector<8x8xf32>
    %104 = arith.subf %100, %103 : vector<8x8xf32>
    %105 = math.exp %104 : vector<8x8xf32>
    %cst_30 = arith.constant dense<0.000000e+00> : vector<8xf32>
    %106 = vector.multi_reduction <add>, %105, %cst_30 [1] : vector<8x8xf32> to vector<8xf32>
    %107 = vector.shape_cast %106 : vector<8xf32> to vector<8x1xf32>
    %108 = vector.broadcast %107 : vector<8x1xf32> to vector<8x8xf32>
    %109 = arith.divf %105, %108 : vector<8x8xf32>
    %110 = vector.extract_strided_slice %95 {offsets = [0, 0], sizes = [8, 128], strides = [1, 1]} : vector<16x128xf32> to vector<8x128xf32>
    %cst_31 = arith.constant dense<0.000000e+00> : vector<8x128xf32>
    %111 = tpu.matmul %109, %110, %cst_31 {dimension_numbers = #tpu.dot_dimension_numbers<[1], [0], [0], [1], [0, 0, 1, 1], [], []>} : vector<8x8xf32>, vector<8x128xf32>, vector<8x128xf32> -> vector<8x128xf32>
    %112 = vector.extract_strided_slice %92 {offsets = [8, 0], sizes = [8, 32], strides = [1, 1]} : vector<16x32xf32> to vector<8x32xf32>
    %113 = vector.extract_strided_slice %93 {offsets = [8, 0], sizes = [8, 32], strides = [1, 1]} : vector<16x32xf32> to vector<8x32xf32>
    %114 = arith.truncf %112 : vector<8x32xf32> to vector<8x32xbf16>
    %115 = arith.truncf %113 : vector<8x32xf32> to vector<8x32xbf16>
    %cst_32 = arith.constant dense<0.000000e+00> : vector<8x8xf32>
    %116 = tpu.matmul %114, %115, %cst_32 {dimension_numbers = #tpu.dot_dimension_numbers<[1], [1], [0], [0], [0, 0, 1, 0], [], []>} : vector<8x32xbf16>, vector<8x32xbf16>, vector<8x8xf32> -> vector<8x8xf32>
    %cst_33 = arith.constant dense<0xFF800000> : vector<8xf32>
    %117 = vector.multi_reduction <maximumf>, %116, %cst_33 [1] : vector<8x8xf32> to vector<8xf32>
    %118 = vector.shape_cast %117 : vector<8xf32> to vector<8x1xf32>
    %119 = vector.broadcast %118 : vector<8x1xf32> to vector<8x8xf32>
    %120 = arith.subf %116, %119 : vector<8x8xf32>
    %121 = math.exp %120 : vector<8x8xf32>
    %cst_34 = arith.constant dense<0.000000e+00> : vector<8xf32>
    %122 = vector.multi_reduction <add>, %121, %cst_34 [1] : vector<8x8xf32> to vector<8xf32>
    %123 = vector.shape_cast %122 : vector<8xf32> to vector<8x1xf32>
    %124 = vector.broadcast %123 : vector<8x1xf32> to vector<8x8xf32>
    %125 = arith.divf %121, %124 : vector<8x8xf32>
    %126 = vector.extract_strided_slice %95 {offsets = [8, 0], sizes = [8, 128], strides = [1, 1]} : vector<16x128xf32> to vector<8x128xf32>
    %cst_35 = arith.constant dense<0.000000e+00> : vector<8x128xf32>
    %127 = tpu.matmul %125, %126, %cst_35 {dimension_numbers = #tpu.dot_dimension_numbers<[1], [0], [0], [1], [0, 0, 1, 1], [], []>} : vector<8x8xf32>, vector<8x128xf32>, vector<8x128xf32> -> vector<8x128xf32>
    %128 = tpu.concatenate %111, %127 in 0 : vector<8x128xf32>, vector<8x128xf32> -> vector<16x128xf32>
    %129 = arith.addf %78, %128 : vector<16x128xf32>
    %130 = vector.extract_strided_slice %9 {offsets = [7, 0], sizes = [1, 128], strides = [1, 1]} : vector<16x128xf32> to vector<1x128xf32>
    %131 = vector.extract_strided_slice %9 {offsets = [8, 0], sizes = [1, 128], strides = [1, 1]} : vector<16x128xf32> to vector<1x128xf32>
    %cst_36 = arith.constant dense<0.000000e+00> : vector<16xf32>
    %132 = vector.multi_reduction <add>, %129, %cst_36 [1] : vector<16x128xf32> to vector<16xf32>
    %133 = vector.shape_cast %132 : vector<16xf32> to vector<16x1xf32>
    %cst_37 = arith.constant 3.125000e-02 : f32
    %134 = vector.broadcast %cst_37 : f32 to vector<16x1xf32>
    %135 = arith.mulf %133, %134 : vector<16x1xf32>
    %136 = vector.broadcast %135 : vector<16x1xf32> to vector<16x128xf32>
    %137 = arith.subf %129, %136 : vector<16x128xf32>
    %138 = vector.broadcast %7 : vector<1x128xf32> to vector<16x128xf32>
    %139 = arith.mulf %137, %138 : vector<16x128xf32>
    %140 = arith.mulf %139, %139 : vector<16x128xf32>
    %cst_38 = arith.constant dense<0.000000e+00> : vector<16xf32>
    %141 = vector.multi_reduction <add>, %140, %cst_38 [1] : vector<16x128xf32> to vector<16xf32>
    %142 = vector.shape_cast %141 : vector<16xf32> to vector<16x1xf32>
    %cst_39 = arith.constant 3.125000e-02 : f32
    %143 = vector.broadcast %cst_39 : f32 to vector<16x1xf32>
    %144 = arith.mulf %142, %143 : vector<16x1xf32>
    %cst_40 = arith.constant 9.99999974E-6 : f32
    %145 = vector.broadcast %cst_40 : f32 to vector<16x1xf32>
    %146 = arith.addf %144, %145 : vector<16x1xf32>
    %147 = math.rsqrt %146 : vector<16x1xf32>
    %148 = vector.broadcast %147 : vector<16x1xf32> to vector<16x128xf32>
    %149 = arith.mulf %139, %148 : vector<16x128xf32>
    %150 = vector.broadcast %130 : vector<1x128xf32> to vector<16x128xf32>
    %151 = arith.mulf %149, %150 : vector<16x128xf32>
    %152 = vector.broadcast %131 : vector<1x128xf32> to vector<16x128xf32>
    %153 = arith.addf %151, %152 : vector<16x128xf32>
    %c0_41 = arith.constant 0 : index
    %c384 = arith.constant 384 : index
    %c0_42 = arith.constant 0 : index
    %154 = vector.load %arg4[%c0_41, %c384, %c0_42] : memref<2x640x128xbf16, #tpu.memory_space<vmem>>, vector<1x128x128xbf16>
    %155 = vector.shape_cast %154 : vector<1x128x128xbf16> to vector<128x128xbf16>
    %156 = arith.truncf %153 : vector<16x128xf32> to vector<16x128xbf16>
    %cst_43 = arith.constant dense<0.000000e+00> : vector<16x128xf32>
    %157 = tpu.matmul %156, %155, %cst_43 {dimension_numbers = #tpu.dot_dimension_numbers<[1], [0], [0], [1], [0, 0, 1, 1], [], []>} : vector<16x128xbf16>, vector<128x128xbf16>, vector<16x128xf32> -> vector<16x128xf32>
    %158 = vector.extract_strided_slice %9 {offsets = [3, 0], sizes = [1, 128], strides = [1, 1]} : vector<16x128xf32> to vector<1x128xf32>
    %159 = vector.broadcast %158 : vector<1x128xf32> to vector<16x128xf32>
    %160 = arith.addf %157, %159 : vector<16x128xf32>
    %cst_44 = arith.constant 0.000000e+00 : f32
    %161 = vector.broadcast %cst_44 : f32 to vector<16x128xf32>
    %162 = arith.maximumf %160, %161 : vector<16x128xf32>
    %c0_45 = arith.constant 0 : index
    %c512 = arith.constant 512 : index
    %c0_46 = arith.constant 0 : index
    %163 = vector.load %arg4[%c0_45, %c512, %c0_46] : memref<2x640x128xbf16, #tpu.memory_space<vmem>>, vector<1x128x128xbf16>
    %164 = vector.shape_cast %163 : vector<1x128x128xbf16> to vector<128x128xbf16>
    %165 = arith.truncf %162 : vector<16x128xf32> to vector<16x128xbf16>
    %cst_47 = arith.constant dense<0.000000e+00> : vector<16x128xf32>
    %166 = tpu.matmul %165, %164, %cst_47 {dimension_numbers = #tpu.dot_dimension_numbers<[1], [0], [0], [1], [0, 0, 1, 1], [], []>} : vector<16x128xbf16>, vector<128x128xbf16>, vector<16x128xf32> -> vector<16x128xf32>
    %167 = vector.extract_strided_slice %9 {offsets = [4, 0], sizes = [1, 128], strides = [1, 1]} : vector<16x128xf32> to vector<1x128xf32>
    %168 = vector.broadcast %167 : vector<1x128xf32> to vector<16x128xf32>
    %169 = arith.addf %166, %168 : vector<16x128xf32>
    %170 = arith.addf %153, %169 : vector<16x128xf32>
    %171 = vector.extract_strided_slice %9 {offsets = [9, 0], sizes = [1, 128], strides = [1, 1]} : vector<16x128xf32> to vector<1x128xf32>
    %172 = vector.extract_strided_slice %9 {offsets = [10, 0], sizes = [1, 128], strides = [1, 1]} : vector<16x128xf32> to vector<1x128xf32>
    %cst_48 = arith.constant dense<0.000000e+00> : vector<16xf32>
    %173 = vector.multi_reduction <add>, %170, %cst_48 [1] : vector<16x128xf32> to vector<16xf32>
    %174 = vector.shape_cast %173 : vector<16xf32> to vector<16x1xf32>
    %cst_49 = arith.constant 3.125000e-02 : f32
    %175 = vector.broadcast %cst_49 : f32 to vector<16x1xf32>
    %176 = arith.mulf %174, %175 : vector<16x1xf32>
    %177 = vector.broadcast %176 : vector<16x1xf32> to vector<16x128xf32>
    %178 = arith.subf %170, %177 : vector<16x128xf32>
    %179 = vector.broadcast %7 : vector<1x128xf32> to vector<16x128xf32>
    %180 = arith.mulf %178, %179 : vector<16x128xf32>
    %181 = arith.mulf %180, %180 : vector<16x128xf32>
    %cst_50 = arith.constant dense<0.000000e+00> : vector<16xf32>
    %182 = vector.multi_reduction <add>, %181, %cst_50 [1] : vector<16x128xf32> to vector<16xf32>
    %183 = vector.shape_cast %182 : vector<16xf32> to vector<16x1xf32>
    %cst_51 = arith.constant 3.125000e-02 : f32
    %184 = vector.broadcast %cst_51 : f32 to vector<16x1xf32>
    %185 = arith.mulf %183, %184 : vector<16x1xf32>
    %cst_52 = arith.constant 9.99999974E-6 : f32
    %186 = vector.broadcast %cst_52 : f32 to vector<16x1xf32>
    %187 = arith.addf %185, %186 : vector<16x1xf32>
    %188 = math.rsqrt %187 : vector<16x1xf32>
    %189 = vector.broadcast %188 : vector<16x1xf32> to vector<16x128xf32>
    %190 = arith.mulf %180, %189 : vector<16x128xf32>
    %191 = vector.broadcast %171 : vector<1x128xf32> to vector<16x128xf32>
    %192 = arith.mulf %190, %191 : vector<16x128xf32>
    %193 = vector.broadcast %172 : vector<1x128xf32> to vector<16x128xf32>
    %194 = arith.addf %192, %193 : vector<16x128xf32>
    %c1 = arith.constant 1 : index
    %c0_53 = arith.constant 0 : index
    %c0_54 = arith.constant 0 : index
    %195 = vector.load %arg5[%c1, %c0_53, %c0_54] : memref<2x16x128xf32, #tpu.memory_space<vmem>>, vector<1x16x128xf32>
    %196 = vector.shape_cast %195 : vector<1x16x128xf32> to vector<16x128xf32>
    %c1_55 = arith.constant 1 : index
    %c0_56 = arith.constant 0 : index
    %c0_57 = arith.constant 0 : index
    %197 = vector.load %arg4[%c1_55, %c0_56, %c0_57] : memref<2x640x128xbf16, #tpu.memory_space<vmem>>, vector<1x128x128xbf16>
    %198 = vector.shape_cast %197 : vector<1x128x128xbf16> to vector<128x128xbf16>
    %199 = arith.truncf %194 : vector<16x128xf32> to vector<16x128xbf16>
    %cst_58 = arith.constant dense<0.000000e+00> : vector<16x128xf32>
    %200 = tpu.matmul %199, %198, %cst_58 {dimension_numbers = #tpu.dot_dimension_numbers<[1], [0], [0], [1], [0, 0, 1, 1], [], []>} : vector<16x128xbf16>, vector<128x128xbf16>, vector<16x128xf32> -> vector<16x128xf32>
    %201 = vector.extract_strided_slice %196 {offsets = [0, 0], sizes = [1, 128], strides = [1, 1]} : vector<16x128xf32> to vector<1x128xf32>
    %202 = vector.broadcast %201 : vector<1x128xf32> to vector<16x128xf32>
    %203 = arith.addf %200, %202 : vector<16x128xf32>
    %204 = vector.extract_strided_slice %203 {offsets = [0, 32], sizes = [16, 32], strides = [1, 1]} : vector<16x128xf32> to vector<16x32xf32>
    %205 = vector.extract_strided_slice %203 {offsets = [0, 64], sizes = [16, 32], strides = [1, 1]} : vector<16x128xf32> to vector<16x32xf32>
    %206 = vector.broadcast %7 : vector<1x128xf32> to vector<16x128xf32>
    %207 = arith.mulf %203, %206 : vector<16x128xf32>
    %208 = vector.extract_strided_slice %204 {offsets = [0, 0], sizes = [8, 32], strides = [1, 1]} : vector<16x32xf32> to vector<8x32xf32>
    %209 = vector.extract_strided_slice %205 {offsets = [0, 0], sizes = [8, 32], strides = [1, 1]} : vector<16x32xf32> to vector<8x32xf32>
    %210 = arith.truncf %208 : vector<8x32xf32> to vector<8x32xbf16>
    %211 = arith.truncf %209 : vector<8x32xf32> to vector<8x32xbf16>
    %cst_59 = arith.constant dense<0.000000e+00> : vector<8x8xf32>
    %212 = tpu.matmul %210, %211, %cst_59 {dimension_numbers = #tpu.dot_dimension_numbers<[1], [1], [0], [0], [0, 0, 1, 0], [], []>} : vector<8x32xbf16>, vector<8x32xbf16>, vector<8x8xf32> -> vector<8x8xf32>
    %cst_60 = arith.constant dense<0xFF800000> : vector<8xf32>
    %213 = vector.multi_reduction <maximumf>, %212, %cst_60 [1] : vector<8x8xf32> to vector<8xf32>
    %214 = vector.shape_cast %213 : vector<8xf32> to vector<8x1xf32>
    %215 = vector.broadcast %214 : vector<8x1xf32> to vector<8x8xf32>
    %216 = arith.subf %212, %215 : vector<8x8xf32>
    %217 = math.exp %216 : vector<8x8xf32>
    %cst_61 = arith.constant dense<0.000000e+00> : vector<8xf32>
    %218 = vector.multi_reduction <add>, %217, %cst_61 [1] : vector<8x8xf32> to vector<8xf32>
    %219 = vector.shape_cast %218 : vector<8xf32> to vector<8x1xf32>
    %220 = vector.broadcast %219 : vector<8x1xf32> to vector<8x8xf32>
    %221 = arith.divf %217, %220 : vector<8x8xf32>
    %222 = vector.extract_strided_slice %207 {offsets = [0, 0], sizes = [8, 128], strides = [1, 1]} : vector<16x128xf32> to vector<8x128xf32>
    %cst_62 = arith.constant dense<0.000000e+00> : vector<8x128xf32>
    %223 = tpu.matmul %221, %222, %cst_62 {dimension_numbers = #tpu.dot_dimension_numbers<[1], [0], [0], [1], [0, 0, 1, 1], [], []>} : vector<8x8xf32>, vector<8x128xf32>, vector<8x128xf32> -> vector<8x128xf32>
    %224 = vector.extract_strided_slice %204 {offsets = [8, 0], sizes = [8, 32], strides = [1, 1]} : vector<16x32xf32> to vector<8x32xf32>
    %225 = vector.extract_strided_slice %205 {offsets = [8, 0], sizes = [8, 32], strides = [1, 1]} : vector<16x32xf32> to vector<8x32xf32>
    %226 = arith.truncf %224 : vector<8x32xf32> to vector<8x32xbf16>
    %227 = arith.truncf %225 : vector<8x32xf32> to vector<8x32xbf16>
    %cst_63 = arith.constant dense<0.000000e+00> : vector<8x8xf32>
    %228 = tpu.matmul %226, %227, %cst_63 {dimension_numbers = #tpu.dot_dimension_numbers<[1], [1], [0], [0], [0, 0, 1, 0], [], []>} : vector<8x32xbf16>, vector<8x32xbf16>, vector<8x8xf32> -> vector<8x8xf32>
    %cst_64 = arith.constant dense<0xFF800000> : vector<8xf32>
    %229 = vector.multi_reduction <maximumf>, %228, %cst_64 [1] : vector<8x8xf32> to vector<8xf32>
    %230 = vector.shape_cast %229 : vector<8xf32> to vector<8x1xf32>
    %231 = vector.broadcast %230 : vector<8x1xf32> to vector<8x8xf32>
    %232 = arith.subf %228, %231 : vector<8x8xf32>
    %233 = math.exp %232 : vector<8x8xf32>
    %cst_65 = arith.constant dense<0.000000e+00> : vector<8xf32>
    %234 = vector.multi_reduction <add>, %233, %cst_65 [1] : vector<8x8xf32> to vector<8xf32>
    %235 = vector.shape_cast %234 : vector<8xf32> to vector<8x1xf32>
    %236 = vector.broadcast %235 : vector<8x1xf32> to vector<8x8xf32>
    %237 = arith.divf %233, %236 : vector<8x8xf32>
    %238 = vector.extract_strided_slice %207 {offsets = [8, 0], sizes = [8, 128], strides = [1, 1]} : vector<16x128xf32> to vector<8x128xf32>
    %cst_66 = arith.constant dense<0.000000e+00> : vector<8x128xf32>
    %239 = tpu.matmul %237, %238, %cst_66 {dimension_numbers = #tpu.dot_dimension_numbers<[1], [0], [0], [1], [0, 0, 1, 1], [], []>} : vector<8x8xf32>, vector<8x128xf32>, vector<8x128xf32> -> vector<8x128xf32>
    %240 = tpu.concatenate %223, %239 in 0 : vector<8x128xf32>, vector<8x128xf32> -> vector<16x128xf32>
    %241 = arith.addf %194, %240 : vector<16x128xf32>
    %242 = vector.extract_strided_slice %196 {offsets = [5, 0], sizes = [1, 128], strides = [1, 1]} : vector<16x128xf32> to vector<1x128xf32>
    %243 = vector.extract_strided_slice %196 {offsets = [6, 0], sizes = [1, 128], strides = [1, 1]} : vector<16x128xf32> to vector<1x128xf32>
    %cst_67 = arith.constant dense<0.000000e+00> : vector<16xf32>
    %244 = vector.multi_reduction <add>, %241, %cst_67 [1] : vector<16x128xf32> to vector<16xf32>
    %245 = vector.shape_cast %244 : vector<16xf32> to vector<16x1xf32>
    %cst_68 = arith.constant 3.125000e-02 : f32
    %246 = vector.broadcast %cst_68 : f32 to vector<16x1xf32>
    %247 = arith.mulf %245, %246 : vector<16x1xf32>
    %248 = vector.broadcast %247 : vector<16x1xf32> to vector<16x128xf32>
    %249 = arith.subf %241, %248 : vector<16x128xf32>
    %250 = vector.broadcast %7 : vector<1x128xf32> to vector<16x128xf32>
    %251 = arith.mulf %249, %250 : vector<16x128xf32>
    %252 = arith.mulf %251, %251 : vector<16x128xf32>
    %cst_69 = arith.constant dense<0.000000e+00> : vector<16xf32>
    %253 = vector.multi_reduction <add>, %252, %cst_69 [1] : vector<16x128xf32> to vector<16xf32>
    %254 = vector.shape_cast %253 : vector<16xf32> to vector<16x1xf32>
    %cst_70 = arith.constant 3.125000e-02 : f32
    %255 = vector.broadcast %cst_70 : f32 to vector<16x1xf32>
    %256 = arith.mulf %254, %255 : vector<16x1xf32>
    %cst_71 = arith.constant 9.99999974E-6 : f32
    %257 = vector.broadcast %cst_71 : f32 to vector<16x1xf32>
    %258 = arith.addf %256, %257 : vector<16x1xf32>
    %259 = math.rsqrt %258 : vector<16x1xf32>
    %260 = vector.broadcast %259 : vector<16x1xf32> to vector<16x128xf32>
    %261 = arith.mulf %251, %260 : vector<16x128xf32>
    %262 = vector.broadcast %242 : vector<1x128xf32> to vector<16x128xf32>
    %263 = arith.mulf %261, %262 : vector<16x128xf32>
    %264 = vector.broadcast %243 : vector<1x128xf32> to vector<16x128xf32>
    %265 = arith.addf %263, %264 : vector<16x128xf32>
    %c1_72 = arith.constant 1 : index
    %c128_73 = arith.constant 128 : index
    %c0_74 = arith.constant 0 : index
    %266 = vector.load %arg4[%c1_72, %c128_73, %c0_74] : memref<2x640x128xbf16, #tpu.memory_space<vmem>>, vector<1x128x128xbf16>
    %267 = vector.shape_cast %266 : vector<1x128x128xbf16> to vector<128x128xbf16>
    %268 = arith.truncf %265 : vector<16x128xf32> to vector<16x128xbf16>
    %cst_75 = arith.constant dense<0.000000e+00> : vector<16x128xf32>
    %269 = tpu.matmul %268, %267, %cst_75 {dimension_numbers = #tpu.dot_dimension_numbers<[1], [0], [0], [1], [0, 0, 1, 1], [], []>} : vector<16x128xbf16>, vector<128x128xbf16>, vector<16x128xf32> -> vector<16x128xf32>
    %270 = vector.extract_strided_slice %196 {offsets = [1, 0], sizes = [1, 128], strides = [1, 1]} : vector<16x128xf32> to vector<1x128xf32>
    %271 = vector.broadcast %270 : vector<1x128xf32> to vector<16x128xf32>
    %272 = arith.addf %269, %271 : vector<16x128xf32>
    %c1_76 = arith.constant 1 : index
    %c256_77 = arith.constant 256 : index
    %c0_78 = arith.constant 0 : index
    %273 = vector.load %arg4[%c1_76, %c256_77, %c0_78] : memref<2x640x128xbf16, #tpu.memory_space<vmem>>, vector<1x128x128xbf16>
    %274 = vector.shape_cast %273 : vector<1x128x128xbf16> to vector<128x128xbf16>
    %cst_79 = arith.constant dense<0.000000e+00> : vector<16x128xf32>
    %275 = tpu.matmul %2, %274, %cst_79 {dimension_numbers = #tpu.dot_dimension_numbers<[1], [0], [0], [1], [0, 0, 1, 1], [], []>} : vector<16x128xbf16>, vector<128x128xbf16>, vector<16x128xf32> -> vector<16x128xf32>
    %276 = vector.extract_strided_slice %196 {offsets = [2, 0], sizes = [1, 128], strides = [1, 1]} : vector<16x128xf32> to vector<1x128xf32>
    %277 = vector.broadcast %276 : vector<1x128xf32> to vector<16x128xf32>
    %278 = arith.addf %275, %277 : vector<16x128xf32>
    %279 = vector.extract_strided_slice %272 {offsets = [0, 0], sizes = [16, 32], strides = [1, 1]} : vector<16x128xf32> to vector<16x32xf32>
    %280 = vector.extract_strided_slice %278 {offsets = [0, 32], sizes = [16, 32], strides = [1, 1]} : vector<16x128xf32> to vector<16x32xf32>
    %281 = vector.broadcast %7 : vector<1x128xf32> to vector<16x128xf32>
    %282 = arith.mulf %278, %281 : vector<16x128xf32>
    %283 = vector.extract_strided_slice %279 {offsets = [0, 0], sizes = [8, 32], strides = [1, 1]} : vector<16x32xf32> to vector<8x32xf32>
    %284 = vector.extract_strided_slice %280 {offsets = [0, 0], sizes = [8, 32], strides = [1, 1]} : vector<16x32xf32> to vector<8x32xf32>
    %285 = arith.truncf %283 : vector<8x32xf32> to vector<8x32xbf16>
    %286 = arith.truncf %284 : vector<8x32xf32> to vector<8x32xbf16>
    %cst_80 = arith.constant dense<0.000000e+00> : vector<8x8xf32>
    %287 = tpu.matmul %285, %286, %cst_80 {dimension_numbers = #tpu.dot_dimension_numbers<[1], [1], [0], [0], [0, 0, 1, 0], [], []>} : vector<8x32xbf16>, vector<8x32xbf16>, vector<8x8xf32> -> vector<8x8xf32>
    %cst_81 = arith.constant dense<0xFF800000> : vector<8xf32>
    %288 = vector.multi_reduction <maximumf>, %287, %cst_81 [1] : vector<8x8xf32> to vector<8xf32>
    %289 = vector.shape_cast %288 : vector<8xf32> to vector<8x1xf32>
    %290 = vector.broadcast %289 : vector<8x1xf32> to vector<8x8xf32>
    %291 = arith.subf %287, %290 : vector<8x8xf32>
    %292 = math.exp %291 : vector<8x8xf32>
    %cst_82 = arith.constant dense<0.000000e+00> : vector<8xf32>
    %293 = vector.multi_reduction <add>, %292, %cst_82 [1] : vector<8x8xf32> to vector<8xf32>
    %294 = vector.shape_cast %293 : vector<8xf32> to vector<8x1xf32>
    %295 = vector.broadcast %294 : vector<8x1xf32> to vector<8x8xf32>
    %296 = arith.divf %292, %295 : vector<8x8xf32>
    %297 = vector.extract_strided_slice %282 {offsets = [0, 0], sizes = [8, 128], strides = [1, 1]} : vector<16x128xf32> to vector<8x128xf32>
    %cst_83 = arith.constant dense<0.000000e+00> : vector<8x128xf32>
    %298 = tpu.matmul %296, %297, %cst_83 {dimension_numbers = #tpu.dot_dimension_numbers<[1], [0], [0], [1], [0, 0, 1, 1], [], []>} : vector<8x8xf32>, vector<8x128xf32>, vector<8x128xf32> -> vector<8x128xf32>
    %299 = vector.extract_strided_slice %279 {offsets = [8, 0], sizes = [8, 32], strides = [1, 1]} : vector<16x32xf32> to vector<8x32xf32>
    %300 = vector.extract_strided_slice %280 {offsets = [8, 0], sizes = [8, 32], strides = [1, 1]} : vector<16x32xf32> to vector<8x32xf32>
    %301 = arith.truncf %299 : vector<8x32xf32> to vector<8x32xbf16>
    %302 = arith.truncf %300 : vector<8x32xf32> to vector<8x32xbf16>
    %cst_84 = arith.constant dense<0.000000e+00> : vector<8x8xf32>
    %303 = tpu.matmul %301, %302, %cst_84 {dimension_numbers = #tpu.dot_dimension_numbers<[1], [1], [0], [0], [0, 0, 1, 0], [], []>} : vector<8x32xbf16>, vector<8x32xbf16>, vector<8x8xf32> -> vector<8x8xf32>
    %cst_85 = arith.constant dense<0xFF800000> : vector<8xf32>
    %304 = vector.multi_reduction <maximumf>, %303, %cst_85 [1] : vector<8x8xf32> to vector<8xf32>
    %305 = vector.shape_cast %304 : vector<8xf32> to vector<8x1xf32>
    %306 = vector.broadcast %305 : vector<8x1xf32> to vector<8x8xf32>
    %307 = arith.subf %303, %306 : vector<8x8xf32>
    %308 = math.exp %307 : vector<8x8xf32>
    %cst_86 = arith.constant dense<0.000000e+00> : vector<8xf32>
    %309 = vector.multi_reduction <add>, %308, %cst_86 [1] : vector<8x8xf32> to vector<8xf32>
    %310 = vector.shape_cast %309 : vector<8xf32> to vector<8x1xf32>
    %311 = vector.broadcast %310 : vector<8x1xf32> to vector<8x8xf32>
    %312 = arith.divf %308, %311 : vector<8x8xf32>
    %313 = vector.extract_strided_slice %282 {offsets = [8, 0], sizes = [8, 128], strides = [1, 1]} : vector<16x128xf32> to vector<8x128xf32>
    %cst_87 = arith.constant dense<0.000000e+00> : vector<8x128xf32>
    %314 = tpu.matmul %312, %313, %cst_87 {dimension_numbers = #tpu.dot_dimension_numbers<[1], [0], [0], [1], [0, 0, 1, 1], [], []>} : vector<8x8xf32>, vector<8x128xf32>, vector<8x128xf32> -> vector<8x128xf32>
    %315 = tpu.concatenate %298, %314 in 0 : vector<8x128xf32>, vector<8x128xf32> -> vector<16x128xf32>
    %316 = arith.addf %265, %315 : vector<16x128xf32>
    %317 = vector.extract_strided_slice %196 {offsets = [7, 0], sizes = [1, 128], strides = [1, 1]} : vector<16x128xf32> to vector<1x128xf32>
    %318 = vector.extract_strided_slice %196 {offsets = [8, 0], sizes = [1, 128], strides = [1, 1]} : vector<16x128xf32> to vector<1x128xf32>
    %cst_88 = arith.constant dense<0.000000e+00> : vector<16xf32>
    %319 = vector.multi_reduction <add>, %316, %cst_88 [1] : vector<16x128xf32> to vector<16xf32>
    %320 = vector.shape_cast %319 : vector<16xf32> to vector<16x1xf32>
    %cst_89 = arith.constant 3.125000e-02 : f32
    %321 = vector.broadcast %cst_89 : f32 to vector<16x1xf32>
    %322 = arith.mulf %320, %321 : vector<16x1xf32>
    %323 = vector.broadcast %322 : vector<16x1xf32> to vector<16x128xf32>
    %324 = arith.subf %316, %323 : vector<16x128xf32>
    %325 = vector.broadcast %7 : vector<1x128xf32> to vector<16x128xf32>
    %326 = arith.mulf %324, %325 : vector<16x128xf32>
    %327 = arith.mulf %326, %326 : vector<16x128xf32>
    %cst_90 = arith.constant dense<0.000000e+00> : vector<16xf32>
    %328 = vector.multi_reduction <add>, %327, %cst_90 [1] : vector<16x128xf32> to vector<16xf32>
    %329 = vector.shape_cast %328 : vector<16xf32> to vector<16x1xf32>
    %cst_91 = arith.constant 3.125000e-02 : f32
    %330 = vector.broadcast %cst_91 : f32 to vector<16x1xf32>
    %331 = arith.mulf %329, %330 : vector<16x1xf32>
    %cst_92 = arith.constant 9.99999974E-6 : f32
    %332 = vector.broadcast %cst_92 : f32 to vector<16x1xf32>
    %333 = arith.addf %331, %332 : vector<16x1xf32>
    %334 = math.rsqrt %333 : vector<16x1xf32>
    %335 = vector.broadcast %334 : vector<16x1xf32> to vector<16x128xf32>
    %336 = arith.mulf %326, %335 : vector<16x128xf32>
    %337 = vector.broadcast %317 : vector<1x128xf32> to vector<16x128xf32>
    %338 = arith.mulf %336, %337 : vector<16x128xf32>
    %339 = vector.broadcast %318 : vector<1x128xf32> to vector<16x128xf32>
    %340 = arith.addf %338, %339 : vector<16x128xf32>
    %c1_93 = arith.constant 1 : index
    %c384_94 = arith.constant 384 : index
    %c0_95 = arith.constant 0 : index
    %341 = vector.load %arg4[%c1_93, %c384_94, %c0_95] : memref<2x640x128xbf16, #tpu.memory_space<vmem>>, vector<1x128x128xbf16>
    %342 = vector.shape_cast %341 : vector<1x128x128xbf16> to vector<128x128xbf16>
    %343 = arith.truncf %340 : vector<16x128xf32> to vector<16x128xbf16>
    %cst_96 = arith.constant dense<0.000000e+00> : vector<16x128xf32>
    %344 = tpu.matmul %343, %342, %cst_96 {dimension_numbers = #tpu.dot_dimension_numbers<[1], [0], [0], [1], [0, 0, 1, 1], [], []>} : vector<16x128xbf16>, vector<128x128xbf16>, vector<16x128xf32> -> vector<16x128xf32>
    %345 = vector.extract_strided_slice %196 {offsets = [3, 0], sizes = [1, 128], strides = [1, 1]} : vector<16x128xf32> to vector<1x128xf32>
    %346 = vector.broadcast %345 : vector<1x128xf32> to vector<16x128xf32>
    %347 = arith.addf %344, %346 : vector<16x128xf32>
    %cst_97 = arith.constant 0.000000e+00 : f32
    %348 = vector.broadcast %cst_97 : f32 to vector<16x128xf32>
    %349 = arith.maximumf %347, %348 : vector<16x128xf32>
    %c1_98 = arith.constant 1 : index
    %c512_99 = arith.constant 512 : index
    %c0_100 = arith.constant 0 : index
    %350 = vector.load %arg4[%c1_98, %c512_99, %c0_100] : memref<2x640x128xbf16, #tpu.memory_space<vmem>>, vector<1x128x128xbf16>
    %351 = vector.shape_cast %350 : vector<1x128x128xbf16> to vector<128x128xbf16>
    %352 = arith.truncf %349 : vector<16x128xf32> to vector<16x128xbf16>
    %cst_101 = arith.constant dense<0.000000e+00> : vector<16x128xf32>
    %353 = tpu.matmul %352, %351, %cst_101 {dimension_numbers = #tpu.dot_dimension_numbers<[1], [0], [0], [1], [0, 0, 1, 1], [], []>} : vector<16x128xbf16>, vector<128x128xbf16>, vector<16x128xf32> -> vector<16x128xf32>
    %354 = vector.extract_strided_slice %196 {offsets = [4, 0], sizes = [1, 128], strides = [1, 1]} : vector<16x128xf32> to vector<1x128xf32>
    %355 = vector.broadcast %354 : vector<1x128xf32> to vector<16x128xf32>
    %356 = arith.addf %353, %355 : vector<16x128xf32>
    %357 = arith.addf %340, %356 : vector<16x128xf32>
    %358 = vector.extract_strided_slice %196 {offsets = [9, 0], sizes = [1, 128], strides = [1, 1]} : vector<16x128xf32> to vector<1x128xf32>
    %359 = vector.extract_strided_slice %196 {offsets = [10, 0], sizes = [1, 128], strides = [1, 1]} : vector<16x128xf32> to vector<1x128xf32>
    %cst_102 = arith.constant dense<0.000000e+00> : vector<16xf32>
    %360 = vector.multi_reduction <add>, %357, %cst_102 [1] : vector<16x128xf32> to vector<16xf32>
    %361 = vector.shape_cast %360 : vector<16xf32> to vector<16x1xf32>
    %cst_103 = arith.constant 3.125000e-02 : f32
    %362 = vector.broadcast %cst_103 : f32 to vector<16x1xf32>
    %363 = arith.mulf %361, %362 : vector<16x1xf32>
    %364 = vector.broadcast %363 : vector<16x1xf32> to vector<16x128xf32>
    %365 = arith.subf %357, %364 : vector<16x128xf32>
    %366 = vector.broadcast %7 : vector<1x128xf32> to vector<16x128xf32>
    %367 = arith.mulf %365, %366 : vector<16x128xf32>
    %368 = arith.mulf %367, %367 : vector<16x128xf32>
    %cst_104 = arith.constant dense<0.000000e+00> : vector<16xf32>
    %369 = vector.multi_reduction <add>, %368, %cst_104 [1] : vector<16x128xf32> to vector<16xf32>
    %370 = vector.shape_cast %369 : vector<16xf32> to vector<16x1xf32>
    %cst_105 = arith.constant 3.125000e-02 : f32
    %371 = vector.broadcast %cst_105 : f32 to vector<16x1xf32>
    %372 = arith.mulf %370, %371 : vector<16x1xf32>
    %cst_106 = arith.constant 9.99999974E-6 : f32
    %373 = vector.broadcast %cst_106 : f32 to vector<16x1xf32>
    %374 = arith.addf %372, %373 : vector<16x1xf32>
    %375 = math.rsqrt %374 : vector<16x1xf32>
    %376 = vector.broadcast %375 : vector<16x1xf32> to vector<16x128xf32>
    %377 = arith.mulf %367, %376 : vector<16x128xf32>
    %378 = vector.broadcast %358 : vector<1x128xf32> to vector<16x128xf32>
    %379 = arith.mulf %377, %378 : vector<16x128xf32>
    %380 = vector.broadcast %359 : vector<1x128xf32> to vector<16x128xf32>
    %381 = arith.addf %379, %380 : vector<16x128xf32>
    %c0_107 = arith.constant 0 : index
    %c0_108 = arith.constant 0 : index
    %382 = vector.load %arg7[%c0_107, %c0_108] : memref<16x128xf32, #tpu.memory_space<vmem>>, vector<16x128xf32>
    %c0_109 = arith.constant 0 : index
    %c0_110 = arith.constant 0 : index
    %383 = vector.load %arg6[%c0_109, %c0_110] : memref<1152x128xbf16, #tpu.memory_space<vmem>>, vector<128x128xbf16>
    %384 = arith.truncf %381 : vector<16x128xf32> to vector<16x128xbf16>
    %cst_111 = arith.constant dense<0.000000e+00> : vector<16x128xf32>
    %385 = tpu.matmul %384, %383, %cst_111 {dimension_numbers = #tpu.dot_dimension_numbers<[1], [0], [0], [1], [0, 0, 1, 1], [], []>} : vector<16x128xbf16>, vector<128x128xbf16>, vector<16x128xf32> -> vector<16x128xf32>
    %386 = vector.extract_strided_slice %382 {offsets = [0, 0], sizes = [1, 128], strides = [1, 1]} : vector<16x128xf32> to vector<1x128xf32>
    %387 = vector.broadcast %386 : vector<1x128xf32> to vector<16x128xf32>
    %388 = arith.addf %385, %387 : vector<16x128xf32>
    %cst_112 = arith.constant 0.000000e+00 : f32
    %389 = vector.broadcast %cst_112 : f32 to vector<16x128xf32>
    %390 = arith.cmpf oge, %388, %389 : vector<16x128xf32>
    %cst_113 = arith.constant 2.500000e-01 : f32
    %391 = vector.broadcast %cst_113 : f32 to vector<16x128xf32>
    %392 = arith.mulf %391, %388 : vector<16x128xf32>
    %393 = arith.select %390, %388, %392 : vector<16x128xi1>, vector<16x128xf32>
    %c128_114 = arith.constant 128 : index
    %c0_115 = arith.constant 0 : index
    %394 = vector.load %arg6[%c128_114, %c0_115] : memref<1152x128xbf16, #tpu.memory_space<vmem>>, vector<128x128xbf16>
    %395 = arith.truncf %393 : vector<16x128xf32> to vector<16x128xbf16>
    %cst_116 = arith.constant dense<0.000000e+00> : vector<16x128xf32>
    %396 = tpu.matmul %395, %394, %cst_116 {dimension_numbers = #tpu.dot_dimension_numbers<[1], [0], [0], [1], [0, 0, 1, 1], [], []>} : vector<16x128xbf16>, vector<128x128xbf16>, vector<16x128xf32> -> vector<16x128xf32>
    %397 = vector.extract_strided_slice %382 {offsets = [1, 0], sizes = [1, 128], strides = [1, 1]} : vector<16x128xf32> to vector<1x128xf32>
    %398 = vector.broadcast %397 : vector<1x128xf32> to vector<16x128xf32>
    %399 = arith.addf %396, %398 : vector<16x128xf32>
    %cst_117 = arith.constant 0.000000e+00 : f32
    %400 = vector.broadcast %cst_117 : f32 to vector<16x128xf32>
    %401 = arith.cmpf oge, %399, %400 : vector<16x128xf32>
    %cst_118 = arith.constant 2.500000e-01 : f32
    %402 = vector.broadcast %cst_118 : f32 to vector<16x128xf32>
    %403 = arith.mulf %402, %399 : vector<16x128xf32>
    %404 = arith.select %401, %399, %403 : vector<16x128xi1>, vector<16x128xf32>
    %405 = vector.extract_strided_slice %404 {offsets = [0, 0], sizes = [8, 128], strides = [1, 1]} : vector<16x128xf32> to vector<8x128xf32>
    %cst_119 = arith.constant dense<0xFF800000> : vector<128xf32>
    %406 = vector.multi_reduction <maximumf>, %405, %cst_119 [0] : vector<8x128xf32> to vector<128xf32>
    %407 = vector.shape_cast %406 : vector<128xf32> to vector<1x128xf32>
    %408 = vector.extract_strided_slice %404 {offsets = [8, 0], sizes = [8, 128], strides = [1, 1]} : vector<16x128xf32> to vector<8x128xf32>
    %cst_120 = arith.constant dense<0xFF800000> : vector<128xf32>
    %409 = vector.multi_reduction <maximumf>, %408, %cst_120 [0] : vector<8x128xf32> to vector<128xf32>
    %410 = vector.shape_cast %409 : vector<128xf32> to vector<1x128xf32>
    %411 = tpu.concatenate %407, %410 in 0 : vector<1x128xf32>, vector<1x128xf32> -> vector<2x128xf32>
    %c256_121 = arith.constant 256 : index
    %c0_122 = arith.constant 0 : index
    %412 = vector.load %arg6[%c256_121, %c0_122] : memref<1152x128xbf16, #tpu.memory_space<vmem>>, vector<128x128xbf16>
    %413 = arith.truncf %411 : vector<2x128xf32> to vector<2x128xbf16>
    %cst_123 = arith.constant dense<0.000000e+00> : vector<2x128xf32>
    %414 = tpu.matmul %413, %412, %cst_123 {dimension_numbers = #tpu.dot_dimension_numbers<[1], [0], [0], [1], [0, 0, 1, 1], [], []>} : vector<2x128xbf16>, vector<128x128xbf16>, vector<2x128xf32> -> vector<2x128xf32>
    %415 = vector.extract_strided_slice %382 {offsets = [2, 0], sizes = [1, 128], strides = [1, 1]} : vector<16x128xf32> to vector<1x128xf32>
    %416 = vector.broadcast %415 : vector<1x128xf32> to vector<2x128xf32>
    %417 = arith.addf %414, %416 : vector<2x128xf32>
    %cst_124 = arith.constant 0.000000e+00 : f32
    %418 = vector.broadcast %cst_124 : f32 to vector<2x128xf32>
    %419 = arith.cmpf oge, %417, %418 : vector<2x128xf32>
    %cst_125 = arith.constant 2.500000e-01 : f32
    %420 = vector.broadcast %cst_125 : f32 to vector<2x128xf32>
    %421 = arith.mulf %420, %417 : vector<2x128xf32>
    %422 = arith.select %419, %417, %421 : vector<2x128xi1>, vector<2x128xf32>
    %c384_126 = arith.constant 384 : index
    %c0_127 = arith.constant 0 : index
    %423 = vector.load %arg6[%c384_126, %c0_127] : memref<1152x128xbf16, #tpu.memory_space<vmem>>, vector<128x128xbf16>
    %424 = arith.truncf %422 : vector<2x128xf32> to vector<2x128xbf16>
    %cst_128 = arith.constant dense<0.000000e+00> : vector<2x128xf32>
    %425 = tpu.matmul %424, %423, %cst_128 {dimension_numbers = #tpu.dot_dimension_numbers<[1], [0], [0], [1], [0, 0, 1, 1], [], []>} : vector<2x128xbf16>, vector<128x128xbf16>, vector<2x128xf32> -> vector<2x128xf32>
    %426 = vector.extract_strided_slice %382 {offsets = [3, 0], sizes = [1, 128], strides = [1, 1]} : vector<16x128xf32> to vector<1x128xf32>
    %427 = vector.broadcast %426 : vector<1x128xf32> to vector<2x128xf32>
    %428 = arith.addf %425, %427 : vector<2x128xf32>
    %429 = arith.negf %428 : vector<2x128xf32>
    %430 = math.exp %429 : vector<2x128xf32>
    %cst_129 = arith.constant 1.000000e+00 : f32
    %431 = vector.broadcast %cst_129 : f32 to vector<2x128xf32>
    %432 = arith.addf %431, %430 : vector<2x128xf32>
    %433 = arith.divf %431, %432 : vector<2x128xf32>
    %cst_130 = arith.constant 8.000000e+00 : f32
    %434 = vector.broadcast %cst_130 : f32 to vector<2x128xf32>
    %435 = arith.mulf %433, %434 : vector<2x128xf32>
    %c512_131 = arith.constant 512 : index
    %c0_132 = arith.constant 0 : index
    %436 = vector.load %arg6[%c512_131, %c0_132] : memref<1152x128xbf16, #tpu.memory_space<vmem>>, vector<128x128xbf16>
    %cst_133 = arith.constant dense<0.000000e+00> : vector<16x128xf32>
    %437 = tpu.matmul %2, %436, %cst_133 {dimension_numbers = #tpu.dot_dimension_numbers<[1], [0], [0], [1], [0, 0, 1, 1], [], []>} : vector<16x128xbf16>, vector<128x128xbf16>, vector<16x128xf32> -> vector<16x128xf32>
    %438 = vector.extract_strided_slice %382 {offsets = [4, 0], sizes = [1, 128], strides = [1, 1]} : vector<16x128xf32> to vector<1x128xf32>
    %439 = vector.broadcast %438 : vector<1x128xf32> to vector<16x128xf32>
    %440 = arith.addf %437, %439 : vector<16x128xf32>
    %cst_134 = arith.constant 0.000000e+00 : f32
    %441 = vector.broadcast %cst_134 : f32 to vector<16x128xf32>
    %442 = arith.cmpf oge, %440, %441 : vector<16x128xf32>
    %cst_135 = arith.constant 2.500000e-01 : f32
    %443 = vector.broadcast %cst_135 : f32 to vector<16x128xf32>
    %444 = arith.mulf %443, %440 : vector<16x128xf32>
    %445 = arith.select %442, %440, %444 : vector<16x128xi1>, vector<16x128xf32>
    %c640 = arith.constant 640 : index
    %c0_136 = arith.constant 0 : index
    %446 = vector.load %arg6[%c640, %c0_136] : memref<1152x128xbf16, #tpu.memory_space<vmem>>, vector<128x128xbf16>
    %447 = arith.truncf %445 : vector<16x128xf32> to vector<16x128xbf16>
    %cst_137 = arith.constant dense<0.000000e+00> : vector<16x128xf32>
    %448 = tpu.matmul %447, %446, %cst_137 {dimension_numbers = #tpu.dot_dimension_numbers<[1], [0], [0], [1], [0, 0, 1, 1], [], []>} : vector<16x128xbf16>, vector<128x128xbf16>, vector<16x128xf32> -> vector<16x128xf32>
    %449 = vector.extract_strided_slice %382 {offsets = [5, 0], sizes = [1, 128], strides = [1, 1]} : vector<16x128xf32> to vector<1x128xf32>
    %450 = vector.broadcast %449 : vector<1x128xf32> to vector<16x128xf32>
    %451 = arith.addf %448, %450 : vector<16x128xf32>
    %cst_138 = arith.constant 0.000000e+00 : f32
    %452 = vector.broadcast %cst_138 : f32 to vector<16x128xf32>
    %453 = arith.cmpf oge, %451, %452 : vector<16x128xf32>
    %cst_139 = arith.constant 2.500000e-01 : f32
    %454 = vector.broadcast %cst_139 : f32 to vector<16x128xf32>
    %455 = arith.mulf %454, %451 : vector<16x128xf32>
    %456 = arith.select %453, %451, %455 : vector<16x128xi1>, vector<16x128xf32>
    %c768 = arith.constant 768 : index
    %c0_140 = arith.constant 0 : index
    %457 = vector.load %arg6[%c768, %c0_140] : memref<1152x128xbf16, #tpu.memory_space<vmem>>, vector<128x128xbf16>
    %458 = arith.truncf %456 : vector<16x128xf32> to vector<16x128xbf16>
    %cst_141 = arith.constant dense<0.000000e+00> : vector<16x128xf32>
    %459 = tpu.matmul %458, %457, %cst_141 {dimension_numbers = #tpu.dot_dimension_numbers<[1], [0], [0], [1], [0, 0, 1, 1], [], []>} : vector<16x128xbf16>, vector<128x128xbf16>, vector<16x128xf32> -> vector<16x128xf32>
    %460 = vector.extract_strided_slice %382 {offsets = [6, 0], sizes = [1, 128], strides = [1, 1]} : vector<16x128xf32> to vector<1x128xf32>
    %461 = vector.broadcast %460 : vector<1x128xf32> to vector<16x128xf32>
    %462 = arith.addf %459, %461 : vector<16x128xf32>
    %cst_142 = arith.constant 0.000000e+00 : f32
    %463 = vector.broadcast %cst_142 : f32 to vector<16x128xf32>
    %464 = arith.cmpf oge, %462, %463 : vector<16x128xf32>
    %cst_143 = arith.constant 2.500000e-01 : f32
    %465 = vector.broadcast %cst_143 : f32 to vector<16x128xf32>
    %466 = arith.mulf %465, %462 : vector<16x128xf32>
    %467 = arith.select %464, %462, %466 : vector<16x128xi1>, vector<16x128xf32>
    %c896 = arith.constant 896 : index
    %c0_144 = arith.constant 0 : index
    %468 = vector.load %arg6[%c896, %c0_144] : memref<1152x128xbf16, #tpu.memory_space<vmem>>, vector<128x128xbf16>
    %469 = arith.truncf %467 : vector<16x128xf32> to vector<16x128xbf16>
    %cst_145 = arith.constant dense<0.000000e+00> : vector<16x128xf32>
    %470 = tpu.matmul %469, %468, %cst_145 {dimension_numbers = #tpu.dot_dimension_numbers<[1], [0], [0], [1], [0, 0, 1, 1], [], []>} : vector<16x128xbf16>, vector<128x128xbf16>, vector<16x128xf32> -> vector<16x128xf32>
    %471 = vector.extract_strided_slice %382 {offsets = [7, 0], sizes = [1, 128], strides = [1, 1]} : vector<16x128xf32> to vector<1x128xf32>
    %472 = vector.broadcast %471 : vector<1x128xf32> to vector<16x128xf32>
    %473 = arith.addf %470, %472 : vector<16x128xf32>
    %cst_146 = arith.constant 0.000000e+00 : f32
    %474 = vector.broadcast %cst_146 : f32 to vector<16x128xf32>
    %475 = arith.cmpf oge, %473, %474 : vector<16x128xf32>
    %cst_147 = arith.constant 2.500000e-01 : f32
    %476 = vector.broadcast %cst_147 : f32 to vector<16x128xf32>
    %477 = arith.mulf %476, %473 : vector<16x128xf32>
    %478 = arith.select %475, %473, %477 : vector<16x128xi1>, vector<16x128xf32>
    %c1024 = arith.constant 1024 : index
    %c0_148 = arith.constant 0 : index
    %479 = vector.load %arg6[%c1024, %c0_148] : memref<1152x128xbf16, #tpu.memory_space<vmem>>, vector<128x128xbf16>
    %480 = arith.truncf %478 : vector<16x128xf32> to vector<16x128xbf16>
    %cst_149 = arith.constant dense<0.000000e+00> : vector<16x128xf32>
    %481 = tpu.matmul %480, %479, %cst_149 {dimension_numbers = #tpu.dot_dimension_numbers<[1], [0], [0], [1], [0, 0, 1, 1], [], []>} : vector<16x128xbf16>, vector<128x128xbf16>, vector<16x128xf32> -> vector<16x128xf32>
    %482 = vector.extract_strided_slice %382 {offsets = [8, 0], sizes = [1, 128], strides = [1, 1]} : vector<16x128xf32> to vector<1x128xf32>
    %483 = vector.broadcast %482 : vector<1x128xf32> to vector<16x128xf32>
    %484 = arith.addf %481, %483 : vector<16x128xf32>
    %485 = arith.negf %484 : vector<16x128xf32>
    %486 = math.exp %485 : vector<16x128xf32>
    %cst_150 = arith.constant 1.000000e+00 : f32
    %487 = vector.broadcast %cst_150 : f32 to vector<16x128xf32>
    %488 = arith.addf %487, %486 : vector<16x128xf32>
    %489 = arith.divf %487, %488 : vector<16x128xf32>
    %490 = vector.extract_strided_slice %489 {offsets = [0, 0], sizes = [16, 1], strides = [1, 1]} : vector<16x128xf32> to vector<16x1xf32>
    %cst_151 = arith.constant 5.000000e-01 : f32
    %491 = vector.broadcast %cst_151 : f32 to vector<16x1xf32>
    %492 = arith.cmpf ogt, %490, %491 : vector<16x1xf32>
    %493 = arith.extui %492 : vector<16x1xi1> to vector<16x1xi32>
    %494 = arith.sitofp %493 : vector<16x1xi32> to vector<16x1xf32>
    %c0_152 = arith.constant 0 : index
    %c0_153 = arith.constant 0 : index
    %495 = vector.load %arg3[%c0_152, %c0_153] : memref<16x8xf32, #tpu.memory_space<vmem>>, vector<16x8xf32>
    %496 = vector.extract_strided_slice %435 {offsets = [0, 0], sizes = [1, 1], strides = [1, 1]} : vector<2x128xf32> to vector<1x1xf32>
    %497 = vector.extract_strided_slice %495 {offsets = [0, 0], sizes = [8, 8], strides = [1, 1]} : vector<16x8xf32> to vector<8x8xf32>
    %cst_154 = arith.constant 0.000000e+00 : f32
    %498 = vector.broadcast %cst_154 : f32 to vector<8x8xf32>
    %499 = arith.subf %498, %497 : vector<8x8xf32>
    %cst_155 = arith.constant 9.99999971E-10 : f32
    %500 = vector.broadcast %cst_155 : f32 to vector<1x1xf32>
    %501 = arith.addf %496, %500 : vector<1x1xf32>
    %502 = vector.broadcast %501 : vector<1x1xf32> to vector<8x8xf32>
    %503 = arith.divf %499, %502 : vector<8x8xf32>
    %504 = math.exp %503 : vector<8x8xf32>
    %505 = vector.extract_strided_slice %494 {offsets = [0, 0], sizes = [8, 1], strides = [1, 1]} : vector<16x1xf32> to vector<8x1xf32>
    %506 = tpu.transpose %505, [1, 0] : vector<8x1xf32> -> vector<1x8xf32>
    %507 = vector.broadcast %506 : vector<1x8xf32> to vector<8x8xf32>
    %508 = arith.mulf %504, %507 : vector<8x8xf32>
    %cst_156 = arith.constant dense<0.000000e+00> : vector<8xf32>
    %509 = vector.multi_reduction <add>, %508, %cst_156 [1] : vector<8x8xf32> to vector<8xf32>
    %510 = vector.shape_cast %509 : vector<8xf32> to vector<8x1xf32>
    %cst_157 = arith.constant 9.99999971E-10 : f32
    %511 = vector.broadcast %cst_157 : f32 to vector<8x1xf32>
    %512 = arith.addf %510, %511 : vector<8x1xf32>
    %513 = vector.broadcast %512 : vector<8x1xf32> to vector<8x8xf32>
    %514 = arith.divf %508, %513 : vector<8x8xf32>
    %515 = vector.extract_strided_slice %0 {offsets = [0, 0], sizes = [8, 16], strides = [1, 1]} : vector<16x128xf32> to vector<8x16xf32>
    %cst_158 = arith.constant dense<0.000000e+00> : vector<8x16xf32>
    %516 = tpu.matmul %514, %515, %cst_158 {dimension_numbers = #tpu.dot_dimension_numbers<[1], [0], [0], [1], [0, 0, 1, 1], [], []>} : vector<8x8xf32>, vector<8x16xf32>, vector<8x16xf32> -> vector<8x16xf32>
    %517 = vector.extract_strided_slice %435 {offsets = [1, 0], sizes = [1, 1], strides = [1, 1]} : vector<2x128xf32> to vector<1x1xf32>
    %518 = vector.extract_strided_slice %495 {offsets = [8, 0], sizes = [8, 8], strides = [1, 1]} : vector<16x8xf32> to vector<8x8xf32>
    %cst_159 = arith.constant 0.000000e+00 : f32
    %519 = vector.broadcast %cst_159 : f32 to vector<8x8xf32>
    %520 = arith.subf %519, %518 : vector<8x8xf32>
    %cst_160 = arith.constant 9.99999971E-10 : f32
    %521 = vector.broadcast %cst_160 : f32 to vector<1x1xf32>
    %522 = arith.addf %517, %521 : vector<1x1xf32>
    %523 = vector.broadcast %522 : vector<1x1xf32> to vector<8x8xf32>
    %524 = arith.divf %520, %523 : vector<8x8xf32>
    %525 = math.exp %524 : vector<8x8xf32>
    %526 = vector.extract_strided_slice %494 {offsets = [8, 0], sizes = [8, 1], strides = [1, 1]} : vector<16x1xf32> to vector<8x1xf32>
    %527 = tpu.transpose %526, [1, 0] : vector<8x1xf32> -> vector<1x8xf32>
    %528 = vector.broadcast %527 : vector<1x8xf32> to vector<8x8xf32>
    %529 = arith.mulf %525, %528 : vector<8x8xf32>
    %cst_161 = arith.constant dense<0.000000e+00> : vector<8xf32>
    %530 = vector.multi_reduction <add>, %529, %cst_161 [1] : vector<8x8xf32> to vector<8xf32>
    %531 = vector.shape_cast %530 : vector<8xf32> to vector<8x1xf32>
    %cst_162 = arith.constant 9.99999971E-10 : f32
    %532 = vector.broadcast %cst_162 : f32 to vector<8x1xf32>
    %533 = arith.addf %531, %532 : vector<8x1xf32>
    %534 = vector.broadcast %533 : vector<8x1xf32> to vector<8x8xf32>
    %535 = arith.divf %529, %534 : vector<8x8xf32>
    %536 = vector.extract_strided_slice %0 {offsets = [8, 0], sizes = [8, 16], strides = [1, 1]} : vector<16x128xf32> to vector<8x16xf32>
    %cst_163 = arith.constant dense<0.000000e+00> : vector<8x16xf32>
    %537 = tpu.matmul %535, %536, %cst_163 {dimension_numbers = #tpu.dot_dimension_numbers<[1], [0], [0], [1], [0, 0, 1, 1], [], []>} : vector<8x8xf32>, vector<8x16xf32>, vector<8x16xf32> -> vector<8x16xf32>
    %538 = tpu.concatenate %516, %537 in 0 : vector<8x16xf32>, vector<8x16xf32> -> vector<16x16xf32>
    %cst_164 = arith.constant 0.000000e+00 : f32
    %539 = vector.broadcast %cst_164 : f32 to vector<16x110xf32>
    %540 = tpu.concatenate %538, %490, %494, %539 in 1 : vector<16x16xf32>, vector<16x1xf32>, vector<16x1xf32>, vector<16x110xf32> -> vector<16x128xf32>
    %c0_165 = arith.constant 0 : index
    %c0_166 = arith.constant 0 : index
    %541 = vector.load %arg8[%c0_165, %c0_166] : memref<16x128xf32, #tpu.memory_space<vmem>>, vector<16x128xf32>
    tpu.vector_store %arg8[%c0_165, %c0_166], %540 {strides = array<i32>} : memref<16x128xf32, #tpu.memory_space<vmem>>, vector<16x128xf32>,
    return
  }
  func.func @transform_0(%arg0: i32) -> (i32, i32) {
    %c0_i32 = arith.constant 0 : i32
    %c0_i32_0 = arith.constant 0 : i32
    %c0_i32_1 = arith.constant 0 : i32
    return %c0_i32, %c0_i32_0 : i32, i32
  }
  func.func @transform_1(%arg0: i32) -> (i32, i32) {
    %c0_i32 = arith.constant 0 : i32
    %c0_i32_0 = arith.constant 0 : i32
    %c0_i32_1 = arith.constant 0 : i32
    return %c0_i32, %c0_i32_0 : i32, i32
  }
  func.func @transform_2(%arg0: i32) -> (i32, i32) {
    %c0_i32 = arith.constant 0 : i32
    %c0_i32_0 = arith.constant 0 : i32
    %c0_i32_1 = arith.constant 0 : i32
    return %c0_i32, %c0_i32_0 : i32, i32
  }
  func.func @transform_3(%arg0: i32) -> (i32, i32, i32) {
    %c0_i32 = arith.constant 0 : i32
    %c0_i32_0 = arith.constant 0 : i32
    %c0_i32_1 = arith.constant 0 : i32
    %c0_i32_2 = arith.constant 0 : i32
    return %c0_i32, %c0_i32_0, %c0_i32_1 : i32, i32, i32
  }
  func.func @transform_4(%arg0: i32) -> (i32, i32, i32) {
    %c0_i32 = arith.constant 0 : i32
    %c0_i32_0 = arith.constant 0 : i32
    %c0_i32_1 = arith.constant 0 : i32
    %c0_i32_2 = arith.constant 0 : i32
    return %c0_i32, %c0_i32_0, %c0_i32_1 : i32, i32, i32
  }
  func.func @transform_5(%arg0: i32) -> (i32, i32) {
    %c0_i32 = arith.constant 0 : i32
    %c0_i32_0 = arith.constant 0 : i32
    %c0_i32_1 = arith.constant 0 : i32
    return %c0_i32, %c0_i32_0 : i32, i32
  }
  func.func @transform_6(%arg0: i32) -> (i32, i32) {
    %c0_i32 = arith.constant 0 : i32
    %c0_i32_0 = arith.constant 0 : i32
    %c0_i32_1 = arith.constant 0 : i32
    return %c0_i32, %c0_i32_0 : i32, i32
  }
  func.func @transform_7(%arg0: i32) -> (i32, i32) {
    %c0_i32 = arith.constant 0 : i32
    %c0_i32_0 = arith.constant 0 : i32
    %c0_i32_1 = arith.constant 0 : i32
    return %c0_i32, %c0_i32_0 : i32, i32
  }
}

</mosaic_0001>

<bundles_post_ra>
// kernel: unstruc_maskgen_forward.1
= control target key start
LH: loop header
LB: loop body
LE: loop exit
PB: predicated region body
PF: predicated region fallthrough
CT: control target
= control target key end

     0   :  { %12 = vsyncpa [#allocation3], 0  ;;  %s4061_s0 = inlined_call_operand.vmem [shape: f32[16,128], index: 0, kind: input, shape index: {}]   ;;  %s4062_s1 = inlined_call_operand.vmem [shape: f32[16,128], index: 1, kind: input, shape index: {}]   ;;  %s4063_s2 = inlined_call_operand.vmem [shape: f32[16,8], index: 2, kind: input, shape index: {}]   ;;  %s4064_s3 = inlined_call_operand.hbm [shape: bf16[2,640,128], index: 3, kind: input, shape index: {}]   ;;  %s4065_s4 = inlined_call_operand.vmem [shape: f32[2,16,128], index: 4, kind: input, shape index: {}]   ;;  %s4066_s5 = inlined_call_operand.hbm [shape: bf16[1152,128], index: 5, kind: input, shape index: {}]   ;;  %s4067_s6 = inlined_call_operand.vmem [shape: f32[16,128], index: 6, kind: input, shape index: {}]   ;;  %s4068_s7 = inlined_call_operand.vmem [shape: f32[16,128], index: 7, kind: output, shape index: {}]  }
   0x1   :  { %s24_s26 = sshll.u32 %s4064_s3, 4  ;;  %s25_s26 = int_to_ptr.hbm [resolvable:$true] %s24_s26 }
   0x2   :  { %13 = vsyncpa [#allocation5], 0  ;;  %s3771_s27 = smov [#allocation2]   ;;  %s39_s8 = sshll.u32 %s4066_s5, 4  ;;  %s40_s8 = int_to_ptr.hbm [resolvable:$true] %s39_s8 }
   0x3   :  { %s26_s28 = sshll.u32 %s3771_s27, 4  ;;  %s3772_s9 = smov 64   ;;  %s27_s28 = int_to_ptr.vmem [resolvable:$true] %s26_s28 }
   0x4   :  { %s3773_s10 = smov 4   ;;  %s3774_s11 = smov [#allocation4]  }
   0x5   :  { %32 = dma.hbm_to_vmem [thread:$0]  %s25_s26, 10240, %s27_s28, [#allocation3], %s3772_s9, %s3772_s9, %s3773_s10  }
   0x6   :  { %s41_s12 = sshll.u32 %s3774_s11, 4  ;;  %s42_s12 = int_to_ptr.vmem [resolvable:$true] %s41_s12 }
   0x7   :  { %47 = dma.hbm_to_vmem [thread:$0]  %s40_s8, 9216, %s42_s12, [#allocation5], %s3772_s9, %s3772_s9, %s3773_s10  }
   0x8   :  { %3767 = dma.done.wait [#allocation3], 10240  }
   0x9   :  { %3768 = vsyncadd [#allocation3], 4294957056 }
   0xa   :  { %3769 = dma.done.wait [#allocation5], 9216  }
   0xb   :  { %3770 = vsyncadd [#allocation5], 4294958080  ;;  %v3468_v0 = vld [vmem:[#allocation2 + $0x38] sm:$0xff]  ;;  %v3467_v1 = vld [vmem:[#allocation2 + $0x30] sm:$0xff]  ;;  %v64_v11 = vlaneseq  ;;  %v3775_v16 = vmov 0.0   ;;  %s3776_s17 = smov 96  }
   0xc   :  { %137 = vmatpush.bf16.msra.mxu0 %v3468_v0  ;;  %v3466_v2 = vld [vmem:[#allocation2 + $0x28] sm:$0xff]  ;;  %v3465_v3 = vld [vmem:[#allocation2 + $0x20] sm:$0xff]  ;;  %v3464_v4 = vld [vmem:[#allocation2 + $0x18] sm:$0xff]  ;;  %vm159_vm1 = vcmask 261120   ;;  %vm179_vm2 = vcmask 64512   ;;  %s3778_s13 = smov 17  }
   0xd   :  { %v3463_v5 = vld [vmem:[#allocation2 + $0x10] sm:$0xff]  ;;  %v3462_v6 = vld [vmem:[#allocation2 + $0x8] sm:$0xff]  ;;  %v3461_v7 = vld [vmem:[#allocation2] sm:$0xff]  ;;  %v65_v12 = vand.u32 127, %v64_v11 }
   0xe   :  { %v3832_v8 = vld [vmem:[%s4061_s0] sm:$0xff]  ;;  %v3837_v9 = vld [vmem:[%s4061_s0 + $0x8] sm:$0xff] }
   0xf   :  { %v87_v10 = vpack.c.bf16 %v3837_v9, %v3832_v8  ;;  %v3844_v13 = vld [vmem:[%s4065_s4] sm:$0xff]  ;;  %vm66_vm0 = vcmp.lt.s32.totalorder %v65_v12, 32  ;;  %v3482_v11 = vld [vmem:[#allocation2 + $0xa8] sm:$0xff] }
  0x10   :  { %138 = vmatpush.bf16.msra.mxu0 %v3467_v1  ;;  %v88_v14 = vperm.slane %v3844_v13, 0  ;;  %v3848_v17 = vsel %vm66_vm0, 1.0, %v3775_v16  ;;  %v3481_v12 = vld [vmem:[#allocation2 + $0xa0] sm:$0xff] }
  0x14   :  { %139 = vmatpush.bf16.msra.mxu0 %v3466_v2 }
  0x18   :  { %140 = vmatpush.bf16.msra.mxu0 %v3465_v3 }
  0x1c   :  { %141 = vmatpush.bf16.msra.mxu0 %v3464_v4 }
  0x20   :  { %142 = vmatpush.bf16.msra.mxu0 %v3463_v5 }
  0x24   :  { %143 = vmatpush.bf16.msra.mxu0 %v3462_v6 }
  0x28   :  { %144 = vmatpush.bf16.msra.mxu0 %v3461_v7  ;;  %v3484_v7 = vld [vmem:[#allocation2 + $0xb8] sm:$0xff] }
  0x2b   :  { %145 = vmatmul.bf16.vlgmr.msra.gmra.mxu0 %v87_v10  ;;  %v3483_v10 = vld [vmem:[#allocation2 + $0xb0] sm:$0xff] }
  0xa8   :  { %v146_v15 = vpop.f32.mrf.mxu0 }
  0xa9   :  { %v147_v18 = vadd.f32 %v146_v15, %v88_v14  ;;  %v3479_v15 = vld [vmem:[#allocation2 + $0x90] sm:$0xff] }
  0xab   :  { %v153_v19 = vpack.c.bf16 %v147_v18, %v147_v18  ;;  %v151_v20 = vmul.f32 %v3848_v17, %v147_v18 }
  0xad   :  { %157 = vrot.lane.b32.xlu1 %v153_v19, %s3772_s9  ;;  %222 = vmatpush.msrb.mxu0 %v151_v20  ;;  %v3478_v20 = vld [vmem:[#allocation2 + $0x88] sm:$0xff] }
  0xb0   :  { %v148_v21 = vpop.f32.mrf.mxu0 }
  0xb1   :  { %v149_v22 = vadd.f32 %v148_v21, %v88_v14  ;;  %v3480_v14 = vld [vmem:[#allocation2 + $0x98] sm:$0xff]  ;;  %v3477_v21 = vld [vmem:[#allocation2 + $0x80] sm:$0xff] }
  0xb3   :  { %v227_v23 = vpack.c.bf16 %v149_v22, %v149_v22  ;;  %v152_v24 = vmul.f32 %v3848_v17, %v149_v22  ;;  %v61_v22 = vld [vmem:[%s4062_s1] sm:$0xff] }
  0xb5   :  { %231 = vrot.lane.b32.xlu0 %v227_v23, %s3772_s9  ;;  %294 = vmatpush.msra.mxu2 %v152_v24 }
  0xb6   :  { %155 = vrot.lane.b32.xlu1 %v153_v19, %s3776_s17 }
  0xbd   :  { %229 = vrot.lane.b32.xlu0 %v227_v23, %s3776_s17  ;;  %v62_v23 = vld [vmem:[%s4062_s1 + $0x8] sm:$0xff] }
 0x11f   :  { %v158_v25 = vpop.permute.xlu1 %157 }
 0x120   :  { %v164_v26 = vsel %vm159_vm1, %v158_v25, 0  ;;  %v3873_v25 = vpack.c.bf16 %v62_v23, %v61_v22  ;;  %v366_v23 = vperm.slane %v3844_v13, 1 }
 0x121   :  { %173 = vmatpush.bf16.xpose.msra.mxu1 %v164_v26 }
 0x127   :  { %v232_v27 = vpop.permute.xlu0 %231 }
 0x128   :  { %v156_v28 = vpop.permute.xlu1 %155  ;;  %v237_v29 = vsel %vm159_vm1, %v232_v27, 0 }
 0x129   :  { %2860 = vmatmul.msk.bf16.vlgmr.msra.gmra.mxu1 %vm159_vm1, %v156_v28  ;;  %246 = vmatpush.bf16.xpose.msra.mxu3 %v237_v29 }
 0x12f   :  { %v230_v30 = vpop.permute.xlu0 %229 }
 0x130   :  { %2862 = vmatmul.msk.bf16.vlgmr.msra.gmra.mxu3 %vm159_vm1, %v230_v30 }
 0x131   :  { %494 = vmatpush.bf16.msrb.mxu3 %v3484_v7 }
 0x135   :  { %495 = vmatpush.bf16.msrb.mxu3 %v3483_v10  ;;  %v343_v10 = vperm.slane %v3844_v13, 5 }
 0x139   :  { %496 = vmatpush.bf16.msrb.mxu3 %v3482_v11 }
 0x13d   :  { %497 = vmatpush.bf16.msrb.mxu3 %v3481_v12 }
 0x141   :  { %498 = vmatpush.bf16.msrb.mxu3 %v3480_v14 }
 0x145   :  { %499 = vmatpush.bf16.msrb.mxu3 %v3479_v15 }
 0x149   :  { %500 = vmatpush.bf16.msrb.mxu3 %v3478_v20 }
 0x14d   :  { %501 = vmatpush.bf16.msrb.mxu3 %v3477_v21 }
 0x150   :  { %502 = vmatmul.bf16.vlgmr.msrb.gmra.mxu3 %v3873_v25 }
 0x1a6   :  { %v175_v31 = vpop.f32.mrf.mxu1 }
 0x1a7   :  { %v180_v36 = vsel %vm179_vm2, %v175_v31, -inf }
 0x1ae   :  { %v177_v32 = vpop.f32.mrf.mxu1 }
 0x1b3   :  { %v248_v33 = vpop.f32.mrf.mxu3 }
 0x1b4   :  { %v252_v34 = vsel %vm179_vm2, %v248_v33, -inf }
 0x1b5   :  { %253 = vmax.xlane.f32.xlu2 %v252_v34 }
 0x1bb   :  { %v250_v35 = vpop.f32.mrf.mxu3 }
 0x1bc   :  { %v445_v35 = vperm.slane %v3844_v13, 2 }
 0x1bd   :  { %181 = vmax.xlane.f32.xlu2 %v180_v36 }
 0x1d3   :  { %v503_v36 = vpop.f32.mrf.mxu3 }
 0x228   :  { %v254_v37 = vpop.xlane.xlu2 %253 }
 0x229   :  { %v255_v38 = vsub.f32 %v248_v33, %v254_v37  ;;  %v504_v37 = vadd.f32 %v503_v36, %v445_v35 }
 0x22b   :  { %v256_v39 = vmul.f32 1.442695, %v255_v38  ;;  %v511_v38 = vpack.c.bf16 %v504_v37, %v504_v37 }
 0x22d   :  { %3637 = vpow2.f32 %v256_v39  ;;  %v3476_v39 = vld [vmem:[#allocation2 + $0x78] sm:$0xff] }
 0x22e   :  { %415 = vmatpush.bf16.msrb.mxu1 %v3476_v39 }
 0x230   :  { %v182_v40 = vpop.xlane.xlu2 %181 }
 0x231   :  { %v183_v41 = vsub.f32 %v175_v31, %v182_v40  ;;  %v3475_v40 = vld [vmem:[#allocation2 + $0x70] sm:$0xff] }
 0x232   :  { %416 = vmatpush.bf16.msrb.mxu1 %v3475_v40 }
 0x233   :  { %v3638_v42 = vpop.eup %3637  ;;  %v184_v43 = vmul.f32 1.442695, %v183_v41  ;;  %v3474_v41 = vld [vmem:[#allocation2 + $0x68] sm:$0xff] }
 0x234   :  { %v258_v44 = vsel %vm179_vm2, %v3638_v42, 0.0 }
 0x235   :  { %3639 = vpow2.f32 %v184_v43  ;;  %259 = vadd.xlane.f32.xlu0 %v258_v44  ;;  %v3472_v43 = vld [vmem:[#allocation2 + $0x58] sm:$0xff]  ;;  %v3471_v44 = vld [vmem:[#allocation2 + $0x50] sm:$0xff] }
 0x236   :  { %417 = vmatpush.bf16.msrb.mxu1 %v3474_v41 }
 0x23b   :  { %v3640_v45 = vpop.eup %3639 }
 0x23c   :  { %v186_v46 = vsel %vm179_vm2, %v3640_v45, 0.0 }
 0x23d   :  { %187 = vadd.xlane.f32.xlu1 %v186_v46 }
 0x2a8   :  { %v260_v47 = vpop.xlane.xlu0 %259 }
 0x2a9   :  { %3641 = vrcp.f32 %v260_v47  ;;  %v272_v52 = vand.u32 2147483648, %v260_v47  ;;  %v270_v54 = vand.u32 2147483647, %v260_v47  ;;  %vm266_vm4 = vweird.f32 %v260_v47 }
 0x2ab   :  { %v273_v57 = vor.u32 1.1754944e-38, %v272_v52  ;;  %vm271_vm6 = vcmp.eq.f32.partialorder %v270_v54, 8.507059e+37 }
 0x2af   :  { %v3642_v48 = vpop.eup %3641 }
 0x2b0   :  { %v262_v49 = vmul.f32 %v3642_v48, %v260_v47  ;;  %v188_v50 = vpop.xlane.xlu1 %187  ;;  %vm267_vm3 = vweird.f32 %v3642_v48 }
 0x2b1   :  { %3643 = vrcp.f32 %v188_v50  ;;  %vm268_vm5 = vmor %vm266_vm4, %vm267_vm3  ;;  %v200_v63 = vand.u32 2147483648, %v188_v50  ;;  %v198_v1 = vand.u32 2147483647, %v188_v50  ;;  %vm194_vm8 = vweird.f32 %v188_v50 }
 0x2b2   :  { %v263_v51 = vsub.f32 1.0, %v262_v49 }
 0x2b3   :  { %v201_v3 = vor.u32 1.1754944e-38, %v200_v63  ;;  %vm199_vm10 = vcmp.eq.f32.partialorder %v198_v1, 8.507059e+37 }
 0x2b4   :  { %v264_v53 = vmul.f32 %v3642_v48, %v263_v51 }
 0x2b6   :  { %v265_v55 = vadd.f32 %v3642_v48, %v264_v53 }
 0x2b7   :  { %v3644_v56 = vpop.eup %3643 }
 0x2b8   :  { %v190_v58 = vmul.f32 %v3644_v56, %v188_v50  ;;  %v269_v59 = vsel %vm268_vm5, %v3642_v48, %v265_v55  ;;  %vm195_vm7 = vweird.f32 %v3644_v56  ;;  %v3469_v48 = vld [vmem:[#allocation2 + $0x40] sm:$0xff]  ;;  %v505_v50 = vpop.f32.mrf.mxu3 }
 0x2b9   :  { %v274_v60 = vsel %vm271_vm6, %v273_v57, %v269_v59  ;;  %vm196_vm9 = vmor %vm194_vm8, %vm195_vm7  ;;  %v506_v52 = vadd.f32 %v505_v50, %v445_v35  ;;  %v508_v59 = vmul.f32 %v3848_v17, %v504_v37 }
 0x2ba   :  { %v191_v61 = vsub.f32 1.0, %v190_v58  ;;  %v275_v62 = vmul.f32 %v3638_v42, %v274_v60  ;;  %v3473_v42 = vld [vmem:[#allocation2 + $0x60] sm:$0xff] }
 0x2bb   :  { %418 = vmatpush.bf16.msrb.mxu1 %v3473_v42  ;;  %v509_v54 = vmul.f32 %v3848_v17, %v506_v52 }
 0x2bc   :  { %v192_v0 = vmul.f32 %v3644_v56, %v191_v61  ;;  %2863 = vmatmul.msk.f32.vlgmr.msra.gmra.mxu2 %vm179_vm2, %v275_v62 }
 0x2bd   :  { %647 = vmatpush.msra.mxu0 %v509_v54 }
 0x2be   :  { %v193_v2 = vadd.f32 %v3644_v56, %v192_v0 }
 0x2bf   :  { %419 = vmatpush.bf16.msrb.mxu1 %v3472_v43 }
 0x2c0   :  { %v197_v4 = vsel %vm196_vm9, %v3644_v56, %v193_v2 }
 0x2c1   :  { %v202_v5 = vsel %vm199_vm10, %v201_v3, %v197_v4 }
 0x2c2   :  { %v203_v6 = vmul.f32 %v3640_v45, %v202_v5  ;;  %v3470_v45 = vld [vmem:[#allocation2 + $0x48] sm:$0xff] }
 0x2c3   :  { %420 = vmatpush.bf16.msrb.mxu1 %v3471_v44 }
 0x2c4   :  { %2861 = vmatmul.msk.f32.vlgmr.msrb.gmra.mxu0 %vm179_vm2, %v203_v6 }
 0x2c7   :  { %421 = vmatpush.bf16.msrb.mxu1 %v3470_v45 }
 0x2cb   :  { %422 = vmatpush.bf16.msrb.mxu1 %v3469_v48 }
 0x33f   :  { %v296_v24 = vpop.f32.mrf.mxu2 }
 0x340   :  { %v300_v26 = vadd.f32 %v296_v24, %v3837_v9 }
 0x341   :  { %v224_v18 = vpop.f32.mrf.mxu0 }
 0x342   :  { %v299_v19 = vadd.f32 %v224_v18, %v3832_v8  ;;  %v346_v18 = vperm.slane %v3844_v13, 6 }
 0x344   :  { %301 = vadd.xlane.f32.xlu2 %v299_v19 }
 0x34c   :  { %303 = vadd.xlane.f32.xlu2 %v300_v26 }
 0x3b7   :  { %v302_v8 = vpop.xlane.xlu2 %301 }
 0x3b8   :  { %v305_v27 = vmul.f32 0.03125, %v302_v8 }
 0x3ba   :  { %v307_v28 = vsub.f32 %v299_v19, %v305_v27 }
 0x3bc   :  { %v3878_v29 = vmul.f32 %v3848_v17, %v307_v28 }
 0x3be   :  { %v311_v30 = vmul.f32 %v3878_v29, %v3878_v29 }
 0x3bf   :  { %v304_v31 = vpop.xlane.xlu2 %303 }
 0x3c0   :  { %v306_v32 = vmul.f32 0.03125, %v304_v31  ;;  %313 = vadd.xlane.f32.xlu2 %v311_v30  ;;  %v582_v30 = vpack.c.bf16 %v506_v52, %v506_v52 }
 0x3c2   :  { %v308_v33 = vsub.f32 %v300_v26, %v306_v32 }
 0x3c4   :  { %v3883_v34 = vmul.f32 %v3848_v17, %v308_v33 }
 0x3c6   :  { %v312_v9 = vmul.f32 %v3883_v34, %v3883_v34 }
 0x3c8   :  { %315 = vadd.xlane.f32.xlu2 %v312_v9 }
 0x3e0   :  { %513 = vrot.lane.b32.xlu2 %v511_v38, %s3776_s17 }
 0x433   :  { %v314_v46 = vpop.xlane.xlu2 %313 }
 0x434   :  { %v317_v47 = vmul.f32 0.03125, %v314_v46 }
 0x436   :  { %v319_v49 = vadd.f32 1e-05, %v317_v47 }
 0x438   :  { %3645 = vrsqrt.f32 %v319_v49  ;;  %vm327_vm12 = vweird.f32 %v319_v49 }
 0x43b   :  { %v316_v51 = vpop.xlane.xlu2 %315 }
 0x43c   :  { %v318_v53 = vmul.f32 0.03125, %v316_v51 }
 0x43e   :  { %v3646_v55 = vpop.eup %3645  ;;  %v320_v56 = vadd.f32 1e-05, %v318_v53 }
 0x43f   :  { %v322_v57 = vmul.f32 %v3646_v55, %v319_v49  ;;  %vm328_vm11 = vweird.f32 %v3646_v55 }
 0x440   :  { %3647 = vrsqrt.f32 %v320_v56  ;;  %vm329_vm13 = vmor %vm327_vm12, %vm328_vm11  ;;  %vm337_vm15 = vweird.f32 %v320_v56 }
 0x441   :  { %v323_v58 = vmul.f32 %v3646_v55, %v322_v57 }
 0x443   :  { %v324_v60 = vmul.f32 0.5, %v323_v58  ;;  %v514_v61 = vpop.permute.xlu2 %513 }
 0x444   :  { %v519_v62 = vsel %vm159_vm1, %v514_v61, 0 }
 0x445   :  { %v325_v63 = vsub.f32 1.5, %v324_v60  ;;  %528 = vmatpush.bf16.xpose.msrb.mxu2 %v519_v62 }
 0x446   :  { %v3648_v0 = vpop.eup %3647 }
 0x447   :  { %v326_v1 = vmul.f32 %v3646_v55, %v325_v63  ;;  %v332_v2 = vmul.f32 %v3648_v0, %v320_v56  ;;  %vm338_vm14 = vweird.f32 %v3648_v0 }
 0x448   :  { %vm339_vm0 = vmor %vm337_vm15, %vm338_vm14 }
 0x449   :  { %v333_v3 = vmul.f32 %v3648_v0, %v332_v2  ;;  %v330_v4 = vsel %vm329_vm13, %v3646_v55, %v326_v1 }
 0x44a   :  { %v341_v7 = vmul.f32 %v330_v4, %v3878_v29 }
 0x44b   :  { %v334_v5 = vmul.f32 0.5, %v333_v3 }
 0x44c   :  { %v344_v15 = vmul.f32 %v343_v10, %v341_v7 }
 0x44d   :  { %576 = vmatpush.msra.mxu2 %v508_v59  ;;  %v335_v6 = vsub.f32 1.5, %v334_v5 }
 0x44e   :  { %v347_v20 = vadd.f32 %v346_v18, %v344_v15 }
 0x44f   :  { %v336_v11 = vmul.f32 %v3648_v0, %v335_v6 }
 0x451   :  { %v340_v12 = vsel %vm339_vm0, %v3648_v0, %v336_v11 }
 0x452   :  { %v342_v14 = vmul.f32 %v340_v12, %v3883_v34 }
 0x454   :  { %v345_v19 = vmul.f32 %v343_v10, %v342_v14 }
 0x456   :  { %v3896_v21 = vadd.f32 %v346_v18, %v345_v19 }
 0x458   :  { %v365_v22 = vpack.c.bf16 %v3896_v21, %v347_v20 }
 0x45a   :  { %423 = vmatmul.bf16.vlgmr.msrb.gmra.mxu1 %v365_v22 }
 0x4d7   :  { %v424_v24 = vpop.f32.mrf.mxu1 }
 0x4d8   :  { %v425_v26 = vadd.f32 %v424_v24, %v366_v23 }
 0x4da   :  { %v510_v8 = vpack.c.bf16 %v425_v26, %v425_v26 }
 0x4dc   :  { %2928 = vmatmul.msk.bf16.vlgmr.msrb.gmra.mxu2 %vm159_vm1, %v510_v8 }
 0x4df   :  { %v426_v49 = vpop.f32.mrf.mxu1 }
 0x4e0   :  { %v427_v50 = vadd.f32 %v426_v49, %v366_v23  ;;  %v3492_v23 = vld [vmem:[#allocation2 + $0xf8] sm:$0xff] }
 0x4e1   :  { %768 = vmatpush.bf16.msra.mxu1 %v3492_v23 }
 0x4e2   :  { %v581_v51 = vpack.c.bf16 %v427_v50, %v427_v50 }
 0x55f   :  { %v530_v27 = vpop.f32.mrf.mxu2 }
 0x560   :  { %v534_v28 = vsel %vm179_vm2, %v530_v27, -inf }
 0x561   :  { %535 = vmax.xlane.f32.xlu0 %v534_v28 }
 0x567   :  { %v532_v29 = vpop.f32.mrf.mxu2 }
 0x568   :  { %v3491_v29 = vld [vmem:[#allocation2 + $0xf0] sm:$0xff] }
 0x569   :  { %769 = vmatpush.bf16.msra.mxu1 %v3491_v29 }
 0x575   :  { %584 = vrot.lane.b32.xlu0 %v582_v30, %s3776_s17  ;;  %v3490_v30 = vld [vmem:[#allocation2 + $0xe8] sm:$0xff] }
 0x576   :  { %770 = vmatpush.bf16.msra.mxu1 %v3490_v30 }
 0x5d4   :  { %v536_v31 = vpop.xlane.xlu0 %535 }
 0x5d5   :  { %v537_v32 = vsub.f32 %v530_v27, %v536_v31 }
 0x5d7   :  { %v538_v33 = vmul.f32 1.442695, %v537_v32 }
 0x5d9   :  { %3649 = vpow2.f32 %v538_v33  ;;  %v3489_v33 = vld [vmem:[#allocation2 + $0xe0] sm:$0xff] }
 0x5da   :  { %771 = vmatpush.bf16.msra.mxu1 %v3489_v33 }
 0x5df   :  { %v3650_v34 = vpop.eup %3649 }
 0x5e0   :  { %v540_v9 = vsel %vm179_vm2, %v3650_v34, 0.0 }
 0x5e1   :  { %541 = vadd.xlane.f32.xlu1 %v540_v9  ;;  %v3487_v9 = vld [vmem:[#allocation2 + $0xd0] sm:$0xff] }
 0x5e7   :  { %v585_v35 = vpop.permute.xlu0 %584 }
 0x5e8   :  { %v590_v36 = vsel %vm159_vm1, %v585_v35, 0  ;;  %v3486_v35 = vld [vmem:[#allocation2 + $0xc8] sm:$0xff] }
 0x5e9   :  { %599 = vmatpush.bf16.xpose.msrb.mxu2 %v590_v36 }
 0x654   :  { %v542_v37 = vpop.xlane.xlu1 %541 }
 0x655   :  { %3651 = vrcp.f32 %v542_v37  ;;  %v554_v41 = vand.u32 2147483648, %v542_v37  ;;  %v552_v43 = vand.u32 2147483647, %v542_v37  ;;  %vm548_vm4 = vweird.f32 %v542_v37 }
 0x657   :  { %v555_v45 = vor.u32 1.1754944e-38, %v554_v41  ;;  %vm553_vm6 = vcmp.eq.f32.partialorder %v552_v43, 8.507059e+37  ;;  %v3499_v43 = vld [vmem:[#allocation2 + $0x130] sm:$0xff] }
 0x65b   :  { %v3652_v38 = vpop.eup %3651 }
 0x65c   :  { %v544_v39 = vmul.f32 %v3652_v38, %v542_v37  ;;  %vm549_vm3 = vweird.f32 %v3652_v38  ;;  %v3485_v37 = vld [vmem:[#allocation2 + $0xc0] sm:$0xff] }
 0x65d   :  { %vm550_vm5 = vmor %vm548_vm4, %vm549_vm3 }
 0x65e   :  { %v545_v40 = vsub.f32 1.0, %v544_v39  ;;  %v3500_v39 = vld [vmem:[#allocation2 + $0x138] sm:$0xff] }
 0x65f   :  { %850 = vmatpush.bf16.msra.mxu3 %v3500_v39  ;;  %v3505_v39 = vld [vmem:[#allocation2 + $0x160] sm:$0xff] }
 0x660   :  { %v546_v42 = vmul.f32 %v3652_v38, %v545_v40 }
 0x662   :  { %v547_v44 = vadd.f32 %v3652_v38, %v546_v42 }
 0x663   :  { %851 = vmatpush.bf16.msra.mxu3 %v3499_v43 }
 0x664   :  { %v551_v46 = vsel %vm550_vm5, %v3652_v38, %v547_v44 }
 0x665   :  { %v556_v47 = vsel %vm553_vm6, %v555_v45, %v551_v46  ;;  %v3498_v46 = vld [vmem:[#allocation2 + $0x128] sm:$0xff] }
 0x666   :  { %v557_v48 = vmul.f32 %v3650_v34, %v556_v47 }
 0x667   :  { %852 = vmatpush.bf16.msra.mxu3 %v3498_v46 }
 0x668   :  { %2929 = vmatmul.msk.f32.vlgmr.msra.gmra.mxu2 %vm179_vm2, %v557_v48  ;;  %v3497_v48 = vld [vmem:[#allocation2 + $0x120] sm:$0xff] }
 0x66b   :  { %853 = vmatpush.bf16.msra.mxu3 %v3497_v48 }
 0x670   :  { %2930 = vmatmul.msk.bf16.vlgmr.msrb.gmra.mxu2 %vm159_vm1, %v581_v51 }
 0x6eb   :  { %v578_v52 = vpop.f32.mrf.mxu2 }
 0x6ec   :  { %v652_v55 = vadd.f32 %v578_v52, %v347_v20 }
 0x6f3   :  { %v601_v53 = vpop.f32.mrf.mxu2 }
 0x6f4   :  { %v605_v54 = vsel %vm179_vm2, %v601_v53, -inf }
 0x6f5   :  { %606 = vmax.xlane.f32.xlu1 %v605_v54 }
 0x6fb   :  { %v603_v56 = vpop.f32.mrf.mxu2 }
 0x6fd   :  { %654 = vadd.xlane.f32.xlu1 %v652_v55 }
 0x768   :  { %v607_v57 = vpop.xlane.xlu1 %606 }
 0x769   :  { %v608_v58 = vsub.f32 %v601_v53, %v607_v57  ;;  %v696_v57 = vperm.slane %v3844_v13, 7 }
 0x76b   :  { %v609_v59 = vmul.f32 1.442695, %v608_v58 }
 0x76d   :  { %3653 = vpow2.f32 %v609_v59  ;;  %v3922_v59 = vld [vmem:[%s4065_s4 + $0x8] sm:$0xff] }
 0x770   :  { %v655_v60 = vpop.xlane.xlu1 %654 }
 0x771   :  { %v658_v61 = vmul.f32 0.03125, %v655_v60 }
 0x773   :  { %v3654_v62 = vpop.eup %3653  ;;  %v660_v63 = vsub.f32 %v652_v55, %v658_v61 }
 0x774   :  { %v611_v0 = vsel %vm179_vm2, %v3654_v62, 0.0 }
 0x775   :  { %612 = vadd.xlane.f32.xlu2 %v611_v0  ;;  %v3910_v1 = vmul.f32 %v3848_v17, %v660_v63  ;;  %v699_v63 = vperm.slane %v3922_v59, 0 }
 0x777   :  { %v664_v2 = vmul.f32 %v3910_v1, %v3910_v1 }
 0x779   :  { %666 = vadd.xlane.f32.xlu0 %v664_v2 }
 0x7e8   :  { %v613_v3 = vpop.xlane.xlu2 %612 }
 0x7e9   :  { %3655 = vrcp.f32 %v613_v3  ;;  %v625_v7 = vand.u32 2147483648, %v613_v3  ;;  %v623_v11 = vand.u32 2147483647, %v613_v3  ;;  %vm619_vm8 = vweird.f32 %v613_v3 }
 0x7eb   :  { %v626_v14 = vor.u32 1.1754944e-38, %v625_v7  ;;  %vm624_vm10 = vcmp.eq.f32.partialorder %v623_v11, 8.507059e+37  ;;  %v3493_v7 = vld [vmem:[#allocation2 + $0x100] sm:$0xff]  ;;  %v719_v11 = vperm.slane %v3844_v13, 3 }
 0x7ec   :  { %v667_v31 = vpop.xlane.xlu0 %666 }
 0x7ed   :  { %v670_v32 = vmul.f32 0.03125, %v667_v31 }
 0x7ef   :  { %v3656_v4 = vpop.eup %3655  ;;  %v672_v34 = vadd.f32 1e-05, %v670_v32 }
 0x7f0   :  { %v615_v5 = vmul.f32 %v3656_v4, %v613_v3  ;;  %vm620_vm7 = vweird.f32 %v3656_v4 }
 0x7f1   :  { %vm621_vm9 = vmor %vm619_vm8, %vm620_vm7  ;;  %3657 = vrsqrt.f32 %v672_v34  ;;  %vm680_vm12 = vweird.f32 %v672_v34 }
 0x7f2   :  { %v616_v6 = vsub.f32 1.0, %v615_v5  ;;  %v3495_v5 = vld [vmem:[#allocation2 + $0x110] sm:$0xff] }
 0x7f4   :  { %v617_v10 = vmul.f32 %v3656_v4, %v616_v6  ;;  %v3494_v6 = vld [vmem:[#allocation2 + $0x108] sm:$0xff] }
 0x7f6   :  { %v618_v12 = vadd.f32 %v3656_v4, %v617_v10 }
 0x7f7   :  { %v3658_v36 = vpop.eup %3657 }
 0x7f8   :  { %v622_v15 = vsel %vm621_vm9, %v3656_v4, %v618_v12  ;;  %v675_v38 = vmul.f32 %v3658_v36, %v672_v34  ;;  %vm681_vm11 = vweird.f32 %v3658_v36 }
 0x7f9   :  { %v627_v18 = vsel %vm624_vm10, %v626_v14, %v622_v15  ;;  %vm682_vm13 = vmor %vm680_vm12, %vm681_vm11 }
 0x7fa   :  { %v628_v19 = vmul.f32 %v3654_v62, %v627_v18  ;;  %v676_v40 = vmul.f32 %v3658_v36, %v675_v38  ;;  %v3506_v38 = vld [vmem:[#allocation2 + $0x168] sm:$0xff] }
 0x7fc   :  { %2931 = vmatmul.msk.f32.vlgmr.msra.gmra.mxu0 %vm179_vm2, %v628_v19  ;;  %v677_v45 = vmul.f32 0.5, %v676_v40  ;;  %v3504_v40 = vld [vmem:[#allocation2 + $0x158] sm:$0xff] }
 0x7fe   :  { %v678_v47 = vsub.f32 1.5, %v677_v45  ;;  %v3501_v45 = vld [vmem:[#allocation2 + $0x140] sm:$0xff] }
 0x800   :  { %v679_v50 = vmul.f32 %v3658_v36, %v678_v47 }
 0x802   :  { %v683_v53 = vsel %vm682_vm13, %v3658_v36, %v679_v50  ;;  %v3508_v36 = vld [vmem:[#allocation2 + $0x178] sm:$0xff] }
 0x803   :  { %v694_v56 = vmul.f32 %v683_v53, %v3910_v1  ;;  %v3496_v1 = vld [vmem:[#allocation2 + $0x118] sm:$0xff]  ;;  %984 = vmatpush.bf16.msra.mxu2 %v3508_v36 }
 0x804   :  { %854 = vmatpush.bf16.msra.mxu3 %v3496_v1 }
 0x805   :  { %v697_v62 = vmul.f32 %v696_v57, %v694_v56 }
 0x807   :  { %v700_v2 = vadd.f32 %v699_v63, %v697_v62 }
 0x808   :  { %855 = vmatpush.bf16.msra.mxu3 %v3495_v5  ;;  %v911_v5 = vperm.slane %v3922_v59, 2 }
 0x80c   :  { %856 = vmatpush.bf16.msra.mxu3 %v3494_v6 }
 0x810   :  { %857 = vmatpush.bf16.msra.mxu3 %v3493_v7 }
 0x879   :  { %v649_v20 = vpop.f32.mrf.mxu0 }
 0x87a   :  { %v653_v22 = vadd.f32 %v649_v20, %v3896_v21  ;;  %v3488_v21 = vld [vmem:[#allocation2 + $0xd8] sm:$0xff] }
 0x87b   :  { %772 = vmatpush.bf16.msra.mxu1 %v3488_v21 }
 0x87c   :  { %656 = vadd.xlane.f32.xlu1 %v653_v22 }
 0x87f   :  { %773 = vmatpush.bf16.msra.mxu1 %v3487_v9 }
 0x883   :  { %774 = vmatpush.bf16.msra.mxu1 %v3486_v35 }
 0x887   :  { %775 = vmatpush.bf16.msra.mxu1 %v3485_v37  ;;  %v3507_v37 = vld [vmem:[#allocation2 + $0x170] sm:$0xff] }
 0x888   :  { %985 = vmatpush.bf16.msra.mxu2 %v3507_v37 }
 0x88c   :  { %986 = vmatpush.bf16.msra.mxu2 %v3506_v38 }
 0x890   :  { %987 = vmatpush.bf16.msra.mxu2 %v3505_v39 }
 0x894   :  { %988 = vmatpush.bf16.msra.mxu2 %v3504_v40 }
 0x8ef   :  { %v657_v24 = vpop.xlane.xlu1 %656 }
 0x8f0   :  { %v659_v26 = vmul.f32 0.03125, %v657_v24 }
 0x8f2   :  { %v661_v8 = vsub.f32 %v653_v22, %v659_v26  ;;  %v801_v22 = vperm.slane %v3844_v13, 4 }
 0x8f4   :  { %v663_v27 = vmul.f32 %v3848_v17, %v661_v8 }
 0x8f6   :  { %v665_v28 = vmul.f32 %v663_v27, %v663_v27 }
 0x8f8   :  { %668 = vadd.xlane.f32.xlu1 %v665_v28 }
 0x96b   :  { %v669_v41 = vpop.xlane.xlu1 %668 }
 0x96c   :  { %v671_v42 = vmul.f32 0.03125, %v669_v41  ;;  %v3503_v41 = vld [vmem:[#allocation2 + $0x150] sm:$0xff] }
 0x96d   :  { %989 = vmatpush.bf16.msra.mxu2 %v3503_v41 }
 0x96e   :  { %v673_v44 = vadd.f32 1e-05, %v671_v42  ;;  %v3502_v42 = vld [vmem:[#allocation2 + $0x148] sm:$0xff] }
 0x970   :  { %3659 = vrsqrt.f32 %v673_v44  ;;  %vm690_vm15 = vweird.f32 %v673_v44 }
 0x971   :  { %990 = vmatpush.bf16.msra.mxu2 %v3502_v42 }
 0x975   :  { %991 = vmatpush.bf16.msra.mxu2 %v3501_v45 }
 0x976   :  { %v3660_v49 = vpop.eup %3659 }
 0x977   :  { %v685_v51 = vmul.f32 %v3660_v49, %v673_v44  ;;  %vm691_vm14 = vweird.f32 %v3660_v49 }
 0x978   :  { %vm692_vm0 = vmor %vm690_vm15, %vm691_vm14 }
 0x979   :  { %v686_v52 = vmul.f32 %v3660_v49, %v685_v51 }
 0x97b   :  { %v687_v54 = vmul.f32 0.5, %v686_v52 }
 0x97d   :  { %v688_v55 = vsub.f32 1.5, %v687_v54 }
 0x97f   :  { %v689_v58 = vmul.f32 %v3660_v49, %v688_v55 }
 0x981   :  { %v693_v60 = vsel %vm692_vm0, %v3660_v49, %v689_v58 }
 0x982   :  { %v695_v61 = vmul.f32 %v693_v60, %v663_v27 }
 0x984   :  { %v698_v0 = vmul.f32 %v696_v57, %v695_v61 }
 0x986   :  { %v701_v3 = vadd.f32 %v699_v63, %v698_v0  ;;  %v908_v0 = vperm.slane %v3922_v59, 1 }
 0x988   :  { %v718_v4 = vpack.c.bf16 %v701_v3, %v700_v2 }
 0x98a   :  { %776 = vmatmul.bf16.vlgmr.msra.gmra.mxu1 %v718_v4 }
 0xa07   :  { %v777_v10 = vpop.f32.mrf.mxu1 }
 0xa08   :  { %v778_v12 = vadd.f32 %v777_v10, %v719_v11 }
 0xa0a   :  { %v782_v18 = vmax.f32 %v778_v12, 0.0  ;;  %v3937_v12 = vld [vmem:[%s4065_s4 + $0x10] sm:$0xff] }
 0xa0f   :  { %v779_v14 = vpop.f32.mrf.mxu1 }
 0xa10   :  { %v780_v15 = vadd.f32 %v779_v14, %v719_v11  ;;  %v935_v14 = vperm.slane %v3937_v12, 0 }
 0xa12   :  { %v783_v19 = vmax.f32 %v780_v15, 0.0 }
 0xa14   :  { %v800_v20 = vpack.c.bf16 %v783_v19, %v782_v18 }
 0xa16   :  { %858 = vmatmul.bf16.vlgmr.msra.gmra.mxu3 %v800_v20 }
 0xa99   :  { %v859_v23 = vpop.f32.mrf.mxu3 }
 0xa9a   :  { %v860_v24 = vadd.f32 %v859_v23, %v801_v22 }
 0xa9c   :  { %v864_v26 = vadd.f32 %v860_v24, %v700_v2 }
 0xa9e   :  { %866 = vadd.xlane.f32.xlu1 %v864_v26 }
 0xaa1   :  { %v861_v8 = vpop.f32.mrf.mxu3 }
 0xaa2   :  { %v862_v27 = vadd.f32 %v861_v8, %v801_v22 }
 0xaa4   :  { %v865_v28 = vadd.f32 %v862_v27, %v701_v3 }
 0xaa6   :  { %868 = vadd.xlane.f32.xlu1 %v865_v28 }
 0xb11   :  { %v867_v29 = vpop.xlane.xlu1 %866 }
 0xb12   :  { %v870_v30 = vmul.f32 0.03125, %v867_v29 }
 0xb14   :  { %v872_v31 = vsub.f32 %v864_v26, %v870_v30 }
 0xb16   :  { %v874_v32 = vmul.f32 %v3848_v17, %v872_v31 }
 0xb18   :  { %v876_v33 = vmul.f32 %v874_v32, %v874_v32 }
 0xb19   :  { %v869_v34 = vpop.xlane.xlu1 %868 }
 0xb1a   :  { %v871_v21 = vmul.f32 0.03125, %v869_v34  ;;  %878 = vadd.xlane.f32.xlu2 %v876_v33 }
 0xb1c   :  { %v873_v9 = vsub.f32 %v865_v28, %v871_v21 }
 0xb1e   :  { %v875_v13 = vmul.f32 %v3848_v17, %v873_v9 }
 0xb20   :  { %v877_v35 = vmul.f32 %v875_v13, %v875_v13 }
 0xb22   :  { %880 = vadd.xlane.f32.xlu1 %v877_v35 }
 0xb8d   :  { %v879_v43 = vpop.xlane.xlu2 %878 }
 0xb8e   :  { %v882_v44 = vmul.f32 0.03125, %v879_v43 }
 0xb90   :  { %v884_v46 = vadd.f32 1e-05, %v882_v44 }
 0xb92   :  { %3661 = vrsqrt.f32 %v884_v46  ;;  %vm892_vm4 = vweird.f32 %v884_v46 }
 0xb95   :  { %v881_v47 = vpop.xlane.xlu1 %880 }
 0xb96   :  { %v883_v48 = vmul.f32 0.03125, %v881_v47 }
 0xb98   :  { %v3662_v49 = vpop.eup %3661  ;;  %v885_v50 = vadd.f32 1e-05, %v883_v48 }
 0xb99   :  { %v887_v51 = vmul.f32 %v3662_v49, %v884_v46  ;;  %vm893_vm3 = vweird.f32 %v3662_v49 }
 0xb9a   :  { %3663 = vrsqrt.f32 %v885_v50  ;;  %vm894_vm5 = vmor %vm892_vm4, %vm893_vm3  ;;  %vm902_vm7 = vweird.f32 %v885_v50 }
 0xb9b   :  { %v888_v52 = vmul.f32 %v3662_v49, %v887_v51 }
 0xb9d   :  { %v889_v53 = vmul.f32 0.5, %v888_v52 }
 0xb9f   :  { %v890_v54 = vsub.f32 1.5, %v889_v53 }
 0xba0   :  { %v3664_v55 = vpop.eup %3663 }
 0xba1   :  { %v891_v56 = vmul.f32 %v3662_v49, %v890_v54  ;;  %v897_v57 = vmul.f32 %v3664_v55, %v885_v50  ;;  %vm903_vm6 = vweird.f32 %v3664_v55 }
 0xba2   :  { %vm904_vm8 = vmor %vm902_vm7, %vm903_vm6 }
 0xba3   :  { %v898_v58 = vmul.f32 %v3664_v55, %v897_v57  ;;  %v895_v60 = vsel %vm894_vm5, %v3662_v49, %v891_v56 }
 0xba4   :  { %v906_v63 = vmul.f32 %v895_v60, %v874_v32 }
 0xba5   :  { %v899_v61 = vmul.f32 0.5, %v898_v58 }
 0xba6   :  { %v909_v1 = vmul.f32 %v908_v0, %v906_v63 }
 0xba7   :  { %v900_v62 = vsub.f32 1.5, %v899_v61 }
 0xba8   :  { %v912_v7 = vadd.f32 %v911_v5, %v909_v1 }
 0xba9   :  { %v901_v2 = vmul.f32 %v3664_v55, %v900_v62 }
 0xbab   :  { %v905_v3 = vsel %vm904_vm8, %v3664_v55, %v901_v2 }
 0xbac   :  { %v907_v4 = vmul.f32 %v905_v3, %v875_v13 }
 0xbae   :  { %v910_v6 = vmul.f32 %v908_v0, %v907_v4 }
 0xbb0   :  { %v3931_v10 = vadd.f32 %v911_v5, %v910_v6 }
 0xbb2   :  { %v934_v11 = vpack.c.bf16 %v3931_v10, %v912_v7 }
 0xbb4   :  { %992 = vmatmul.bf16.vlgmr.msra.gmra.mxu2 %v934_v11 }
 0xc37   :  { %v993_v15 = vpop.f32.mrf.mxu2 }
 0xc38   :  { %v994_v18 = vadd.f32 %v993_v15, %v935_v14 }
 0xc3a   :  { %v1000_v19 = vpack.c.bf16 %v994_v18, %v994_v18  ;;  %v998_v26 = vmul.f32 %v3848_v17, %v994_v18 }
 0xc3c   :  { %1002 = vrot.lane.b32.xlu1 %v1000_v19, %s3776_s17  ;;  %1004 = vrot.lane.b32.xlu2 %v1000_v19, %s3772_s9  ;;  %v3524_v19 = vld [vmem:[#allocation2 + $0x1f8] sm:$0xff] }
 0xc3d   :  { %1339 = vmatpush.bf16.msrb.mxu2 %v3524_v19 }
 0xc3f   :  { %v995_v59 = vpop.f32.mrf.mxu2 }
 0xc40   :  { %v996_v20 = vadd.f32 %v995_v59, %v935_v14  ;;  %v3523_v59 = vld [vmem:[#allocation2 + $0x1f0] sm:$0xff] }
 0xc41   :  { %1340 = vmatpush.bf16.msrb.mxu2 %v3523_v59 }
 0xc42   :  { %v999_v22 = vmul.f32 %v3848_v17, %v996_v20  ;;  %v1072_v23 = vpack.c.bf16 %v996_v20, %v996_v20  ;;  %v3522_v20 = vld [vmem:[#allocation2 + $0x1e8] sm:$0xff] }
 0xc44   :  { %1139 = vmatpush.msrb.mxu1 %v999_v22  ;;  %1074 = vrot.lane.b32.xlu2 %v1072_v23, %s3776_s17  ;;  %v3521_v22 = vld [vmem:[#allocation2 + $0x1e0] sm:$0xff] }
 0xc45   :  { %1341 = vmatpush.bf16.msrb.mxu2 %v3522_v20 }
 0xc49   :  { %1342 = vmatpush.bf16.msrb.mxu2 %v3521_v22  ;;  %v1211_v22 = vperm.slane %v3937_v12, 1 }
 0xc96   :  { %v1005_v24 = vpop.permute.xlu2 %1004 }
 0xc97   :  { %v1010_v8 = vsel %vm159_vm1, %v1005_v24, 0  ;;  %v3519_v24 = vld [vmem:[#allocation2 + $0x1d0] sm:$0xff] }
 0xc98   :  { %1019 = vmatpush.bf16.xpose.msrb.mxu0 %v1010_v8  ;;  %v3517_v8 = vld [vmem:[#allocation2 + $0x1c0] sm:$0xff] }
 0xc9e   :  { %v1075_v47 = vpop.permute.xlu2 %1074 }
 0xca0   :  { %1067 = vmatpush.msra.mxu0 %v998_v26  ;;  %v3518_v26 = vld [vmem:[#allocation2 + $0x1c8] sm:$0xff] }
 0xcae   :  { %v1003_v27 = vpop.permute.xlu1 %1002 }
 0xcaf   :  { %3030 = vmatmul.msk.bf16.vlgmr.msrb.gmra.mxu0 %vm159_vm1, %v1003_v27 }
 0xd2c   :  { %v1021_v28 = vpop.f32.mrf.mxu0 }
 0xd2d   :  { %v1025_v29 = vsel %vm179_vm2, %v1021_v28, -inf }
 0xd2e   :  { %1026 = vmax.xlane.f32.xlu0 %v1025_v29  ;;  %v3516_v29 = vld [vmem:[#allocation2 + $0x1b8] sm:$0xff] }
 0xd2f   :  { %1260 = vmatpush.bf16.msrb.mxu3 %v3516_v29 }
 0xd34   :  { %v1023_v30 = vpop.f32.mrf.mxu0 }
 0xda1   :  { %v1027_v31 = vpop.xlane.xlu0 %1026 }
 0xda2   :  { %v1028_v32 = vsub.f32 %v1021_v28, %v1027_v31 }
 0xda4   :  { %v1029_v33 = vmul.f32 1.442695, %v1028_v32 }
 0xda6   :  { %3665 = vpow2.f32 %v1029_v33 }
 0xdac   :  { %v3666_v34 = vpop.eup %3665 }
 0xdad   :  { %v1031_v21 = vsel %vm179_vm2, %v3666_v34, 0.0 }
 0xdae   :  { %1032 = vadd.xlane.f32.xlu0 %v1031_v21  ;;  %v1290_v21 = vperm.slane %v3937_v12, 2 }
 0xdc2   :  { %1076 = vrot.lane.b32.xlu0 %v1072_v23, %s3772_s9  ;;  %v3520_v23 = vld [vmem:[#allocation2 + $0x1d8] sm:$0xff] }
 0xdc3   :  { %1343 = vmatpush.bf16.msrb.mxu2 %v3520_v23 }
 0xdc7   :  { %1344 = vmatpush.bf16.msrb.mxu2 %v3519_v24 }
 0xdcb   :  { %1345 = vmatpush.bf16.msrb.mxu2 %v3518_v26 }
 0xdcf   :  { %1346 = vmatpush.bf16.msrb.mxu2 %v3517_v8 }
 0xdd2   :  { %1347 = vmatmul.bf16.vlgmr.msrb.gmra.mxu2 %v3873_v25 }
 0xe21   :  { %v1033_v9 = vpop.xlane.xlu0 %1032 }
 0xe22   :  { %3667 = vrcp.f32 %v1033_v9  ;;  %v1045_v37 = vand.u32 2147483648, %v1033_v9  ;;  %v1043_v39 = vand.u32 2147483647, %v1033_v9  ;;  %vm1039_vm10 = vweird.f32 %v1033_v9 }
 0xe24   :  { %v1046_v41 = vor.u32 1.1754944e-38, %v1045_v37  ;;  %vm1044_vm12 = vcmp.eq.f32.partialorder %v1043_v39, 8.507059e+37  ;;  %v3514_v37 = vld [vmem:[#allocation2 + $0x1a8] sm:$0xff] }
 0xe28   :  { %v3668_v13 = vpop.eup %3667 }
 0xe29   :  { %v1035_v35 = vmul.f32 %v3668_v13, %v1033_v9  ;;  %vm1040_vm9 = vweird.f32 %v3668_v13 }
 0xe2a   :  { %vm1041_vm11 = vmor %vm1039_vm10, %vm1040_vm9 }
 0xe2b   :  { %v1036_v36 = vsub.f32 1.0, %v1035_v35 }
 0xe2d   :  { %v1037_v38 = vmul.f32 %v3668_v13, %v1036_v36  ;;  %v3515_v36 = vld [vmem:[#allocation2 + $0x1b0] sm:$0xff] }
 0xe2e   :  { %1261 = vmatpush.bf16.msrb.mxu3 %v3515_v36 }
 0xe2f   :  { %v1038_v40 = vadd.f32 %v3668_v13, %v1037_v38 }
 0xe31   :  { %v1042_v42 = vsel %vm1041_vm11, %v3668_v13, %v1038_v40  ;;  %v3513_v40 = vld [vmem:[#allocation2 + $0x1a0] sm:$0xff] }
 0xe32   :  { %v1047_v43 = vsel %vm1044_vm12, %v1046_v41, %v1042_v42  ;;  %1262 = vmatpush.bf16.msrb.mxu3 %v3514_v37  ;;  %v3512_v42 = vld [vmem:[#allocation2 + $0x198] sm:$0xff] }
 0xe33   :  { %v1048_v44 = vmul.f32 %v3666_v34, %v1047_v43  ;;  %v3511_v43 = vld [vmem:[#allocation2 + $0x190] sm:$0xff] }
 0xe34   :  { %v1077_v45 = vpop.permute.xlu0 %1076 }
 0xe35   :  { %v1082_v46 = vsel %vm159_vm1, %v1077_v45, 0  ;;  %3031 = vmatmul.msk.f32.vlgmr.msra.gmra.mxu0 %vm179_vm2, %v1048_v44  ;;  %v3510_v44 = vld [vmem:[#allocation2 + $0x188] sm:$0xff] }
 0xe36   :  { %1091 = vmatpush.bf16.xpose.msrb.mxu0 %v1082_v46  ;;  %1263 = vmatpush.bf16.msrb.mxu3 %v3513_v40  ;;  %v3509_v46 = vld [vmem:[#allocation2 + $0x180] sm:$0xff] }
 0xe3a   :  { %1264 = vmatpush.bf16.msrb.mxu3 %v3512_v42 }
 0xe3d   :  { %3032 = vmatmul.msk.bf16.vlgmr.msrb.gmra.mxu0 %vm159_vm1, %v1075_v47 }
 0xe3e   :  { %1265 = vmatpush.bf16.msrb.mxu3 %v3511_v43 }
 0xe42   :  { %1266 = vmatpush.bf16.msrb.mxu3 %v3510_v44 }
 0xe46   :  { %1267 = vmatpush.bf16.msrb.mxu3 %v3509_v46 }
 0xe55   :  { %v1348_v9 = vpop.f32.mrf.mxu2 }
 0xe56   :  { %v1349_v13 = vadd.f32 %v1348_v9, %v1290_v21 }
 0xe58   :  { %v1353_v35 = vmul.f32 %v3848_v17, %v1349_v13 }
 0xe5a   :  { %1421 = vmatpush.msra.mxu1 %v1353_v35 }
 0xeb2   :  { %v1069_v48 = vpop.f32.mrf.mxu0 }
 0xeb3   :  { %v1144_v49 = vadd.f32 %v1069_v48, %v912_v7  ;;  %v1350_v48 = vpop.f32.mrf.mxu2 }
 0xeb5   :  { %1146 = vadd.xlane.f32.xlu0 %v1144_v49 }
 0xeba   :  { %v1093_v50 = vpop.f32.mrf.mxu0 }
 0xebb   :  { %v1097_v51 = vsel %vm179_vm2, %v1093_v50, -inf }
 0xebc   :  { %1098 = vmax.xlane.f32.xlu1 %v1097_v51 }
 0xec2   :  { %v1095_v52 = vpop.f32.mrf.mxu0 }
 0xec3   :  { %v1351_v52 = vadd.f32 %v1350_v48, %v1290_v21 }
 0xf28   :  { %v1147_v56 = vpop.xlane.xlu0 %1146 }
 0xf29   :  { %v1150_v57 = vmul.f32 0.03125, %v1147_v56 }
 0xf2b   :  { %v1152_v60 = vsub.f32 %v1144_v49, %v1150_v57 }
 0xf2d   :  { %v3956_v62 = vmul.f32 %v3848_v17, %v1152_v60 }
 0xf2f   :  { %v1099_v53 = vpop.xlane.xlu1 %1098  ;;  %v1156_v63 = vmul.f32 %v3956_v62, %v3956_v62 }
 0xf30   :  { %v1100_v54 = vsub.f32 %v1093_v50, %v1099_v53 }
 0xf32   :  { %v1101_v55 = vmul.f32 1.442695, %v1100_v54 }
 0xf34   :  { %3669 = vpow2.f32 %v1101_v55  ;;  %v1354_v55 = vmul.f32 %v3848_v17, %v1351_v52 }
 0xf3a   :  { %v3670_v58 = vpop.eup %3669 }
 0xf3b   :  { %v1103_v61 = vsel %vm179_vm2, %v3670_v58, 0.0 }
 0xf3c   :  { %1104 = vadd.xlane.f32.xlu2 %v1103_v61 }
 0xf44   :  { %1158 = vadd.xlane.f32.xlu2 %v1156_v63 }
 0xfaf   :  { %v1105_v0 = vpop.xlane.xlu2 %1104 }
 0xfb0   :  { %3671 = vrcp.f32 %v1105_v0  ;;  %v1117_v1 = vand.u32 2147483648, %v1105_v0  ;;  %v1115_v6 = vand.u32 2147483647, %v1105_v0  ;;  %vm1111_vm14 = vweird.f32 %v1105_v0 }
 0xfb2   :  { %v1118_v11 = vor.u32 1.1754944e-38, %v1117_v1  ;;  %vm1116_vm0 = vcmp.eq.f32.partialorder %v1115_v6, 8.507059e+37 }
 0xfb6   :  { %v3672_v2 = vpop.eup %3671 }
 0xfb7   :  { %v1107_v3 = vmul.f32 %v3672_v2, %v1105_v0  ;;  %vm1112_vm13 = vweird.f32 %v3672_v2  ;;  %v1159_v38 = vpop.xlane.xlu2 %1158 }
 0xfb8   :  { %vm1113_vm15 = vmor %vm1111_vm14, %vm1112_vm13  ;;  %v1162_v39 = vmul.f32 0.03125, %v1159_v38 }
 0xfb9   :  { %v1108_v4 = vsub.f32 1.0, %v1107_v3 }
 0xfba   :  { %v1164_v41 = vadd.f32 1e-05, %v1162_v39 }
 0xfbb   :  { %v1109_v5 = vmul.f32 %v3672_v2, %v1108_v4 }
 0xfbc   :  { %3673 = vrsqrt.f32 %v1164_v41  ;;  %vm1172_vm4 = vweird.f32 %v1164_v41 }
 0xfbd   :  { %v1110_v7 = vadd.f32 %v3672_v2, %v1109_v5  ;;  %v1188_v5 = vperm.slane %v3937_v12, 5 }
 0xfbf   :  { %v1114_v14 = vsel %vm1113_vm15, %v3672_v2, %v1110_v7 }
 0xfc0   :  { %v1119_v15 = vsel %vm1116_vm0, %v1118_v11, %v1114_v14 }
 0xfc1   :  { %v1120_v18 = vmul.f32 %v3670_v58, %v1119_v15  ;;  %v1191_v15 = vperm.slane %v3937_v12, 6 }
 0xfc2   :  { %v3674_v45 = vpop.eup %3673 }
 0xfc3   :  { %3033 = vmatmul.msk.f32.vlgmr.msrb.gmra.mxu1 %vm179_vm2, %v1120_v18  ;;  %v1167_v47 = vmul.f32 %v3674_v45, %v1164_v41  ;;  %vm1173_vm3 = vweird.f32 %v3674_v45 }
 0xfc4   :  { %vm1174_vm5 = vmor %vm1172_vm4, %vm1173_vm3 }
 0xfc5   :  { %v1168_v50 = vmul.f32 %v3674_v45, %v1167_v47 }
 0xfc7   :  { %v1169_v57 = vmul.f32 0.5, %v1168_v50 }
 0xfc9   :  { %v1170_v58 = vsub.f32 1.5, %v1169_v57 }
 0xfcb   :  { %v1171_v61 = vmul.f32 %v3674_v45, %v1170_v58 }
 0xfcd   :  { %v1175_v2 = vsel %vm1174_vm5, %v3674_v45, %v1171_v61 }
 0xfce   :  { %v1186_v1 = vmul.f32 %v1175_v2, %v3956_v62 }
 0xfd0   :  { %v1189_v14 = vmul.f32 %v1188_v5, %v1186_v1 }
 0xfd2   :  { %v1192_v19 = vadd.f32 %v1191_v15, %v1189_v14 }
0x1040   :  { %v1141_v27 = vpop.f32.mrf.mxu1 }
0x1041   :  { %v1145_v28 = vadd.f32 %v1141_v27, %v3931_v10  ;;  %v1356_v10 = vpack.c.bf16 %v1349_v13, %v1349_v13 }
0x1043   :  { %1148 = vadd.xlane.f32.xlu1 %v1145_v28  ;;  %1358 = vrot.lane.b32.xlu2 %v1356_v10, %s3776_s17 }
0x109d   :  { %v1359_v49 = vpop.permute.xlu2 %1358 }
0x109e   :  { %v1364_v53 = vsel %vm159_vm1, %v1359_v49, 0 }
0x109f   :  { %1373 = vmatpush.bf16.xpose.msra.mxu0 %v1364_v53 }
0x10a7   :  { %1492 = vmatpush.msrb.mxu0 %v1354_v55 }
0x10b6   :  { %v1149_v30 = vpop.xlane.xlu1 %1148 }
0x10b7   :  { %v1151_v31 = vmul.f32 0.03125, %v1149_v30 }
0x10b9   :  { %v1153_v32 = vsub.f32 %v1145_v28, %v1151_v31  ;;  %v1427_v28 = vpack.c.bf16 %v1351_v52, %v1351_v52 }
0x10bb   :  { %v1155_v33 = vmul.f32 %v3848_v17, %v1153_v32 }
0x10bd   :  { %v1157_v34 = vmul.f32 %v1155_v33, %v1155_v33 }
0x10bf   :  { %1160 = vadd.xlane.f32.xlu1 %v1157_v34 }
0x1132   :  { %v1161_v51 = vpop.xlane.xlu1 %1160 }
0x1133   :  { %v1163_v54 = vmul.f32 0.03125, %v1161_v51 }
0x1135   :  { %v1165_v56 = vadd.f32 1e-05, %v1163_v54 }
0x1137   :  { %3675 = vrsqrt.f32 %v1165_v56  ;;  %vm1182_vm7 = vweird.f32 %v1165_v56 }
0x113d   :  { %v3676_v60 = vpop.eup %3675 }
0x113e   :  { %v1177_v63 = vmul.f32 %v3676_v60, %v1165_v56  ;;  %vm1183_vm6 = vweird.f32 %v3676_v60 }
0x113f   :  { %vm1184_vm8 = vmor %vm1182_vm7, %vm1183_vm6 }
0x1140   :  { %v1178_v0 = vmul.f32 %v3676_v60, %v1177_v63 }
0x1142   :  { %v1179_v3 = vmul.f32 0.5, %v1178_v0 }
0x1144   :  { %v1180_v4 = vsub.f32 1.5, %v1179_v3 }
0x1146   :  { %v1181_v6 = vmul.f32 %v3676_v60, %v1180_v4 }
0x1148   :  { %v1185_v7 = vsel %vm1184_vm8, %v3676_v60, %v1181_v6 }
0x1149   :  { %v1187_v11 = vmul.f32 %v1185_v7, %v1155_v33 }
0x114b   :  { %v1190_v18 = vmul.f32 %v1188_v5, %v1187_v11 }
0x114d   :  { %v3972_v59 = vadd.f32 %v1191_v15, %v1190_v18 }
0x114f   :  { %v1210_v20 = vpack.c.bf16 %v3972_v59, %v1192_v19 }
0x1151   :  { %1268 = vmatmul.bf16.vlgmr.msrb.gmra.mxu3 %v1210_v20 }
0x11d4   :  { %v1269_v62 = vpop.f32.mrf.mxu3 }
0x11d5   :  { %v1270_v23 = vadd.f32 %v1269_v62, %v1211_v22 }
0x11d7   :  { %v1355_v24 = vpack.c.bf16 %v1270_v23, %v1270_v23 }
0x11d9   :  { %3098 = vmatmul.msk.bf16.vlgmr.msra.gmra.mxu0 %vm159_vm1, %v1355_v24 }
0x11dc   :  { %v1271_v44 = vpop.f32.mrf.mxu3 }
0x11dd   :  { %v1272_v45 = vadd.f32 %v1271_v44, %v1211_v22  ;;  %v3532_v22 = vld [vmem:[#allocation2 + $0x238] sm:$0xff] }
0x11df   :  { %v1426_v46 = vpack.c.bf16 %v1272_v45, %v1272_v45 }
0x1256   :  { %v1375_v26 = vpop.f32.mrf.mxu0 }
0x1257   :  { %v1379_v8 = vsel %vm179_vm2, %v1375_v26, -inf }
0x1258   :  { %1380 = vmax.xlane.f32.xlu1 %v1379_v8 }
0x125e   :  { %v1377_v27 = vpop.f32.mrf.mxu0 }
0x125f   :  { %v3531_v27 = vld [vmem:[#allocation2 + $0x230] sm:$0xff] }
0x1271   :  { %1429 = vrot.lane.b32.xlu1 %v1427_v28, %s3776_s17  ;;  %v3530_v28 = vld [vmem:[#allocation2 + $0x228] sm:$0xff] }
0x12cb   :  { %v1381_v29 = vpop.xlane.xlu1 %1380 }
0x12cc   :  { %v1382_v30 = vsub.f32 %v1375_v26, %v1381_v29 }
0x12ce   :  { %v1383_v31 = vmul.f32 1.442695, %v1382_v30  ;;  %v3529_v30 = vld [vmem:[#allocation2 + $0x220] sm:$0xff] }
0x12d0   :  { %3677 = vpow2.f32 %v1383_v31 }
0x12d6   :  { %v3678_v32 = vpop.eup %3677 }
0x12d7   :  { %v1385_v33 = vsel %vm179_vm2, %v3678_v32, 0.0 }
0x12d8   :  { %1386 = vadd.xlane.f32.xlu0 %v1385_v33  ;;  %v3527_v33 = vld [vmem:[#allocation2 + $0x210] sm:$0xff] }
0x12e3   :  { %v1430_v34 = vpop.permute.xlu1 %1429 }
0x12e4   :  { %v1435_v21 = vsel %vm159_vm1, %v1430_v34, 0  ;;  %v3526_v34 = vld [vmem:[#allocation2 + $0x208] sm:$0xff] }
0x12e5   :  { %1444 = vmatpush.bf16.xpose.msrb.mxu1 %v1435_v21 }
0x134b   :  { %v1387_v9 = vpop.xlane.xlu0 %1386 }
0x134c   :  { %3679 = vrcp.f32 %v1387_v9  ;;  %v1399_v36 = vand.u32 2147483648, %v1387_v9  ;;  %v1397_v38 = vand.u32 2147483647, %v1387_v9  ;;  %vm1393_vm10 = vweird.f32 %v1387_v9 }
0x134e   :  { %v1400_v40 = vor.u32 1.1754944e-38, %v1399_v36  ;;  %vm1398_vm12 = vcmp.eq.f32.partialorder %v1397_v38, 8.507059e+37  ;;  %v3539_v38 = vld [vmem:[#allocation2 + $0x270] sm:$0xff] }
0x1352   :  { %v3680_v13 = vpop.eup %3679 }
0x1353   :  { %v1389_v35 = vmul.f32 %v3680_v13, %v1387_v9  ;;  %vm1394_vm9 = vweird.f32 %v3680_v13  ;;  %v3525_v9 = vld [vmem:[#allocation2 + $0x200] sm:$0xff] }
0x1354   :  { %vm1395_vm11 = vmor %vm1393_vm10, %vm1394_vm9 }
0x1355   :  { %v1390_v10 = vsub.f32 1.0, %v1389_v35  ;;  %v3540_v35 = vld [vmem:[#allocation2 + $0x278] sm:$0xff] }
0x1356   :  { %1695 = vmatpush.bf16.msra.mxu3 %v3540_v35  ;;  %v3545_v35 = vld [vmem:[#allocation4 + $0x20] sm:$0xff] }
0x1357   :  { %v1391_v37 = vmul.f32 %v3680_v13, %v1390_v10 }
0x1359   :  { %v1392_v39 = vadd.f32 %v3680_v13, %v1391_v37 }
0x135a   :  { %1696 = vmatpush.bf16.msra.mxu3 %v3539_v38  ;;  %v3541_v38 = vld [vmem:[#allocation4] sm:$0xff] }
0x135b   :  { %v1396_v41 = vsel %vm1395_vm11, %v3680_v13, %v1392_v39 }
0x135c   :  { %v1401_v42 = vsel %vm1398_vm12, %v1400_v40, %v1396_v41  ;;  %v3538_v41 = vld [vmem:[#allocation2 + $0x268] sm:$0xff] }
0x135d   :  { %v1402_v43 = vmul.f32 %v3678_v32, %v1401_v42  ;;  %v3528_v32 = vld [vmem:[#allocation2 + $0x218] sm:$0xff] }
0x135e   :  { %1697 = vmatpush.bf16.msra.mxu3 %v3538_v41 }
0x135f   :  { %3099 = vmatmul.msk.f32.vlgmr.msra.gmra.mxu1 %vm179_vm2, %v1402_v43  ;;  %v3537_v43 = vld [vmem:[#allocation2 + $0x260] sm:$0xff] }
0x1360   :  { %1613 = vmatpush.bf16.msra.mxu1 %v3532_v22 }
0x1362   :  { %1698 = vmatpush.bf16.msra.mxu3 %v3537_v43  ;;  %v3577_v43 = vld [vmem:[#allocation4 + $0x120] sm:$0xff] }
0x1364   :  { %1614 = vmatpush.bf16.msra.mxu1 %v3531_v27  ;;  %v3548_v27 = vld [vmem:[#allocation4 + $0x38] sm:$0xff] }
0x1365   :  { %1827 = vmatpush.bf16.msra.mxu2 %v3548_v27  ;;  %v3550_v27 = vld [vmem:[#allocation4 + $0x48] sm:$0xff] }
0x1367   :  { %3100 = vmatmul.msk.bf16.vlgmr.msrb.gmra.mxu1 %vm159_vm1, %v1426_v46 }
0x1368   :  { %1615 = vmatpush.bf16.msra.mxu1 %v3530_v28  ;;  %v3547_v28 = vld [vmem:[#allocation4 + $0x30] sm:$0xff] }
0x1369   :  { %1828 = vmatpush.bf16.msra.mxu2 %v3547_v28  ;;  %v3549_v28 = vld [vmem:[#allocation4 + $0x40] sm:$0xff] }
0x136c   :  { %1616 = vmatpush.bf16.msra.mxu1 %v3529_v30 }
0x1370   :  { %1617 = vmatpush.bf16.msra.mxu1 %v3528_v32 }
0x1374   :  { %1618 = vmatpush.bf16.msra.mxu1 %v3527_v33 }
0x1378   :  { %1619 = vmatpush.bf16.msra.mxu1 %v3526_v34 }
0x137c   :  { %1620 = vmatpush.bf16.msra.mxu1 %v3525_v9 }
0x13dc   :  { %v1423_v47 = vpop.f32.mrf.mxu1 }
0x13dd   :  { %v1497_v48 = vadd.f32 %v1423_v47, %v1192_v19 }
0x13df   :  { %1499 = vadd.xlane.f32.xlu2 %v1497_v48 }
0x13e4   :  { %v1446_v49 = vpop.f32.mrf.mxu1 }
0x13e5   :  { %v1450_v50 = vsel %vm179_vm2, %v1446_v49, -inf }
0x13e6   :  { %1451 = vmax.xlane.f32.xlu0 %v1450_v50 }
0x13ec   :  { %v1448_v51 = vpop.f32.mrf.mxu1 }
0x1452   :  { %v1500_v7 = vpop.xlane.xlu2 %1499 }
0x1453   :  { %v1503_v11 = vmul.f32 0.03125, %v1500_v7 }
0x1455   :  { %v1505_v15 = vsub.f32 %v1497_v48, %v1503_v11 }
0x1457   :  { %v1507_v19 = vmul.f32 %v3848_v17, %v1505_v15 }
0x1459   :  { %v1452_v52 = vpop.xlane.xlu0 %1451  ;;  %v1509_v20 = vmul.f32 %v1507_v19, %v1507_v19 }
0x145a   :  { %v1453_v53 = vsub.f32 %v1446_v49, %v1452_v52  ;;  %v1541_v52 = vperm.slane %v3937_v12, 7 }
0x145c   :  { %v1454_v54 = vmul.f32 1.442695, %v1453_v53 }
0x145e   :  { %3681 = vpow2.f32 %v1454_v54  ;;  %v3993_v54 = vld [vmem:[%s4065_s4 + $0x18] sm:$0xff] }
0x1464   :  { %v3682_v55 = vpop.eup %3681 }
0x1465   :  { %v1456_v56 = vsel %vm179_vm2, %v3682_v55, 0.0 }
0x1466   :  { %1457 = vadd.xlane.f32.xlu0 %v1456_v56 }
0x14d9   :  { %v1458_v57 = vpop.xlane.xlu0 %1457 }
0x14da   :  { %3683 = vrcp.f32 %v1458_v57  ;;  %v1470_v63 = vand.u32 2147483648, %v1458_v57  ;;  %v1468_v2 = vand.u32 2147483647, %v1458_v57  ;;  %vm1464_vm13 = vweird.f32 %v1458_v57 }
0x14dc   :  { %v1471_v4 = vor.u32 1.1754944e-38, %v1470_v63  ;;  %vm1469_vm15 = vcmp.eq.f32.partialorder %v1468_v2, 8.507059e+37  ;;  %v3536_v2 = vld [vmem:[#allocation2 + $0x258] sm:$0xff] }
0x14dd   :  { %1699 = vmatpush.bf16.msra.mxu3 %v3536_v2 }
0x14e0   :  { %v3684_v58 = vpop.eup %3683 }
0x14e1   :  { %v1460_v60 = vmul.f32 %v3684_v58, %v1458_v57  ;;  %vm1465_vm1 = vweird.f32 %v3684_v58 }
0x14e2   :  { %vm1466_vm14 = vmor %vm1464_vm13, %vm1465_vm1 }
0x14e3   :  { %v1461_v61 = vsub.f32 1.0, %v1460_v60 }
0x14e5   :  { %v1462_v0 = vmul.f32 %v3684_v58, %v1461_v61 }
0x14e7   :  { %v1463_v3 = vadd.f32 %v3684_v58, %v1462_v0 }
0x14e9   :  { %v1467_v1 = vsel %vm1466_vm14, %v3684_v58, %v1463_v3  ;;  %v1544_v58 = vperm.slane %v3993_v54, 0  ;;  %v3535_v3 = vld [vmem:[#allocation2 + $0x250] sm:$0xff] }
0x14ea   :  { %v1472_v5 = vsel %vm1469_vm15, %v1471_v4, %v1467_v1  ;;  %1700 = vmatpush.bf16.msra.mxu3 %v3535_v3  ;;  %v3534_v4 = vld [vmem:[#allocation2 + $0x248] sm:$0xff]  ;;  %v3533_v1 = vld [vmem:[#allocation2 + $0x240] sm:$0xff] }
0x14eb   :  { %v1473_v6 = vmul.f32 %v3682_v55, %v1472_v5 }
0x14ed   :  { %3101 = vmatmul.msk.f32.vlgmr.msrb.gmra.mxu0 %vm179_vm2, %v1473_v6  ;;  %v1564_v6 = vperm.slane %v3937_v12, 3 }
0x14ee   :  { %1701 = vmatpush.bf16.msra.mxu3 %v3534_v4  ;;  %v3555_v4 = vld [vmem:[#allocation4 + $0x70] sm:$0xff] }
0x14f2   :  { %1702 = vmatpush.bf16.msra.mxu3 %v3533_v1 }
0x156a   :  { %v1494_v14 = vpop.f32.mrf.mxu0 }
0x156b   :  { %v1498_v18 = vadd.f32 %v1494_v14, %v3972_v59 }
0x156d   :  { %1501 = vadd.xlane.f32.xlu0 %v1498_v18 }
0x1575   :  { %1511 = vadd.xlane.f32.xlu0 %v1509_v20  ;;  %v1646_v20 = vperm.slane %v3937_v12, 4 }
0x15e0   :  { %v1502_v62 = vpop.xlane.xlu0 %1501 }
0x15e1   :  { %v1504_v23 = vmul.f32 0.03125, %v1502_v62 }
0x15e3   :  { %v1506_v24 = vsub.f32 %v1498_v18, %v1504_v23 }
0x15e5   :  { %v1508_v26 = vmul.f32 %v3848_v17, %v1506_v24 }
0x15e7   :  { %v1510_v8 = vmul.f32 %v1508_v26, %v1508_v26 }
0x15e8   :  { %v1512_v29 = vpop.xlane.xlu0 %1511 }
0x15e9   :  { %1513 = vadd.xlane.f32.xlu1 %v1510_v8  ;;  %v1515_v59 = vmul.f32 0.03125, %v1512_v29 }
0x15eb   :  { %v1517_v31 = vadd.f32 1e-05, %v1515_v59 }
0x15ed   :  { %3685 = vrsqrt.f32 %v1517_v31  ;;  %vm1525_vm3 = vweird.f32 %v1517_v31 }
0x15f3   :  { %v3686_v21 = vpop.eup %3685 }
0x15f4   :  { %v1520_v13 = vmul.f32 %v3686_v21, %v1517_v31  ;;  %vm1526_vm0 = vweird.f32 %v3686_v21 }
0x15f5   :  { %vm1527_vm4 = vmor %vm1525_vm3, %vm1526_vm0 }
0x15f6   :  { %v1521_v10 = vmul.f32 %v3686_v21, %v1520_v13  ;;  %v3546_v13 = vld [vmem:[#allocation4 + $0x28] sm:$0xff] }
0x15f7   :  { %1829 = vmatpush.bf16.msra.mxu2 %v3546_v13  ;;  %v3563_v13 = vld [vmem:[#allocation4 + $0xb0] sm:$0xff] }
0x15f8   :  { %v1522_v40 = vmul.f32 0.5, %v1521_v10  ;;  %v3544_v10 = vld [vmem:[#allocation4 + $0x18] sm:$0xff] }
0x15fa   :  { %v1523_v42 = vsub.f32 1.5, %v1522_v40  ;;  %v3578_v40 = vld [vmem:[#allocation4 + $0x128] sm:$0xff] }
0x15fb   :  { %1830 = vmatpush.bf16.msra.mxu2 %v3545_v35 }
0x15fc   :  { %v1524_v45 = vmul.f32 %v3686_v21, %v1523_v42 }
0x15fe   :  { %v1528_v48 = vsel %vm1527_vm4, %v3686_v21, %v1524_v45  ;;  %v3576_v45 = vld [vmem:[#allocation4 + $0x118] sm:$0xff] }
0x15ff   :  { %v1539_v51 = vmul.f32 %v1528_v48, %v1507_v19  ;;  %1831 = vmatpush.bf16.msra.mxu2 %v3544_v10  ;;  %v3575_v48 = vld [vmem:[#allocation4 + $0x110] sm:$0xff]  ;;  %v3562_v10 = vld [vmem:[#allocation4 + $0xa8] sm:$0xff] }
0x1601   :  { %v1542_v57 = vmul.f32 %v1541_v52, %v1539_v51 }
0x1603   :  { %v1545_v61 = vadd.f32 %v1544_v58, %v1542_v57 }
0x165c   :  { %v1514_v36 = vpop.xlane.xlu1 %1513 }
0x165d   :  { %v1516_v37 = vmul.f32 0.03125, %v1514_v36  ;;  %v3543_v36 = vld [vmem:[#allocation4 + $0x10] sm:$0xff] }
0x165e   :  { %1832 = vmatpush.bf16.msra.mxu2 %v3543_v36 }
0x165f   :  { %v1518_v39 = vadd.f32 1e-05, %v1516_v37  ;;  %v3542_v37 = vld [vmem:[#allocation4 + $0x8] sm:$0xff] }
0x1661   :  { %3687 = vrsqrt.f32 %v1518_v39  ;;  %vm1535_vm6 = vweird.f32 %v1518_v39 }
0x1662   :  { %1833 = vmatpush.bf16.msra.mxu2 %v3542_v37 }
0x1666   :  { %1834 = vmatpush.bf16.msra.mxu2 %v3541_v38 }
0x1667   :  { %v3688_v44 = vpop.eup %3687 }
0x1668   :  { %v1530_v46 = vmul.f32 %v3688_v44, %v1518_v39  ;;  %vm1536_vm5 = vweird.f32 %v3688_v44  ;;  %v3580_v39 = vld [vmem:[#allocation4 + $0x138] sm:$0xff] }
0x1669   :  { %vm1537_vm7 = vmor %vm1535_vm6, %vm1536_vm5  ;;  %vm1945_vm5 = vcmask 1040384  }
0x166a   :  { %v1531_v47 = vmul.f32 %v3688_v44, %v1530_v46  ;;  %2193 = vmatpush.bf16.msrb.mxu2 %v3580_v39  ;;  %v3561_v39 = vld [vmem:[#allocation4 + $0xa0] sm:$0xff] }
0x166c   :  { %v1532_v49 = vmul.f32 0.5, %v1531_v47 }
0x166e   :  { %v1533_v50 = vsub.f32 1.5, %v1532_v49 }
0x1670   :  { %v1534_v53 = vmul.f32 %v3688_v44, %v1533_v50 }
0x1672   :  { %v1538_v55 = vsel %vm1537_vm7, %v3688_v44, %v1534_v53 }
0x1673   :  { %v1540_v56 = vmul.f32 %v1538_v55, %v1508_v26 }
0x1675   :  { %v1543_v60 = vmul.f32 %v1541_v52, %v1540_v56  ;;  %v3574_v52 = vld [vmem:[#allocation4 + $0x108] sm:$0xff]  ;;  %v3573_v56 = vld [vmem:[#allocation4 + $0x100] sm:$0xff] }
0x1677   :  { %v1546_v63 = vadd.f32 %v1544_v58, %v1543_v60 }
0x1679   :  { %v1563_v0 = vpack.c.bf16 %v1546_v63, %v1545_v61 }
0x167b   :  { %1621 = vmatmul.bf16.vlgmr.msra.gmra.mxu1 %v1563_v0  ;;  %v3556_v0 = vld [vmem:[#allocation4 + $0x78] sm:$0xff] }
0x167c   :  { %1913 = vmatpush.bf16.msra.mxu0 %v3556_v0  ;;  %v3594_v0 = vld [vmem:[#allocation4 + $0x1a8] sm:$0xff] }
0x1680   :  { %1914 = vmatpush.bf16.msra.mxu0 %v3555_v4  ;;  %v3592_v4 = vld [vmem:[#allocation4 + $0x198] sm:$0xff] }
0x16f8   :  { %v1622_v5 = vpop.f32.mrf.mxu1 }
0x16f9   :  { %v1623_v7 = vadd.f32 %v1622_v5, %v1564_v6 }
0x16fb   :  { %v1627_v15 = vmax.f32 %v1623_v7, 0.0 }
0x1700   :  { %v1624_v11 = vpop.f32.mrf.mxu1 }
0x1701   :  { %v1625_v14 = vadd.f32 %v1624_v11, %v1564_v6  ;;  %v1753_v6 = vperm.slane %v3993_v54, 1  ;;  %v3554_v11 = vld [vmem:[#allocation4 + $0x68] sm:$0xff] }
0x1702   :  { %1915 = vmatpush.bf16.msra.mxu0 %v3554_v11  ;;  %v3590_v11 = vld [vmem:[#allocation4 + $0x188] sm:$0xff] }
0x1703   :  { %v1628_v18 = vmax.f32 %v1625_v14, 0.0 }
0x1705   :  { %v1645_v19 = vpack.c.bf16 %v1628_v18, %v1627_v15 }
0x1707   :  { %1703 = vmatmul.bf16.vlgmr.msra.gmra.mxu3 %v1645_v19  ;;  %v1756_v19 = vperm.slane %v3993_v54, 2  ;;  %v3587_v54 = vld [vmem:[#allocation4 + $0x170] sm:$0xff] }
0x178a   :  { %v1704_v22 = vpop.f32.mrf.mxu3 }
0x178b   :  { %v1705_v62 = vadd.f32 %v1704_v22, %v1646_v20  ;;  %v3553_v22 = vld [vmem:[#allocation4 + $0x60] sm:$0xff] }
0x178c   :  { %1916 = vmatpush.bf16.msra.mxu0 %v3553_v22 }
0x178d   :  { %v1709_v23 = vadd.f32 %v1705_v62, %v1545_v61 }
0x178f   :  { %1711 = vadd.xlane.f32.xlu0 %v1709_v23 }
0x1792   :  { %v1706_v24 = vpop.f32.mrf.mxu3 }
0x1793   :  { %v1707_v26 = vadd.f32 %v1706_v24, %v1646_v20 }
0x1795   :  { %v1710_v8 = vadd.f32 %v1707_v26, %v1546_v63  ;;  %v3552_v26 = vld [vmem:[#allocation4 + $0x58] sm:$0xff] }
0x1796   :  { %1917 = vmatpush.bf16.msra.mxu0 %v3552_v26  ;;  %v3572_v26 = vld [vmem:[#allocation4 + $0xf8] sm:$0xff] }
0x1797   :  { %1713 = vadd.xlane.f32.xlu0 %v1710_v8  ;;  %2095 = vmatpush.bf16.msrb.mxu3 %v3572_v26  ;;  %v3606_v26 = vld [vmem:[#allocation4 + $0x208] sm:$0xff] }
0x1802   :  { %v1712_v29 = vpop.xlane.xlu0 %1711 }
0x1803   :  { %v1715_v59 = vmul.f32 0.03125, %v1712_v29  ;;  %v3588_v29 = vld [vmem:[#allocation4 + $0x178] sm:$0xff] }
0x1805   :  { %v1717_v30 = vsub.f32 %v1709_v23, %v1715_v59  ;;  %v3586_v59 = vld [vmem:[#allocation4 + $0x168] sm:$0xff] }
0x1807   :  { %v3999_v31 = vmul.f32 %v3848_v17, %v1717_v30  ;;  %v3585_v30 = vld [vmem:[#allocation4 + $0x160] sm:$0xff] }
0x1809   :  { %v1721_v12 = vmul.f32 %v3999_v31, %v3999_v31 }
0x180a   :  { %v1714_v32 = vpop.xlane.xlu0 %1713 }
0x180b   :  { %v1716_v33 = vmul.f32 0.03125, %v1714_v32  ;;  %1723 = vadd.xlane.f32.xlu0 %v1721_v12  ;;  %v3583_v12 = vld [vmem:[#allocation4 + $0x150] sm:$0xff]  ;;  %v3582_v32 = vld [vmem:[#allocation4 + $0x148] sm:$0xff] }
0x180d   :  { %v1718_v34 = vsub.f32 %v1710_v8, %v1716_v33  ;;  %v3551_v8 = vld [vmem:[#allocation4 + $0x50] sm:$0xff]  ;;  %v3581_v33 = vld [vmem:[#allocation4 + $0x140] sm:$0xff] }
0x180e   :  { %1918 = vmatpush.bf16.msra.mxu0 %v3551_v8 }
0x180f   :  { %v4004_v21 = vmul.f32 %v3848_v17, %v1718_v34  ;;  %v3579_v17 = vld [vmem:[#allocation4 + $0x130] sm:$0xff] }
0x1810   :  { %2194 = vmatpush.bf16.msrb.mxu2 %v3579_v17 }
0x1811   :  { %v1722_v9 = vmul.f32 %v4004_v21, %v4004_v21 }
0x1812   :  { %1919 = vmatpush.bf16.msra.mxu0 %v3550_v27  ;;  %v3571_v27 = vld [vmem:[#allocation4 + $0xf0] sm:$0xff] }
0x1813   :  { %1725 = vadd.xlane.f32.xlu2 %v1722_v9  ;;  %2096 = vmatpush.bf16.msrb.mxu3 %v3571_v27 }
0x1814   :  { %2195 = vmatpush.bf16.msrb.mxu2 %v3578_v40 }
0x1816   :  { %1920 = vmatpush.bf16.msra.mxu0 %v3549_v28 }
0x1818   :  { %2196 = vmatpush.bf16.msrb.mxu2 %v3577_v43 }
0x181a   :  { %2279 = vmatpush.bf16.msrb.mxu0 %v3588_v29 }
0x181c   :  { %2197 = vmatpush.bf16.msrb.mxu2 %v3576_v45  ;;  %v3717_v45 = vld [vmem:[%s4061_s0] sm:$0xff] }
0x181e   :  { %2280 = vmatpush.bf16.msrb.mxu0 %v3587_v54 }
0x1820   :  { %2198 = vmatpush.bf16.msrb.mxu2 %v3575_v48 }
0x1822   :  { %2281 = vmatpush.bf16.msrb.mxu0 %v3586_v59 }
0x1824   :  { %2199 = vmatpush.bf16.msrb.mxu2 %v3574_v52 }
0x1826   :  { %2282 = vmatpush.bf16.msrb.mxu0 %v3585_v30  ;;  %v3570_v30 = vld [vmem:[#allocation4 + $0xe8] sm:$0xff] }
0x1827   :  { %2097 = vmatpush.bf16.msrb.mxu3 %v3570_v30 }
0x1828   :  { %2200 = vmatpush.bf16.msrb.mxu2 %v3573_v56  ;;  %v3560_v56 = vld [vmem:[#allocation4 + $0x98] sm:$0xff] }
0x187e   :  { %v1724_v41 = vpop.xlane.xlu0 %1723 }
0x187f   :  { %v1727_v42 = vmul.f32 0.03125, %v1724_v41 }
0x1881   :  { %v1729_v44 = vadd.f32 1e-05, %v1727_v42 }
0x1883   :  { %3689 = vrsqrt.f32 %v1729_v44  ;;  %vm1737_vm9 = vweird.f32 %v1729_v44 }
0x1886   :  { %v1726_v46 = vpop.xlane.xlu2 %1725 }
0x1887   :  { %v1728_v47 = vmul.f32 0.03125, %v1726_v46 }
0x1889   :  { %v3690_v49 = vpop.eup %3689  ;;  %v1730_v50 = vadd.f32 1e-05, %v1728_v47 }
0x188a   :  { %v1732_v51 = vmul.f32 %v3690_v49, %v1729_v44  ;;  %vm1738_vm8 = vweird.f32 %v3690_v49 }
0x188b   :  { %3691 = vrsqrt.f32 %v1730_v50  ;;  %vm1739_vm10 = vmor %vm1737_vm9, %vm1738_vm8  ;;  %vm1747_vm12 = vweird.f32 %v1730_v50 }
0x188c   :  { %v1733_v53 = vmul.f32 %v3690_v49, %v1732_v51 }
0x188e   :  { %v1734_v55 = vmul.f32 0.5, %v1733_v53 }
0x1890   :  { %v1735_v57 = vsub.f32 1.5, %v1734_v55  ;;  %v3718_v55 = vld [vmem:[%s4061_s0 + $0x8] sm:$0xff] }
0x1891   :  { %v3692_v58 = vpop.eup %3691 }
0x1892   :  { %v1736_v60 = vmul.f32 %v3690_v49, %v1735_v57  ;;  %v1742_v61 = vmul.f32 %v3692_v58, %v1730_v50  ;;  %vm1748_vm11 = vweird.f32 %v3692_v58  ;;  %v3559_v57 = vld [vmem:[#allocation4 + $0x90] sm:$0xff] }
0x1893   :  { %vm1749_vm1 = vmor %vm1747_vm12, %vm1748_vm11 }
0x1894   :  { %v1743_v63 = vmul.f32 %v3692_v58, %v1742_v61  ;;  %v1740_v2 = vsel %vm1739_vm10, %v3690_v49, %v1736_v60  ;;  %v3557_v60 = vld [vmem:[#allocation4 + $0x80] sm:$0xff]  ;;  %v3596_v61 = vld [vmem:[#allocation4 + $0x1b8] sm:$0xff] }
0x1895   :  { %v1751_v5 = vmul.f32 %v1740_v2, %v3999_v31  ;;  %v3584_v31 = vld [vmem:[#allocation4 + $0x158] sm:$0xff]  ;;  %v3593_v2 = vld [vmem:[#allocation4 + $0x1a0] sm:$0xff] }
0x1896   :  { %v1744_v3 = vmul.f32 0.5, %v1743_v63  ;;  %2283 = vmatpush.bf16.msrb.mxu0 %v3584_v31  ;;  %v3595_v63 = vld [vmem:[#allocation4 + $0x1b0] sm:$0xff] }
0x1897   :  { %v1754_v18 = vmul.f32 %v1753_v6, %v1751_v5 }
0x1898   :  { %v1745_v1 = vsub.f32 1.5, %v1744_v3 }
0x1899   :  { %v1757_v62 = vadd.f32 %v1756_v19, %v1754_v18  ;;  %v3589_v18 = vld [vmem:[#allocation4 + $0x180] sm:$0xff] }
0x189a   :  { %v1746_v7 = vmul.f32 %v3692_v58, %v1745_v1  ;;  %2284 = vmatpush.bf16.msrb.mxu0 %v3583_v12  ;;  %v3591_v1 = vld [vmem:[#allocation4 + $0x190] sm:$0xff] }
0x189c   :  { %v1750_v14 = vsel %vm1749_vm1, %v3692_v58, %v1746_v7  ;;  %v3558_v58 = vld [vmem:[#allocation4 + $0x88] sm:$0xff] }
0x189d   :  { %v1752_v15 = vmul.f32 %v1750_v14, %v4004_v21  ;;  %v3564_v21 = vld [vmem:[#allocation4 + $0xb8] sm:$0xff] }
0x189e   :  { %2285 = vmatpush.bf16.msrb.mxu0 %v3582_v32  ;;  %2013 = vmatpush.bf16.msrb.mxu1 %v3564_v21 }
0x189f   :  { %v1755_v20 = vmul.f32 %v1753_v6, %v1752_v15 }
0x18a1   :  { %v1758_v23 = vadd.f32 %v1756_v19, %v1755_v20 }
0x18a2   :  { %2286 = vmatpush.bf16.msrb.mxu0 %v3581_v33  ;;  %2014 = vmatpush.bf16.msrb.mxu1 %v3563_v13  ;;  %v3569_v33 = vld [vmem:[#allocation4 + $0xe0] sm:$0xff] }
0x18a3   :  { %v1777_v24 = vpack.c.bf16 %v1758_v23, %v1757_v62  ;;  %2098 = vmatpush.bf16.msrb.mxu3 %v3569_v33 }
0x18a5   :  { %1835 = vmatmul.bf16.vlgmr.msra.gmra.mxu2 %v1777_v24 }
0x18a6   :  { %2015 = vmatpush.bf16.msrb.mxu1 %v3562_v10 }
0x18aa   :  { %2016 = vmatpush.bf16.msrb.mxu1 %v3561_v39 }
0x18ae   :  { %2017 = vmatpush.bf16.msrb.mxu1 %v3560_v56 }
0x18b2   :  { %2018 = vmatpush.bf16.msrb.mxu1 %v3559_v57 }
0x18b5   :  { %2201 = vmatmul.bf16.vlgmr.msrb.gmra.mxu2 %v3873_v25  ;;  %v4016_v25 = vld [vmem:[%s4067_s6] sm:$0xff] }
0x18b6   :  { %v1778_v9 = vperm.slane %v4016_v25, 0  ;;  %v2144_v43 = vperm.slane %v4016_v25, 4  ;;  %2019 = vmatpush.bf16.msrb.mxu1 %v3558_v58  ;;  %v1864_v3 = vperm.slane %v4016_v25, 1 }
0x18ba   :  { %2020 = vmatpush.bf16.msrb.mxu1 %v3557_v60 }
0x18be   :  { %2365 = vmatpush.bf16.msra.mxu1 %v3596_v61 }
0x18c2   :  { %2366 = vmatpush.bf16.msra.mxu1 %v3595_v63 }
0x18c6   :  { %2367 = vmatpush.bf16.msra.mxu1 %v3594_v0 }
0x18ca   :  { %2368 = vmatpush.bf16.msra.mxu1 %v3593_v2  ;;  %v2316_v2 = vperm.slane %v4016_v25, 6 }
0x18ce   :  { %2369 = vmatpush.bf16.msra.mxu1 %v3592_v4 }
0x18d2   :  { %2370 = vmatpush.bf16.msra.mxu1 %v3591_v1 }
0x18d6   :  { %2371 = vmatpush.bf16.msra.mxu1 %v3590_v11 }
0x18da   :  { %2372 = vmatpush.bf16.msra.mxu1 %v3589_v18  ;;  %v3611_v18 = vld [vmem:[#allocation4 + $0x230] sm:$0xff] }
0x1928   :  { %v1836_v34 = vpop.f32.mrf.mxu2 }
0x1929   :  { %v1837_v35 = vadd.f32 %v1836_v34, %v1778_v9 }
0x192b   :  { %v1843_v37 = vmul.f32 0.25, %v1837_v35  ;;  %vm1841_vm13 = vcmp.ge.f32.partialorder %v1837_v35, 0.0 }
0x192d   :  { %v1845_v40 = vsel %vm1841_vm13, %v1837_v35, %v1843_v37  ;;  %v3568_v35 = vld [vmem:[#allocation4 + $0xd8] sm:$0xff]  ;;  %v3567_v37 = vld [vmem:[#allocation4 + $0xd0] sm:$0xff] }
0x192e   :  { %2099 = vmatpush.bf16.msrb.mxu3 %v3568_v35 }
0x1930   :  { %v1838_v36 = vpop.f32.mrf.mxu2 }
0x1931   :  { %v1839_v38 = vadd.f32 %v1838_v36, %v1778_v9  ;;  %v2230_v36 = vperm.slane %v4016_v25, 5 }
0x1932   :  { %2100 = vmatpush.bf16.msrb.mxu3 %v3567_v37 }
0x1933   :  { %vm1842_vm14 = vcmp.ge.f32.partialorder %v1839_v38, 0.0  ;;  %v1844_v17 = vmul.f32 0.25, %v1839_v38 }
0x1935   :  { %v1846_v41 = vsel %vm1842_vm14, %v1839_v38, %v1844_v17  ;;  %v3566_v17 = vld [vmem:[#allocation4 + $0xc8] sm:$0xff] }
0x1936   :  { %v1863_v42 = vpack.c.bf16 %v1846_v41, %v1845_v40  ;;  %2101 = vmatpush.bf16.msrb.mxu3 %v3566_v17 }
0x1938   :  { %1921 = vmatmul.bf16.vlgmr.msra.gmra.mxu0 %v1863_v42  ;;  %v2202_v44 = vpop.f32.mrf.mxu2 }
0x1939   :  { %2691 = vmatpush.msra.mxu0 %v3717_v45  ;;  %v2203_v46 = vadd.f32 %v2202_v44, %v2144_v43  ;;  %v3565_v45 = vld [vmem:[#allocation4 + $0xc0] sm:$0xff] }
0x193a   :  { %2102 = vmatpush.bf16.msrb.mxu3 %v3565_v45 }
0x193b   :  { %v2209_v47 = vmul.f32 0.25, %v2203_v46  ;;  %vm2207_vm15 = vcmp.ge.f32.partialorder %v2203_v46, 0.0 }
0x193d   :  { %v2211_v50 = vsel %vm2207_vm15, %v2203_v46, %v2209_v47  ;;  %v3604_v46 = vld [vmem:[#allocation4 + $0x1f8] sm:$0xff]  ;;  %v3603_v47 = vld [vmem:[#allocation4 + $0x1f0] sm:$0xff] }
0x193e   :  { %2451 = vmatpush.bf16.msra.mxu3 %v3604_v46  ;;  %v1760_v46 = vld [vmem:[%s4067_s6 + $0x8] sm:$0xff] }
0x1940   :  { %v2204_v48 = vpop.f32.mrf.mxu2 }
0x1941   :  { %v2205_v49 = vadd.f32 %v2204_v48, %v2144_v43  ;;  %v3602_v48 = vld [vmem:[#allocation4 + $0x1e8] sm:$0xff] }
0x1942   :  { %2452 = vmatpush.bf16.msra.mxu3 %v3603_v47  ;;  %v2488_v47 = vperm.slane %v1760_v46, 0 }
0x1943   :  { %vm2208_vm0 = vcmp.ge.f32.partialorder %v2205_v49, 0.0  ;;  %v2210_v51 = vmul.f32 0.25, %v2205_v49 }
0x1945   :  { %v2212_v52 = vsel %vm2208_vm0, %v2205_v49, %v2210_v51  ;;  %v3601_v49 = vld [vmem:[#allocation4 + $0x1e0] sm:$0xff]  ;;  %v3599_v51 = vld [vmem:[#allocation4 + $0x1d0] sm:$0xff] }
0x1946   :  { %v2229_v53 = vpack.c.bf16 %v2212_v52, %v2211_v50  ;;  %2453 = vmatpush.bf16.msra.mxu3 %v3602_v48  ;;  %v3600_v50 = vld [vmem:[#allocation4 + $0x1d8] sm:$0xff]  ;;  %v3598_v52 = vld [vmem:[#allocation4 + $0x1c8] sm:$0xff] }
0x1948   :  { %2287 = vmatmul.bf16.vlgmr.msrb.gmra.mxu0 %v2229_v53  ;;  %v3597_v53 = vld [vmem:[#allocation4 + $0x1c0] sm:$0xff] }
0x1949   :  { %2789 = vmatpush.msrb.mxu0 %v3718_v55  ;;  %v1964_v55 = vperm.slane %v4016_v25, 2 }
0x194a   :  { %2454 = vmatpush.bf16.msra.mxu3 %v3601_v49 }
0x194e   :  { %2455 = vmatpush.bf16.msra.mxu3 %v3600_v50 }
0x1952   :  { %2456 = vmatpush.bf16.msra.mxu3 %v3599_v51 }
0x1956   :  { %2457 = vmatpush.bf16.msra.mxu3 %v3598_v52 }
0x195a   :  { %2458 = vmatpush.bf16.msra.mxu3 %v3597_v53 }
0x19b5   :  { %v1922_v5 = vpop.f32.mrf.mxu0 }
0x19b6   :  { %v1923_v6 = vadd.f32 %v1922_v5, %v1864_v3 }
0x19b8   :  { %vm1927_vm3 = vcmp.ge.f32.partialorder %v1923_v6, 0.0  ;;  %v1929_v7 = vmul.f32 0.25, %v1923_v6 }
0x19ba   :  { %v1931_v14 = vsel %vm1927_vm3, %v1923_v6, %v1929_v7 }
0x19bb   :  { %v1933_v15 = vrot.slane %v1931_v14, 4 }
0x19bd   :  { %v1934_v19 = vmax.f32 %v1931_v14, %v1933_v15  ;;  %v1924_v20 = vpop.f32.mrf.mxu0  ;;  %v3612_v15 = vld [vmem:[#allocation4 + $0x238] sm:$0xff] }
0x19be   :  { %v1925_v22 = vadd.f32 %v1924_v20, %v1864_v3  ;;  %2537 = vmatpush.bf16.msra.mxu2 %v3612_v15  ;;  %v3609_v20 = vld [vmem:[#allocation4 + $0x220] sm:$0xff] }
0x19bf   :  { %v1935_v23 = vrot.slane %v1934_v19, 2 }
0x19c0   :  { %vm1928_vm4 = vcmp.ge.f32.partialorder %v1925_v22, 0.0  ;;  %v1930_v62 = vmul.f32 0.25, %v1925_v22 }
0x19c1   :  { %v1936_v28 = vmax.f32 %v1934_v19, %v1935_v23  ;;  %v3610_v19 = vld [vmem:[#allocation4 + $0x228] sm:$0xff]  ;;  %v2046_v23 = vperm.slane %v4016_v25, 3 }
0x19c2   :  { %v1932_v24 = vsel %vm1928_vm4, %v1925_v22, %v1930_v62  ;;  %2538 = vmatpush.bf16.msra.mxu2 %v3611_v18  ;;  %v3608_v22 = vld [vmem:[#allocation4 + $0x218] sm:$0xff]  ;;  %v3607_v62 = vld [vmem:[#allocation4 + $0x210] sm:$0xff] }
0x19c3   :  { %v1939_v8 = vrot.slane %v1932_v24, 4  ;;  %v1937_v31 = vrot.slane %v1936_v28, 1 }
0x19c5   :  { %v1940_v29 = vmax.f32 %v1932_v24, %v1939_v8  ;;  %v2288_v59 = vpop.f32.mrf.mxu0  ;;  %v1938_v34 = vmax.f32 %v1936_v28, %v1937_v31  ;;  %v3605_v28 = vld [vmem:[#allocation4 + $0x200] sm:$0xff] }
0x19c6   :  { %v2289_v39 = vadd.f32 %v2288_v59, %v2230_v36  ;;  %2539 = vmatpush.bf16.msra.mxu2 %v3610_v19 }
0x19c7   :  { %v1941_v54 = vrot.slane %v1940_v29, 2 }
0x19c8   :  { %v2295_v41 = vmul.f32 0.25, %v2289_v39  ;;  %vm2293_vm7 = vcmp.ge.f32.partialorder %v2289_v39, 0.0 }
0x19c9   :  { %v1942_v12 = vmax.f32 %v1940_v29, %v1941_v54 }
0x19ca   :  { %v2297_v43 = vsel %vm2293_vm7, %v2289_v39, %v2295_v41  ;;  %2540 = vmatpush.bf16.msra.mxu2 %v3609_v20 }
0x19cb   :  { %v1943_v32 = vrot.slane %v1942_v12, 1 }
0x19cd   :  { %v1944_v21 = vmax.f32 %v1942_v12, %v1943_v32  ;;  %v2290_v10 = vpop.f32.mrf.mxu0 }
0x19ce   :  { %v2291_v38 = vadd.f32 %v2290_v10, %v2230_v36  ;;  %2541 = vmatpush.bf16.msra.mxu2 %v3608_v22 }
0x19cf   :  { %v1946_v9 = vsel %vm1945_vm5, %v1938_v34, %v1944_v21  ;;  %v2402_v34 = vperm.slane %v4016_v25, 7 }
0x19d0   :  { %v1963_v13 = vpack.c.bf16 %v1946_v9, %v1946_v9  ;;  %v2296_v40 = vmul.f32 0.25, %v2291_v38  ;;  %vm2294_vm6 = vcmp.ge.f32.partialorder %v2291_v38, 0.0 }
0x19d2   :  { %2021 = vmatmul.bf16.vlgmr.msrb.gmra.mxu1 %v1963_v13  ;;  %v2298_v42 = vsel %vm2294_vm6, %v2291_v38, %v2296_v40  ;;  %2542 = vmatpush.bf16.msra.mxu2 %v3607_v62 }
0x19d3   :  { %v2315_v44 = vpack.c.bf16 %v2298_v42, %v2297_v43 }
0x19d6   :  { %2543 = vmatpush.bf16.msra.mxu2 %v3606_v26 }
0x19da   :  { %2544 = vmatpush.bf16.msra.mxu2 %v3605_v28 }
0x19e2   :  { %2373 = vmatmul.bf16.vlgmr.msra.gmra.mxu1 %v2315_v44 }
0x1a4f   :  { %v2022_v56 = vpop.f32.mrf.mxu1 }
0x1a50   :  { %v2023_v57 = vadd.f32 %v2022_v56, %v1964_v55 }
0x1a52   :  { %vm2026_vm8 = vcmp.ge.f32.partialorder %v2023_v57, 0.0  ;;  %v2027_v58 = vmul.f32 0.25, %v2023_v57 }
0x1a54   :  { %v2028_v60 = vsel %vm2026_vm8, %v2023_v57, %v2027_v58 }
0x1a55   :  { %v2045_v61 = vpack.c.bf16 %v2028_v60, %v2028_v60 }
0x1a57   :  { %v2024_v63 = vpop.f32.mrf.mxu1  ;;  %2103 = vmatmul.bf16.vlgmr.msrb.gmra.mxu3 %v2045_v61 }
0x1a5f   :  { %v2374_v0 = vpop.f32.mrf.mxu1 }
0x1a60   :  { %v2375_v3 = vadd.f32 %v2374_v0, %v2316_v2 }
0x1a62   :  { %v2381_v1 = vmul.f32 0.25, %v2375_v3  ;;  %vm2379_vm9 = vcmp.ge.f32.partialorder %v2375_v3, 0.0 }
0x1a64   :  { %v2383_v7 = vsel %vm2379_vm9, %v2375_v3, %v2381_v1 }
0x1a67   :  { %v2376_v4 = vpop.f32.mrf.mxu1 }
0x1a68   :  { %v2377_v5 = vadd.f32 %v2376_v4, %v2316_v2 }
0x1a6a   :  { %vm2380_vm10 = vcmp.ge.f32.partialorder %v2377_v5, 0.0  ;;  %v2382_v6 = vmul.f32 0.25, %v2377_v5 }
0x1a6c   :  { %v2384_v11 = vsel %vm2380_vm10, %v2377_v5, %v2382_v6 }
0x1a6d   :  { %v2401_v14 = vpack.c.bf16 %v2384_v11, %v2383_v7 }
0x1a6f   :  { %2459 = vmatmul.bf16.vlgmr.msra.gmra.mxu3 %v2401_v14 }
0x1ada   :  { %v2104_v24 = vpop.f32.mrf.mxu3 }
0x1adb   :  { %v2105_v8 = vadd.f32 %v2104_v24, %v2046_v23 }
0x1add   :  { %v3294_v27 = vmul.f32 -1.442695, %v2105_v8 }
0x1adf   :  { %3693 = vpow2.f32 %v3294_v27 }
0x1ae2   :  { %v2106_v29 = vpop.f32.mrf.mxu3 }
0x1ae5   :  { %v3694_v54 = vpop.eup %3693 }
0x1ae6   :  { %v2111_v59 = vadd.f32 1.0, %v3694_v54 }
0x1ae8   :  { %3695 = vrcp.f32 %v2111_v59  ;;  %v2123_v33 = vand.u32 2147483648, %v2111_v59  ;;  %v2121_v9 = vand.u32 2147483647, %v2111_v59  ;;  %vm2117_vm12 = vweird.f32 %v2111_v59 }
0x1aea   :  { %v2124_v35 = vor.u32 1.1754944e-38, %v2123_v33  ;;  %vm2122_vm13 = vcmp.eq.f32.partialorder %v2121_v9, 8.507059e+37 }
0x1aee   :  { %v3696_v30 = vpop.eup %3695 }
0x1aef   :  { %v2113_v31 = vmul.f32 %v3696_v30, %v2111_v59  ;;  %vm2118_vm11 = vweird.f32 %v3696_v30 }
0x1af0   :  { %vm2119_vm1 = vmor %vm2117_vm12, %vm2118_vm11 }
0x1af1   :  { %v2114_v12 = vsub.f32 1.0, %v2113_v31 }
0x1af2   :  { %v2460_v32 = vpop.f32.mrf.mxu3 }
0x1af3   :  { %v2115_v21 = vmul.f32 %v3696_v30, %v2114_v12  ;;  %v2461_v10 = vadd.f32 %v2460_v32, %v2402_v34 }
0x1af5   :  { %v2116_v13 = vadd.f32 %v3696_v30, %v2115_v21  ;;  %v2467_v17 = vmul.f32 0.25, %v2461_v10  ;;  %vm2465_vm14 = vcmp.ge.f32.partialorder %v2461_v10, 0.0 }
0x1af7   :  { %v2120_v36 = vsel %vm2119_vm1, %v3696_v30, %v2116_v13  ;;  %v2469_v43 = vsel %vm2465_vm14, %v2461_v10, %v2467_v17  ;;  %v2595_v10 = vld [vmem:[%s4063_s2] sm:$0xff] }
0x1af8   :  { %v2125_v37 = vsel %vm2122_vm13, %v2124_v35, %v2120_v36 }
0x1af9   :  { %v2127_v38 = vmul.f32 8.0, %v2125_v37  ;;  %v2596_v37 = vld [vmem:[%s4063_s2 + $0x8] sm:$0xff]  ;;  %s3777_s2 = smov 16  }
0x1afa   :  { %v2462_v39 = vpop.f32.mrf.mxu3 }
0x1afb   :  { %v2463_v40 = vadd.f32 %v2462_v39, %v2402_v34  ;;  %v2598_v41 = vadd.f32 1e-09, %v2127_v38 }
0x1afd   :  { %vm2466_vm15 = vcmp.ge.f32.partialorder %v2463_v40, 0.0  ;;  %v2468_v42 = vmul.f32 0.25, %v2463_v40  ;;  %3613 = vpush %v2598_v41  ;;  %v2697_v25 = vrot.slane %v2598_v41, 1 }
0x1aff   :  { %v2470_v44 = vsel %vm2466_vm15, %v2463_v40, %v2468_v42  ;;  %3615 = vpush %v2697_v25  ;;  %v2597_v40 = vsub.f32 0.0, %v2595_v10  ;;  %v2696_v42 = vsub.f32 0.0, %v2596_v37 }
0x1b00   :  { %v2487_v45 = vpack.c.bf16 %v2470_v44, %v2469_v43 }
0x1b02   :  { %2545 = vmatmul.bf16.vlgmr.msra.gmra.mxu2 %v2487_v45 }
0x1b2e   :  { %s3614_s6 = spop %3613 }
0x1b2f   :  { %v2601_v27 = vstv %s3614_s6 }
0x1b30   :  { %s3616_s10 = spop %3615  ;;  %v2614_v21 = vand.u32 2147483648, %v2601_v27  ;;  %vm2608_vm13 = vweird.f32 %v2601_v27  ;;  %v2612_v9 = vand.u32 2147483647, %v2601_v27 }
0x1b31   :  { %v2699_v28 = vstv %s3616_s10 }
0x1b32   :  { %v2712_v13 = vand.u32 2147483648, %v2699_v28  ;;  %vm2706_vm15 = vweird.f32 %v2699_v28  ;;  %v2710_v35 = vand.u32 2147483647, %v2699_v28  ;;  %v2615_v38 = vor.u32 1.1754944e-38, %v2614_v21 }
0x1b34   :  { %v2713_v17 = vor.u32 1.1754944e-38, %v2712_v13 }
0x1b85   :  { %v2546_v48 = vpop.f32.mrf.mxu2 }
0x1b86   :  { %v2547_v49 = vadd.f32 %v2546_v48, %v2488_v47 }
0x1b88   :  { %v3455_v50 = vmul.f32 -1.442695, %v2547_v49 }
0x1b8a   :  { %3697 = vpow2.f32 %v3455_v50 }
0x1b8d   :  { %v2548_v51 = vpop.f32.mrf.mxu2 }
0x1b8e   :  { %v2549_v52 = vadd.f32 %v2548_v51, %v2488_v47 }
0x1b90   :  { %v3698_v53 = vpop.eup %3697  ;;  %v3456_v55 = vmul.f32 -1.442695, %v2549_v52 }
0x1b91   :  { %v2557_v56 = vadd.f32 1.0, %v3698_v53 }
0x1b92   :  { %3699 = vpow2.f32 %v3456_v55 }
0x1b93   :  { %3701 = vrcp.f32 %v2557_v56  ;;  %v2570_v4 = vand.u32 2147483648, %v2557_v56  ;;  %vm2564_vm3 = vweird.f32 %v2557_v56  ;;  %v2568_v1 = vand.u32 2147483647, %v2557_v56 }
0x1b95   :  { %v2571_v11 = vor.u32 1.1754944e-38, %v2570_v4  ;;  %vm2569_vm5 = vcmp.eq.f32.partialorder %v2568_v1, 8.507059e+37 }
0x1b98   :  { %v3700_v57 = vpop.eup %3699 }
0x1b99   :  { %v3702_v58 = vpop.eup %3701  ;;  %v2558_v60 = vadd.f32 1.0, %v3700_v57 }
0x1b9a   :  { %v2560_v61 = vmul.f32 %v3702_v58, %v2557_v56  ;;  %vm2565_vm0 = vweird.f32 %v3702_v58 }
0x1b9b   :  { %3703 = vrcp.f32 %v2558_v60  ;;  %vm2566_vm4 = vmor %vm2564_vm3, %vm2565_vm0  ;;  %v2585_v14 = vand.u32 2147483648, %v2558_v60  ;;  %v2583_v18 = vand.u32 2147483647, %v2558_v60  ;;  %vm2579_vm7 = vweird.f32 %v2558_v60 }
0x1b9c   :  { %v2561_v63 = vsub.f32 1.0, %v2560_v61  ;;  %3705 = vrcp.f32 %v2601_v27  ;;  %vm2613_vm3 = vcmp.eq.f32.partialorder %v2612_v9, 8.507059e+37 }
0x1b9d   :  { %v2586_v22 = vor.u32 1.1754944e-38, %v2585_v14  ;;  %vm2584_vm9 = vcmp.eq.f32.partialorder %v2583_v18, 8.507059e+37  ;;  %3707 = vrcp.f32 %v2699_v28 }
0x1b9e   :  { %v2562_v0 = vmul.f32 %v3702_v58, %v2561_v63 }
0x1ba0   :  { %v2563_v2 = vadd.f32 %v3702_v58, %v2562_v0 }
0x1ba1   :  { %v3704_v3 = vpop.eup %3703 }
0x1ba2   :  { %v2575_v5 = vmul.f32 %v3704_v3, %v2558_v60  ;;  %v2567_v6 = vsel %vm2566_vm4, %v3702_v58, %v2563_v2  ;;  %vm2580_vm6 = vweird.f32 %v3704_v3  ;;  %v3706_v29 = vpop.eup %3705  ;;  %vm2711_vm4 = vcmp.eq.f32.partialorder %v2710_v35, 8.507059e+37 }
0x1ba3   :  { %v4035_v19 = vsel %vm2569_vm5, %v2571_v11, %v2567_v6  ;;  %vm2581_vm8 = vmor %vm2579_vm7, %vm2580_vm6  ;;  %v3708_v54 = vpop.eup %3707  ;;  %v2604_v59 = vmul.f32 %v3706_v29, %v2601_v27  ;;  %vm2609_vm12 = vweird.f32 %v3706_v29 }
0x1ba4   :  { %v2576_v7 = vsub.f32 1.0, %v2575_v5  ;;  %vm2589_vm10 = vcmp.gt.f32.partialorder %v4035_v19, 0.5  ;;  %v2702_v30 = vmul.f32 %v3708_v54, %v2699_v28  ;;  %vm2707_vm1 = vweird.f32 %v3708_v54  ;;  %vm2610_vm14 = vmor %vm2608_vm13, %vm2609_vm12 }
0x1ba5   :  { %v3457_v24 = vsel %vm2589_vm10, 1.0, %v3775_v16  ;;  %v2605_v31 = vsub.f32 1.0, %v2604_v59  ;;  %vm2708_vm0 = vmor %vm2706_vm15, %vm2707_vm1  ;;  %vm2810_vm1 = vcmask 130048   ;;  %vm2813_vm13 = vcmask 138240  }
0x1ba6   :  { %v2577_v15 = vmul.f32 %v3704_v3, %v2576_v7  ;;  %v2703_v12 = vsub.f32 1.0, %v2702_v30 }
0x1ba7   :  { %v2606_v32 = vmul.f32 %v3706_v29, %v2605_v31 }
0x1ba8   :  { %v2578_v20 = vadd.f32 %v3704_v3, %v2577_v15  ;;  %v2704_v33 = vmul.f32 %v3708_v54, %v2703_v12 }
0x1ba9   :  { %v2607_v34 = vadd.f32 %v3706_v29, %v2606_v32 }
0x1baa   :  { %v2582_v62 = vsel %vm2581_vm8, %v3704_v3, %v2578_v20 }
0x1bab   :  { %v4038_v23 = vsel %vm2584_vm9, %v2586_v22, %v2582_v62  ;;  %v2611_v36 = vsel %vm2610_vm14, %v3706_v29, %v2607_v34  ;;  %vm2816_vm14 = vcmask 146432  }
0x1bac   :  { %vm2590_vm11 = vcmp.gt.f32.partialorder %v4038_v23, 0.5  ;;  %v2616_v41 = vsel %vm2613_vm3, %v2615_v38, %v2611_v36 }
0x1bad   :  { %v3458_v26 = vsel %vm2590_vm11, 1.0, %v3775_v16  ;;  %v2705_v16 = vadd.f32 %v3708_v54, %v2704_v33  ;;  %v2617_v43 = vmul.f32 %v2616_v41, %v2597_v40 }
0x1bae   :  { %v3632_v8 = vpack.i.bf16 %v3458_v26, %v3457_v24 }
0x1baf   :  { %v2709_v39 = vsel %vm2708_vm0, %v3708_v54, %v2705_v16  ;;  %v2618_v45 = vmul.f32 1.442695, %v2617_v43 }
0x1bb0   :  { %3626 = vxpose.xlu0.b32.start.end [1/1] (short) (narrow) %v3632_v8, 8  ;;  %v2714_v25 = vsel %vm2711_vm4, %v2713_v17, %v2709_v39 }
0x1bb1   :  { %v2715_v44 = vmul.f32 %v2714_v25, %v2696_v42  ;;  %3709 = vpow2.f32 %v2618_v45 }
0x1bb3   :  { %v2716_v46 = vmul.f32 1.442695, %v2715_v44 }
0x1bb5   :  { %3711 = vpow2.f32 %v2716_v46 }
0x1bb7   :  { %v3710_v50 = vpop.eup %3709 }
0x1bbb   :  { %v3712_v53 = vpop.eup %3711 }
0x1c54   :  { %v3627_v47 = vpop.trf.xlu0 }
0x1c55   :  { %v3631_v48 = vunpack.i.h.bf16 %v3627_v47  ;;  %v3628_v49 = vunpack.i.l.bf16 %v3627_v47 }
0x1c57   :  { %v2750_v51 = vperm.slane %v3631_v48, 0  ;;  %v2652_v52 = vperm.slane %v3628_v49, 0 }
0x1c59   :  { %v2751_v55 = vmul.f32 %v3712_v53, %v2750_v51  ;;  %v2653_v56 = vmul.f32 %v3710_v50, %v2652_v52 }
0x1c5b   :  { %v2752_v57 = vsel %vm179_vm2, %v2751_v55, 0.0  ;;  %v2654_v58 = vsel %vm179_vm2, %v2653_v56, 0.0 }
0x1c5c   :  { %2753 = vadd.xlane.f32.xlu1 %v2752_v57  ;;  %2655 = vadd.xlane.f32.xlu2 %v2654_v58 }
0x1c74   :  { %2796 = vrot.lane.b32.xlu2 %v4035_v19, %s3777_s2 }
0x1c75   :  { %2798 = vrot.lane.b32.xlu1 %v4038_v23, %s3777_s2 }
0x1c7c   :  { %3633 = vrot.lane.b32.xlu2 %v3632_v8, %s3778_s13 }
0x1ccf   :  { %v2754_v60 = vpop.xlane.xlu1 %2753  ;;  %v2656_v61 = vpop.xlane.xlu2 %2655 }
0x1cd0   :  { %v2755_v63 = vadd.f32 1e-09, %v2754_v60  ;;  %v2657_v0 = vadd.f32 1e-09, %v2656_v61 }
0x1cd2   :  { %3713 = vrcp.f32 %v2755_v63  ;;  %v2669_v7 = vand.u32 2147483648, %v2657_v0  ;;  %v2667_v15 = vand.u32 2147483647, %v2657_v0  ;;  %vm2663_vm6 = vweird.f32 %v2657_v0 }
0x1cd3   :  { %3715 = vrcp.f32 %v2657_v0  ;;  %v2767_v62 = vand.u32 2147483648, %v2755_v63  ;;  %vm2761_vm10 = vweird.f32 %v2755_v63  ;;  %v2765_v24 = vand.u32 2147483647, %v2755_v63 }
0x1cd4   :  { %v2670_v19 = vor.u32 1.1754944e-38, %v2669_v7  ;;  %vm2668_vm9 = vcmp.eq.f32.partialorder %v2667_v15, 8.507059e+37 }
0x1cd5   :  { %v2768_v27 = vor.u32 1.1754944e-38, %v2767_v62  ;;  %vm2766_vm12 = vcmp.eq.f32.partialorder %v2765_v24, 8.507059e+37 }
0x1cd7   :  { %v2797_v54 = vpop.permute.xlu2 %2796 }
0x1cd8   :  { %v3714_v2 = vpop.eup %3713 }
0x1cd9   :  { %v3716_v3 = vpop.eup %3715  ;;  %v2757_v4 = vmul.f32 %v3714_v2, %v2755_v63  ;;  %vm2762_vm8 = vweird.f32 %v3714_v2 }
0x1cda   :  { %v2659_v1 = vmul.f32 %v3716_v3, %v2657_v0  ;;  %vm2664_vm5 = vweird.f32 %v3716_v3  ;;  %vm2763_vm11 = vmor %vm2761_vm10, %vm2762_vm8 }
0x1cdb   :  { %v2758_v5 = vsub.f32 1.0, %v2757_v4  ;;  %vm2665_vm7 = vmor %vm2663_vm6, %vm2664_vm5 }
0x1cdc   :  { %v2660_v6 = vsub.f32 1.0, %v2659_v1 }
0x1cdd   :  { %v2759_v11 = vmul.f32 %v3714_v2, %v2758_v5 }
0x1cde   :  { %v2661_v14 = vmul.f32 %v3716_v3, %v2660_v6 }
0x1cdf   :  { %v2760_v20 = vadd.f32 %v3714_v2, %v2759_v11  ;;  %v3634_v59 = vpop.permute.xlu2 %3633 }
0x1ce0   :  { %v2662_v18 = vadd.f32 %v3716_v3, %v2661_v14  ;;  %v3635_v30 = vunpack.i.l.bf16 %v3634_v59  ;;  %v3636_v34 = vunpack.i.h.bf16 %v3634_v59 }
0x1ce1   :  { %v2764_v8 = vsel %vm2763_vm11, %v3714_v2, %v2760_v20 }
0x1ce2   :  { %v2666_v22 = vsel %vm2665_vm7, %v3716_v3, %v2662_v18  ;;  %v2769_v28 = vsel %vm2766_vm12, %v2768_v27, %v2764_v8 }
0x1ce3   :  { %v2671_v23 = vsel %vm2668_vm9, %v2670_v19, %v2666_v22  ;;  %v2770_v29 = vmul.f32 %v2769_v28, %v2751_v55 }
0x1ce4   :  { %v2672_v26 = vmul.f32 %v2671_v23, %v2653_v56 }
0x1ce6   :  { %3459 = vmatmul.msk.f32.vlgmr.msra.gmra.mxu0 %vm179_vm2, %v2672_v26 }
0x1ce7   :  { %v2799_v21 = vpop.permute.xlu1 %2798 }
0x1cee   :  { %3460 = vmatmul.msk.f32.vlgmr.msrb.gmra.mxu0 %vm179_vm2, %v2770_v29 }
0x1d63   :  { %v2693_v31 = vpop.f32.mrf.mxu0 }
0x1d64   :  { %v2811_v12 = vsel %vm2810_vm1, %v2693_v31, %v2797_v54 }
0x1d65   :  { %v2814_v32 = vsel %vm2813_vm13, %v2811_v12, %v3635_v30 }
0x1d66   :  { %v2817_v33 = vsel %vm2816_vm14, %v2814_v32, 0.0 }
0x1d67   :  { %2819 = vst [vmem:[%s4068_s7] sm:$0xff] %v2817_v33 }
0x1d6b   :  { %v2791_v16 = vpop.f32.mrf.mxu0 }
0x1d6c   :  { %v2812_v9 = vsel %vm2810_vm1, %v2791_v16, %v2799_v21 }
0x1d6d   :  { %v2815_v13 = vsel %vm2813_vm13, %v2812_v9, %v3636_v34 }
0x1d6e   :  { %v2818_v35 = vsel %vm2816_vm14, %v2815_v13, 0.0 }
0x1d6f   :  { %2820 = vst [vmem:[%s4068_s7 + $0x8] sm:$0xff] %v2818_v35 }
0x1d70   :  { %2825 = vsyncpa [#allocation3], 1 }
0x1d71   :  { %2826 = vsyncpa [#allocation5], 1 }

</bundles_post_ra>
